<compile_context>
chip_gen: v7x
topology: tpu7x:2x2x1
jax: 0.10.0
libtpu: 0.0.40
codegen_flags: <defaults>
</compile_context>

<pallas_src>
import jax
import jax.numpy as jnp
from jax import lax
from jax.experimental import pallas as pl
from jax.experimental.pallas import tpu as pltpu

B, C, H, W = 2, 32, 16, 16
NUM_HEADS = 8
HEAD_DIM = C // NUM_HEADS
K = 9                        # boxes (graph nodes) per image
NODES = 32                   # B*K = 18 valid nodes, zero-padded to 32
BN_EPS = 1e-5
LN_EPS = 1e-5
HW = H * W                   # 256
KC = 9 * C                   # 288  (im2col contraction dim)

_VMEM = pl.BlockSpec(memory_space=pltpu.MemorySpace.VMEM)


# --------------------------- fused forward kernel ---------------------------
# TODO(synk): on v7x the conv+SiLU+ROI stage could be split over a 'parallel' grid=(B,) axis for
#             the second TensorCore; at this toy B=2 size the extra launch/HBM round-trip of the
#             (18,32) node matrix outweighs it, so a single fused grid step is kept.
def _fused_kernel(x_ref, xim_ref, wmap_ref, wqkv_ref, wstk_ref, slab_ref, o_ref):
    f32, bf16 = jnp.float32, jnp.bfloat16
    slab = slab_ref[...]                          # (8,128) f32: one vreg of packed params/masks
    b_qkv = slab[0:1, 0:3 * C]                    # (1,96) fused q/k/v bias (scale folded in q)
    b_conv = slab[1:2, 0:C]                       # (1,32) conv bias + BN (folded)
    b_out = slab[2:3, 0:C]                        # (1,32) out_fc bias
    ln_g = slab[3:4, 0:C]
    ln_b = slab[4:5, 0:C]
    b_rec = slab[5:6, 0:C]                        # (1,32) 1x1 conv + BN (folded)
    kmask = slab[6:7, 0:NODES]                    # (1,32) additive key mask (-1e9 on pad nodes)

    # ---- conv3x3 + BN + SiLU: ONE (512,288)@(288,32) dot; K=288 accumulates inside the MXU ----
    z = jnp.dot(xim_ref[...], wstk_ref[0:KC, :], preferred_element_type=f32) + b_conv
    feat = z / (1.0 + jnp.exp(-z))                # exact SiLU (exp on EUP; exact div for parity)

    # ---- roi_align(1x1), both images at once: block-diagonal weight map, one matmul ----
    nodes = jnp.dot(wmap_ref[...], feat.astype(bf16),
                    preferred_element_type=f32)   # (32,32); rows 18..31 are zero padding

    # ---- GAT: fused QKV (N=96), per-head attention via head-masked full-width 32x32 matmuls ----
    qkv = jnp.dot(nodes.astype(bf16), wqkv_ref[...], preferred_element_type=f32) + b_qkv
    q, k, v = qkv[:, 0:C], qkv[:, C:2 * C], qkv[:, 2 * C:3 * C]
    k_bf = k.astype(bf16)
    msg = jnp.zeros((NODES, C), f32)
    for h in range(NUM_HEADS):
        hm = slab[h:h + 1, 96:128]                # (1,32) 0/1 mask selecting head-h channels
        s = lax.dot_general((q * hm).astype(bf16), k_bf,
                            (((1,), (1,)), ((), ())),
                            preferred_element_type=f32)             # (32,32), contraction K=32
        s = s + kmask                                                # mask padded key nodes
        s = s - jnp.max(s, axis=-1, keepdims=True)                   # softmax over keys
        e = jnp.exp(s)
        attn = e / jnp.sum(e, axis=-1, keepdims=True)
        msg = msg + jnp.dot(attn.astype(bf16), (v * hm).astype(bf16),
                            preferred_element_type=f32)              # fills head-h msg columns
    y = nodes + jnp.dot(msg.astype(bf16), wstk_ref[KC:KC + C, :],
                        preferred_element_type=f32) + b_out          # residual + out_fc (N=32)
    mu = jnp.mean(y, axis=-1, keepdims=True)                         # LayerNorm
    var = jnp.mean((y - mu) ** 2, axis=-1, keepdims=True)
    yn = (y - mu) * lax.rsqrt(var + LN_EPS) * ln_g + ln_b            # (32,32)

    # ---- reconstruct + 1x1 conv + BN + residual; lane-dense (64,128) output ----
    node_mean = jnp.mean(yn, axis=-1, keepdims=True)                 # (32,1)
    row = lax.broadcasted_iota(jnp.int32, (NODES, 1), 0)
    for b in range(B):
        sel = (row >= b * K) & (row < (b + 1) * K)                   # this image's 9 node rows
        mb = jnp.where(sel, node_mean, -1e9)
        mb = mb - jnp.max(mb, axis=0, keepdims=True)
        e = jnp.exp(mb)
        wts = e / jnp.sum(e, axis=0, keepdims=True)                  # softmax over the 9 boxes
        weighted = jnp.sum(yn * wts, axis=0, keepdims=True)          # (1,32) einsum('bkc,bk->bc')
        rec = jnp.dot(weighted.astype(bf16), wstk_ref[KC + C:KC + 2 * C, :],
                      preferred_element_type=f32) + b_rec            # 1x1 conv + BN (folded)
        rec128 = jnp.concatenate([rec, rec, rec, rec], axis=1)       # (1,128): 4 pixels per row
        o_ref[b] = x_ref[b] + rec128                                 # broadcast over 64 rows


# --------------------------- parameter init (deterministic) ---------------------------
def init_params(key):
    ks = jax.random.split(key, 24)

    def nrm(k, shape, s=0.1):
        return jax.random.normal(k, shape, jnp.float32) * s

    p = {}
    # feature_extractor: Conv2d(C,C,3,pad=1) + BatchNorm2d(C) + SiLU  (BN folded, inference mode)
    conv_w = nrm(ks[0], (C, C, 3, 3))                  # torch layout (out, in, kh, kw)
    conv_b = nrm(ks[1], (C,))
    bn1_g = 1.0 + nrm(ks[2], (C,), 0.05); bn1_b = nrm(ks[3], (C,), 0.05)
    bn1_m = nrm(ks[4], (C,), 0.05); bn1_v = 1.0 + jnp.abs(nrm(ks[5], (C,), 0.05))
    s1 = bn1_g / jnp.sqrt(bn1_v + BN_EPS)
    w_fold = conv_w * s1[:, None, None, None]
    w_conv = jnp.transpose(w_fold, (2, 3, 1, 0)).reshape(KC, C)      # (288,32) tap-major, in-minor
    b_conv = (conv_b - bn1_m) * s1 + bn1_b

    # GATLayer (torch Linear weights are (out, in); q = x @ W^T + b); scale folded into q block
    wq = nrm(ks[6], (C, C)); bq = nrm(ks[7], (C,))
    wk = nrm(ks[8], (C, C)); bk = nrm(ks[9], (C,))
    wv = nrm(ks[10], (C, C)); bv = nrm(ks[11], (C,))
    wo = nrm(ks[12], (C, C)); bo = nrm(ks[13], (C,))
    scale = 1.0 / (HEAD_DIM ** 0.5)
    p["w_qkv"] = jnp.concatenate([wq.T * scale, wk.T, wv.T], axis=1).astype(jnp.bfloat16)  # (32,96)
    b_qkv = jnp.concatenate([bq * scale, bk, bv])                    # (96,)
    w_out = wo.T                                                     # (32,32)
    ln_g = jnp.ones((C,), jnp.float32)
    ln_b = jnp.zeros((C,), jnp.float32)

    # reconstructor: Conv2d(C,C,1) + BatchNorm2d(C)  (BN folded, inference mode)
    wr = nrm(ks[14], (C, C)); br = nrm(ks[15], (C,))
    bn2_g = 1.0 + nrm(ks[16], (C,), 0.05); bn2_b = nrm(ks[17], (C,), 0.05)
    bn2_m = nrm(ks[18], (C,), 0.05); bn2_v = 1.0 + jnp.abs(nrm(ks[19], (C,), 0.05))
    s2 = bn2_g / jnp.sqrt(bn2_v + BN_EPS)
    w_rec = wr.T * s2[None, :]
    b_rec = s2 * br + bn2_b - s2 * bn2_m

    # stacked weight slab: rows 0:288 conv, 288:320 out_fc, 320:352 reconstructor (bf16)
    p["w_stack"] = jnp.concatenate([w_conv, w_out, w_rec], axis=0).astype(jnp.bfloat16)

    # packed scalar/bias/mask slab: one (8,128) f32 vreg (single DMA for all small params)
    slab = jnp.zeros((8, 128), jnp.float32)
    slab = slab.at[0, 0:3 * C].set(b_qkv)
    slab = slab.at[1, 0:C].set(b_conv)
    slab = slab.at[2, 0:C].set(bo)
    slab = slab.at[3, 0:C].set(ln_g)
    slab = slab.at[4, 0:C].set(ln_b)
    slab = slab.at[5, 0:C].set(b_rec)
    slab = slab.at[6, 0:NODES].set(jnp.where(jnp.arange(NODES) < B * K, 0.0, -1e9))  # key pad mask
    head_masks = (jnp.arange(C)[None, :] // HEAD_DIM
                  == jnp.arange(NUM_HEADS)[:, None]).astype(jnp.float32)             # (8,32)
    slab = slab.at[:, 96:96 + C].set(head_masks)
    p["slab"] = slab
    return p


# --------------------------- forward pass ---------------------------
# TODO(synk): yolo_boxes path (_sample_real_boxes / torch.multinomial) not implemented; only the
#             yolo_boxes=None virtual-box path, with jax.random replacing torch.rand.
@jax.jit
def graph_enhanced_detect(x_nchw, params, box_key):
    xf = x_nchw.astype(jnp.float32)
    x_nhwc = jnp.transpose(xf, (0, 2, 3, 1))                         # (B,H,W,C)
    x_res = x_nhwc.reshape(B, (H * W * C) // 128, 128)               # (B,64,128) lane-dense

    # im2col in the wrapper (~288 KiB bf16): the conv becomes one K=288 MXU dot in the kernel
    # and the sublane-misaligned in-kernel tap slices disappear.
    xpad = jnp.pad(x_nhwc, ((0, 0), (1, 1), (1, 1), (0, 0)))
    taps = [xpad[:, ky:ky + H, kx:kx + W, :] for ky in range(3) for kx in range(3)]
    xim = jnp.concatenate(taps, axis=-1).reshape(B * HW, KC).astype(jnp.bfloat16)

    # _get_boxes (yolo_boxes=None path): random virtual boxes, clamp(0,1)
    vb = jax.random.uniform(box_key, (B, K, 4), dtype=jnp.float32)
    vb = vb.at[:, :, 2:].add(vb[:, :, :2])
    boxes = jnp.clip(vb, 0.0, 1.0)

    # roi_align(output 1x1, aligned=False, sampling_ratio=-1) is separable for a 1x1 output:
    # per-box row/col bilinear weight profiles -> block-diagonal (NODES, B*H*W) weight map.
    ab = boxes * jnp.array([W - 1, H - 1, W - 1, H - 1], jnp.float32)
    x1, y1, x2, y2 = ab[..., 0], ab[..., 1], ab[..., 2], ab[..., 3]

    def axis_weights(c1, c2, size, g):
        roi = jnp.maximum(c2 - c1, 1.0)
        grid = jnp.ceil(roi)                                         # sampling_ratio = -1
        idx = jnp.arange(g, dtype=jnp.float32)[None, None, :]
        pts = c1[..., None] + (idx + 0.5) * (roi / grid)[..., None]
        ok = (idx < grid[..., None]) & (pts >= -1.0) & (pts <= float(size))
        pc = jnp.clip(pts, 0.0, float(size - 1))
        pos = jnp.arange(size, dtype=jnp.float32)
        tri = jnp.maximum(0.0, 1.0 - jnp.abs(pos[None, None, None, :] - pc[..., None]))
        tri = jnp.where(ok[..., None], tri, 0.0)
        return tri.sum(axis=2), grid                                 # (B,K,size), (B,K)

    ry, gh = axis_weights(y1, y2, H, max(H, W))
    rx, gw = axis_weights(x1, x2, W, max(H, W))
    wfull = ry[:, :, :, None] * rx[:, :, None, :] / (gh * gw)[..., None, None]   # (B,K,H,W)
    wflat = wfull.reshape(B, K, HW)
    wmap = jnp.zeros((NODES, B * HW), jnp.float32)                   # nodes 0..8 img0, 9..17 img1
    for b in range(B):
        wmap = wmap.at[b * K:(b + 1) * K, b * HW:(b + 1) * HW].set(wflat[b])
    wmap = wmap.astype(jnp.bfloat16)

    p = params
    out = pl.pallas_call(
        _fused_kernel,
        out_shape=jax.ShapeDtypeStruct((B, (H * W * C) // 128, 128), jnp.float32),
        in_specs=[_VMEM] * 6,
        out_specs=_VMEM,
        input_output_aliases={0: 0},          # out = x_res + delta: reuse the residual's buffer
    )(x_res, xim, wmap, p["w_qkv"], p["w_stack"], p["slab"])

    return jnp.transpose(out.reshape(B, H, W, C), (0, 3, 1, 2))


if __name__ == "__main__":
    root = jax.random.PRNGKey(0)
    k_param, k_x, k_box = jax.random.split(root, 3)
    params = init_params(k_param)
    x = jax.random.normal(k_x, (B, C, H, W), dtype=jnp.float32)

    out = graph_enhanced_detect(x, params, k_box)
    out = jax.block_until_ready(out)

    assert out.shape == (B, C, H, W), out.shape
    assert bool(jnp.all(jnp.isfinite(out)))
    print("KERNEL_OK")
</pallas_src>

<mosaic_0001>
module attributes {stable_mosaic.version = 11 : i64} {
  func.func @_fused_kernel(%arg0: memref<2x64x128xf32, #tpu.memory_space<vmem>>, %arg1: memref<512x288xbf16, #tpu.memory_space<vmem>>, %arg2: memref<32x512xbf16, #tpu.memory_space<vmem>>, %arg3: memref<32x96xbf16, #tpu.memory_space<vmem>>, %arg4: memref<352x32xbf16, #tpu.memory_space<vmem>>, %arg5: memref<8x128xf32, #tpu.memory_space<vmem>>, %arg6: memref<2x64x128xf32, #tpu.memory_space<vmem>>) attributes {dimension_semantics = [], scalar_prefetch = 0 : i64, scratch_operands = 0 : i64, tpu.core_type = #tpu.core_type<tc>} {
    %c0 = arith.constant 0 : index
    %c0_0 = arith.constant 0 : index
    %0 = vector.load %arg5[%c0, %c0_0] : memref<8x128xf32, #tpu.memory_space<vmem>>, vector<8x128xf32>
    %1 = vector.extract_strided_slice %0 {offsets = [0, 0], sizes = [1, 96], strides = [1, 1]} : vector<8x128xf32> to vector<1x96xf32>
    %2 = vector.extract_strided_slice %0 {offsets = [1, 0], sizes = [1, 32], strides = [1, 1]} : vector<8x128xf32> to vector<1x32xf32>
    %3 = vector.extract_strided_slice %0 {offsets = [2, 0], sizes = [1, 32], strides = [1, 1]} : vector<8x128xf32> to vector<1x32xf32>
    %4 = vector.extract_strided_slice %0 {offsets = [3, 0], sizes = [1, 32], strides = [1, 1]} : vector<8x128xf32> to vector<1x32xf32>
    %5 = vector.extract_strided_slice %0 {offsets = [4, 0], sizes = [1, 32], strides = [1, 1]} : vector<8x128xf32> to vector<1x32xf32>
    %6 = vector.extract_strided_slice %0 {offsets = [5, 0], sizes = [1, 32], strides = [1, 1]} : vector<8x128xf32> to vector<1x32xf32>
    %7 = vector.extract_strided_slice %0 {offsets = [6, 0], sizes = [1, 32], strides = [1, 1]} : vector<8x128xf32> to vector<1x32xf32>
    %c0_1 = arith.constant 0 : index
    %c0_2 = arith.constant 0 : index
    %8 = vector.load %arg1[%c0_1, %c0_2] : memref<512x288xbf16, #tpu.memory_space<vmem>>, vector<512x288xbf16>
    %c0_3 = arith.constant 0 : index
    %c0_4 = arith.constant 0 : index
    %9 = vector.load %arg4[%c0_3, %c0_4] : memref<352x32xbf16, #tpu.memory_space<vmem>>, vector<288x32xbf16>
    %cst = arith.constant dense<0.000000e+00> : vector<512x32xf32>
    %10 = tpu.matmul %8, %9, %cst {dimension_numbers = #tpu.dot_dimension_numbers<[1], [0], [0], [1], [0, 0, 1, 1], [], []>} : vector<512x288xbf16>, vector<288x32xbf16>, vector<512x32xf32> -> vector<512x32xf32>
    %11 = vector.broadcast %2 : vector<1x32xf32> to vector<512x32xf32>
    %12 = arith.addf %10, %11 : vector<512x32xf32>
    %cst_5 = arith.constant 0.000000e+00 : f32
    %13 = vector.broadcast %cst_5 : f32 to vector<512x32xf32>
    %14 = arith.subf %13, %12 : vector<512x32xf32>
    %15 = math.exp %14 : vector<512x32xf32>
    %cst_6 = arith.constant 1.000000e+00 : f32
    %16 = vector.broadcast %cst_6 : f32 to vector<512x32xf32>
    %17 = arith.addf %16, %15 : vector<512x32xf32>
    %18 = arith.divf %12, %17 : vector<512x32xf32>
    %c0_7 = arith.constant 0 : index
    %c0_8 = arith.constant 0 : index
    %19 = vector.load %arg2[%c0_7, %c0_8] : memref<32x512xbf16, #tpu.memory_space<vmem>>, vector<32x512xbf16>
    %20 = arith.truncf %18 : vector<512x32xf32> to vector<512x32xbf16>
    %cst_9 = arith.constant dense<0.000000e+00> : vector<32x32xf32>
    %21 = tpu.matmul %19, %20, %cst_9 {dimension_numbers = #tpu.dot_dimension_numbers<[1], [0], [0], [1], [0, 0, 1, 1], [], []>} : vector<32x512xbf16>, vector<512x32xbf16>, vector<32x32xf32> -> vector<32x32xf32>
    %22 = arith.truncf %21 : vector<32x32xf32> to vector<32x32xbf16>
    %c0_10 = arith.constant 0 : index
    %c0_11 = arith.constant 0 : index
    %23 = vector.load %arg3[%c0_10, %c0_11] : memref<32x96xbf16, #tpu.memory_space<vmem>>, vector<32x96xbf16>
    %cst_12 = arith.constant dense<0.000000e+00> : vector<32x96xf32>
    %24 = tpu.matmul %22, %23, %cst_12 {dimension_numbers = #tpu.dot_dimension_numbers<[1], [0], [0], [1], [0, 0, 1, 1], [], []>} : vector<32x32xbf16>, vector<32x96xbf16>, vector<32x96xf32> -> vector<32x96xf32>
    %25 = vector.broadcast %1 : vector<1x96xf32> to vector<32x96xf32>
    %26 = arith.addf %24, %25 : vector<32x96xf32>
    %27 = vector.extract_strided_slice %26 {offsets = [0, 0], sizes = [32, 32], strides = [1, 1]} : vector<32x96xf32> to vector<32x32xf32>
    %28 = vector.extract_strided_slice %26 {offsets = [0, 32], sizes = [32, 32], strides = [1, 1]} : vector<32x96xf32> to vector<32x32xf32>
    %29 = vector.extract_strided_slice %26 {offsets = [0, 64], sizes = [32, 32], strides = [1, 1]} : vector<32x96xf32> to vector<32x32xf32>
    %30 = arith.truncf %28 : vector<32x32xf32> to vector<32x32xbf16>
    %cst_13 = arith.constant 0.000000e+00 : f32
    %31 = vector.broadcast %cst_13 : f32 to vector<32x32xf32>
    %32 = vector.extract_strided_slice %0 {offsets = [0, 96], sizes = [1, 32], strides = [1, 1]} : vector<8x128xf32> to vector<1x32xf32>
    %33 = vector.broadcast %32 : vector<1x32xf32> to vector<32x32xf32>
    %34 = arith.mulf %27, %33 : vector<32x32xf32>
    %35 = arith.truncf %34 : vector<32x32xf32> to vector<32x32xbf16>
    %cst_14 = arith.constant dense<0.000000e+00> : vector<32x32xf32>
    %36 = tpu.matmul %35, %30, %cst_14 {dimension_numbers = #tpu.dot_dimension_numbers<[1], [1], [0], [0], [0, 0, 1, 0], [], []>} : vector<32x32xbf16>, vector<32x32xbf16>, vector<32x32xf32> -> vector<32x32xf32>
    %37 = vector.broadcast %7 : vector<1x32xf32> to vector<32x32xf32>
    %38 = arith.addf %36, %37 : vector<32x32xf32>
    %cst_15 = arith.constant dense<0xFF800000> : vector<32xf32>
    %39 = vector.multi_reduction <maximumf>, %38, %cst_15 [1] : vector<32x32xf32> to vector<32xf32>
    %40 = vector.shape_cast %39 : vector<32xf32> to vector<32x1xf32>
    %41 = vector.broadcast %40 : vector<32x1xf32> to vector<32x32xf32>
    %42 = arith.subf %38, %41 : vector<32x32xf32>
    %43 = math.exp %42 : vector<32x32xf32>
    %cst_16 = arith.constant dense<0.000000e+00> : vector<32xf32>
    %44 = vector.multi_reduction <add>, %43, %cst_16 [1] : vector<32x32xf32> to vector<32xf32>
    %45 = vector.shape_cast %44 : vector<32xf32> to vector<32x1xf32>
    %46 = vector.broadcast %45 : vector<32x1xf32> to vector<32x32xf32>
    %47 = arith.divf %43, %46 : vector<32x32xf32>
    %48 = arith.truncf %47 : vector<32x32xf32> to vector<32x32xbf16>
    %49 = vector.broadcast %32 : vector<1x32xf32> to vector<32x32xf32>
    %50 = arith.mulf %29, %49 : vector<32x32xf32>
    %51 = arith.truncf %50 : vector<32x32xf32> to vector<32x32xbf16>
    %cst_17 = arith.constant dense<0.000000e+00> : vector<32x32xf32>
    %52 = tpu.matmul %48, %51, %cst_17 {dimension_numbers = #tpu.dot_dimension_numbers<[1], [0], [0], [1], [0, 0, 1, 1], [], []>} : vector<32x32xbf16>, vector<32x32xbf16>, vector<32x32xf32> -> vector<32x32xf32>
    %53 = arith.addf %31, %52 : vector<32x32xf32>
    %54 = vector.extract_strided_slice %0 {offsets = [1, 96], sizes = [1, 32], strides = [1, 1]} : vector<8x128xf32> to vector<1x32xf32>
    %55 = vector.broadcast %54 : vector<1x32xf32> to vector<32x32xf32>
    %56 = arith.mulf %27, %55 : vector<32x32xf32>
    %57 = arith.truncf %56 : vector<32x32xf32> to vector<32x32xbf16>
    %cst_18 = arith.constant dense<0.000000e+00> : vector<32x32xf32>
    %58 = tpu.matmul %57, %30, %cst_18 {dimension_numbers = #tpu.dot_dimension_numbers<[1], [1], [0], [0], [0, 0, 1, 0], [], []>} : vector<32x32xbf16>, vector<32x32xbf16>, vector<32x32xf32> -> vector<32x32xf32>
    %59 = vector.broadcast %7 : vector<1x32xf32> to vector<32x32xf32>
    %60 = arith.addf %58, %59 : vector<32x32xf32>
    %cst_19 = arith.constant dense<0xFF800000> : vector<32xf32>
    %61 = vector.multi_reduction <maximumf>, %60, %cst_19 [1] : vector<32x32xf32> to vector<32xf32>
    %62 = vector.shape_cast %61 : vector<32xf32> to vector<32x1xf32>
    %63 = vector.broadcast %62 : vector<32x1xf32> to vector<32x32xf32>
    %64 = arith.subf %60, %63 : vector<32x32xf32>
    %65 = math.exp %64 : vector<32x32xf32>
    %cst_20 = arith.constant dense<0.000000e+00> : vector<32xf32>
    %66 = vector.multi_reduction <add>, %65, %cst_20 [1] : vector<32x32xf32> to vector<32xf32>
    %67 = vector.shape_cast %66 : vector<32xf32> to vector<32x1xf32>
    %68 = vector.broadcast %67 : vector<32x1xf32> to vector<32x32xf32>
    %69 = arith.divf %65, %68 : vector<32x32xf32>
    %70 = arith.truncf %69 : vector<32x32xf32> to vector<32x32xbf16>
    %71 = vector.broadcast %54 : vector<1x32xf32> to vector<32x32xf32>
    %72 = arith.mulf %29, %71 : vector<32x32xf32>
    %73 = arith.truncf %72 : vector<32x32xf32> to vector<32x32xbf16>
    %cst_21 = arith.constant dense<0.000000e+00> : vector<32x32xf32>
    %74 = tpu.matmul %70, %73, %cst_21 {dimension_numbers = #tpu.dot_dimension_numbers<[1], [0], [0], [1], [0, 0, 1, 1], [], []>} : vector<32x32xbf16>, vector<32x32xbf16>, vector<32x32xf32> -> vector<32x32xf32>
    %75 = arith.addf %53, %74 : vector<32x32xf32>
    %76 = vector.extract_strided_slice %0 {offsets = [2, 96], sizes = [1, 32], strides = [1, 1]} : vector<8x128xf32> to vector<1x32xf32>
    %77 = vector.broadcast %76 : vector<1x32xf32> to vector<32x32xf32>
    %78 = arith.mulf %27, %77 : vector<32x32xf32>
    %79 = arith.truncf %78 : vector<32x32xf32> to vector<32x32xbf16>
    %cst_22 = arith.constant dense<0.000000e+00> : vector<32x32xf32>
    %80 = tpu.matmul %79, %30, %cst_22 {dimension_numbers = #tpu.dot_dimension_numbers<[1], [1], [0], [0], [0, 0, 1, 0], [], []>} : vector<32x32xbf16>, vector<32x32xbf16>, vector<32x32xf32> -> vector<32x32xf32>
    %81 = vector.broadcast %7 : vector<1x32xf32> to vector<32x32xf32>
    %82 = arith.addf %80, %81 : vector<32x32xf32>
    %cst_23 = arith.constant dense<0xFF800000> : vector<32xf32>
    %83 = vector.multi_reduction <maximumf>, %82, %cst_23 [1] : vector<32x32xf32> to vector<32xf32>
    %84 = vector.shape_cast %83 : vector<32xf32> to vector<32x1xf32>
    %85 = vector.broadcast %84 : vector<32x1xf32> to vector<32x32xf32>
    %86 = arith.subf %82, %85 : vector<32x32xf32>
    %87 = math.exp %86 : vector<32x32xf32>
    %cst_24 = arith.constant dense<0.000000e+00> : vector<32xf32>
    %88 = vector.multi_reduction <add>, %87, %cst_24 [1] : vector<32x32xf32> to vector<32xf32>
    %89 = vector.shape_cast %88 : vector<32xf32> to vector<32x1xf32>
    %90 = vector.broadcast %89 : vector<32x1xf32> to vector<32x32xf32>
    %91 = arith.divf %87, %90 : vector<32x32xf32>
    %92 = arith.truncf %91 : vector<32x32xf32> to vector<32x32xbf16>
    %93 = vector.broadcast %76 : vector<1x32xf32> to vector<32x32xf32>
    %94 = arith.mulf %29, %93 : vector<32x32xf32>
    %95 = arith.truncf %94 : vector<32x32xf32> to vector<32x32xbf16>
    %cst_25 = arith.constant dense<0.000000e+00> : vector<32x32xf32>
    %96 = tpu.matmul %92, %95, %cst_25 {dimension_numbers = #tpu.dot_dimension_numbers<[1], [0], [0], [1], [0, 0, 1, 1], [], []>} : vector<32x32xbf16>, vector<32x32xbf16>, vector<32x32xf32> -> vector<32x32xf32>
    %97 = arith.addf %75, %96 : vector<32x32xf32>
    %98 = vector.extract_strided_slice %0 {offsets = [3, 96], sizes = [1, 32], strides = [1, 1]} : vector<8x128xf32> to vector<1x32xf32>
    %99 = vector.broadcast %98 : vector<1x32xf32> to vector<32x32xf32>
    %100 = arith.mulf %27, %99 : vector<32x32xf32>
    %101 = arith.truncf %100 : vector<32x32xf32> to vector<32x32xbf16>
    %cst_26 = arith.constant dense<0.000000e+00> : vector<32x32xf32>
    %102 = tpu.matmul %101, %30, %cst_26 {dimension_numbers = #tpu.dot_dimension_numbers<[1], [1], [0], [0], [0, 0, 1, 0], [], []>} : vector<32x32xbf16>, vector<32x32xbf16>, vector<32x32xf32> -> vector<32x32xf32>
    %103 = vector.broadcast %7 : vector<1x32xf32> to vector<32x32xf32>
    %104 = arith.addf %102, %103 : vector<32x32xf32>
    %cst_27 = arith.constant dense<0xFF800000> : vector<32xf32>
    %105 = vector.multi_reduction <maximumf>, %104, %cst_27 [1] : vector<32x32xf32> to vector<32xf32>
    %106 = vector.shape_cast %105 : vector<32xf32> to vector<32x1xf32>
    %107 = vector.broadcast %106 : vector<32x1xf32> to vector<32x32xf32>
    %108 = arith.subf %104, %107 : vector<32x32xf32>
    %109 = math.exp %108 : vector<32x32xf32>
    %cst_28 = arith.constant dense<0.000000e+00> : vector<32xf32>
    %110 = vector.multi_reduction <add>, %109, %cst_28 [1] : vector<32x32xf32> to vector<32xf32>
    %111 = vector.shape_cast %110 : vector<32xf32> to vector<32x1xf32>
    %112 = vector.broadcast %111 : vector<32x1xf32> to vector<32x32xf32>
    %113 = arith.divf %109, %112 : vector<32x32xf32>
    %114 = arith.truncf %113 : vector<32x32xf32> to vector<32x32xbf16>
    %115 = vector.broadcast %98 : vector<1x32xf32> to vector<32x32xf32>
    %116 = arith.mulf %29, %115 : vector<32x32xf32>
    %117 = arith.truncf %116 : vector<32x32xf32> to vector<32x32xbf16>
    %cst_29 = arith.constant dense<0.000000e+00> : vector<32x32xf32>
    %118 = tpu.matmul %114, %117, %cst_29 {dimension_numbers = #tpu.dot_dimension_numbers<[1], [0], [0], [1], [0, 0, 1, 1], [], []>} : vector<32x32xbf16>, vector<32x32xbf16>, vector<32x32xf32> -> vector<32x32xf32>
    %119 = arith.addf %97, %118 : vector<32x32xf32>
    %120 = vector.extract_strided_slice %0 {offsets = [4, 96], sizes = [1, 32], strides = [1, 1]} : vector<8x128xf32> to vector<1x32xf32>
    %121 = vector.broadcast %120 : vector<1x32xf32> to vector<32x32xf32>
    %122 = arith.mulf %27, %121 : vector<32x32xf32>
    %123 = arith.truncf %122 : vector<32x32xf32> to vector<32x32xbf16>
    %cst_30 = arith.constant dense<0.000000e+00> : vector<32x32xf32>
    %124 = tpu.matmul %123, %30, %cst_30 {dimension_numbers = #tpu.dot_dimension_numbers<[1], [1], [0], [0], [0, 0, 1, 0], [], []>} : vector<32x32xbf16>, vector<32x32xbf16>, vector<32x32xf32> -> vector<32x32xf32>
    %125 = vector.broadcast %7 : vector<1x32xf32> to vector<32x32xf32>
    %126 = arith.addf %124, %125 : vector<32x32xf32>
    %cst_31 = arith.constant dense<0xFF800000> : vector<32xf32>
    %127 = vector.multi_reduction <maximumf>, %126, %cst_31 [1] : vector<32x32xf32> to vector<32xf32>
    %128 = vector.shape_cast %127 : vector<32xf32> to vector<32x1xf32>
    %129 = vector.broadcast %128 : vector<32x1xf32> to vector<32x32xf32>
    %130 = arith.subf %126, %129 : vector<32x32xf32>
    %131 = math.exp %130 : vector<32x32xf32>
    %cst_32 = arith.constant dense<0.000000e+00> : vector<32xf32>
    %132 = vector.multi_reduction <add>, %131, %cst_32 [1] : vector<32x32xf32> to vector<32xf32>
    %133 = vector.shape_cast %132 : vector<32xf32> to vector<32x1xf32>
    %134 = vector.broadcast %133 : vector<32x1xf32> to vector<32x32xf32>
    %135 = arith.divf %131, %134 : vector<32x32xf32>
    %136 = arith.truncf %135 : vector<32x32xf32> to vector<32x32xbf16>
    %137 = vector.broadcast %120 : vector<1x32xf32> to vector<32x32xf32>
    %138 = arith.mulf %29, %137 : vector<32x32xf32>
    %139 = arith.truncf %138 : vector<32x32xf32> to vector<32x32xbf16>
    %cst_33 = arith.constant dense<0.000000e+00> : vector<32x32xf32>
    %140 = tpu.matmul %136, %139, %cst_33 {dimension_numbers = #tpu.dot_dimension_numbers<[1], [0], [0], [1], [0, 0, 1, 1], [], []>} : vector<32x32xbf16>, vector<32x32xbf16>, vector<32x32xf32> -> vector<32x32xf32>
    %141 = arith.addf %119, %140 : vector<32x32xf32>
    %142 = vector.extract_strided_slice %0 {offsets = [5, 96], sizes = [1, 32], strides = [1, 1]} : vector<8x128xf32> to vector<1x32xf32>
    %143 = vector.broadcast %142 : vector<1x32xf32> to vector<32x32xf32>
    %144 = arith.mulf %27, %143 : vector<32x32xf32>
    %145 = arith.truncf %144 : vector<32x32xf32> to vector<32x32xbf16>
    %cst_34 = arith.constant dense<0.000000e+00> : vector<32x32xf32>
    %146 = tpu.matmul %145, %30, %cst_34 {dimension_numbers = #tpu.dot_dimension_numbers<[1], [1], [0], [0], [0, 0, 1, 0], [], []>} : vector<32x32xbf16>, vector<32x32xbf16>, vector<32x32xf32> -> vector<32x32xf32>
    %147 = vector.broadcast %7 : vector<1x32xf32> to vector<32x32xf32>
    %148 = arith.addf %146, %147 : vector<32x32xf32>
    %cst_35 = arith.constant dense<0xFF800000> : vector<32xf32>
    %149 = vector.multi_reduction <maximumf>, %148, %cst_35 [1] : vector<32x32xf32> to vector<32xf32>
    %150 = vector.shape_cast %149 : vector<32xf32> to vector<32x1xf32>
    %151 = vector.broadcast %150 : vector<32x1xf32> to vector<32x32xf32>
    %152 = arith.subf %148, %151 : vector<32x32xf32>
    %153 = math.exp %152 : vector<32x32xf32>
    %cst_36 = arith.constant dense<0.000000e+00> : vector<32xf32>
    %154 = vector.multi_reduction <add>, %153, %cst_36 [1] : vector<32x32xf32> to vector<32xf32>
    %155 = vector.shape_cast %154 : vector<32xf32> to vector<32x1xf32>
    %156 = vector.broadcast %155 : vector<32x1xf32> to vector<32x32xf32>
    %157 = arith.divf %153, %156 : vector<32x32xf32>
    %158 = arith.truncf %157 : vector<32x32xf32> to vector<32x32xbf16>
    %159 = vector.broadcast %142 : vector<1x32xf32> to vector<32x32xf32>
    %160 = arith.mulf %29, %159 : vector<32x32xf32>
    %161 = arith.truncf %160 : vector<32x32xf32> to vector<32x32xbf16>
    %cst_37 = arith.constant dense<0.000000e+00> : vector<32x32xf32>
    %162 = tpu.matmul %158, %161, %cst_37 {dimension_numbers = #tpu.dot_dimension_numbers<[1], [0], [0], [1], [0, 0, 1, 1], [], []>} : vector<32x32xbf16>, vector<32x32xbf16>, vector<32x32xf32> -> vector<32x32xf32>
    %163 = arith.addf %141, %162 : vector<32x32xf32>
    %164 = vector.extract_strided_slice %0 {offsets = [6, 96], sizes = [1, 32], strides = [1, 1]} : vector<8x128xf32> to vector<1x32xf32>
    %165 = vector.broadcast %164 : vector<1x32xf32> to vector<32x32xf32>
    %166 = arith.mulf %27, %165 : vector<32x32xf32>
    %167 = arith.truncf %166 : vector<32x32xf32> to vector<32x32xbf16>
    %cst_38 = arith.constant dense<0.000000e+00> : vector<32x32xf32>
    %168 = tpu.matmul %167, %30, %cst_38 {dimension_numbers = #tpu.dot_dimension_numbers<[1], [1], [0], [0], [0, 0, 1, 0], [], []>} : vector<32x32xbf16>, vector<32x32xbf16>, vector<32x32xf32> -> vector<32x32xf32>
    %169 = vector.broadcast %7 : vector<1x32xf32> to vector<32x32xf32>
    %170 = arith.addf %168, %169 : vector<32x32xf32>
    %cst_39 = arith.constant dense<0xFF800000> : vector<32xf32>
    %171 = vector.multi_reduction <maximumf>, %170, %cst_39 [1] : vector<32x32xf32> to vector<32xf32>
    %172 = vector.shape_cast %171 : vector<32xf32> to vector<32x1xf32>
    %173 = vector.broadcast %172 : vector<32x1xf32> to vector<32x32xf32>
    %174 = arith.subf %170, %173 : vector<32x32xf32>
    %175 = math.exp %174 : vector<32x32xf32>
    %cst_40 = arith.constant dense<0.000000e+00> : vector<32xf32>
    %176 = vector.multi_reduction <add>, %175, %cst_40 [1] : vector<32x32xf32> to vector<32xf32>
    %177 = vector.shape_cast %176 : vector<32xf32> to vector<32x1xf32>
    %178 = vector.broadcast %177 : vector<32x1xf32> to vector<32x32xf32>
    %179 = arith.divf %175, %178 : vector<32x32xf32>
    %180 = arith.truncf %179 : vector<32x32xf32> to vector<32x32xbf16>
    %181 = vector.broadcast %164 : vector<1x32xf32> to vector<32x32xf32>
    %182 = arith.mulf %29, %181 : vector<32x32xf32>
    %183 = arith.truncf %182 : vector<32x32xf32> to vector<32x32xbf16>
    %cst_41 = arith.constant dense<0.000000e+00> : vector<32x32xf32>
    %184 = tpu.matmul %180, %183, %cst_41 {dimension_numbers = #tpu.dot_dimension_numbers<[1], [0], [0], [1], [0, 0, 1, 1], [], []>} : vector<32x32xbf16>, vector<32x32xbf16>, vector<32x32xf32> -> vector<32x32xf32>
    %185 = arith.addf %163, %184 : vector<32x32xf32>
    %186 = vector.extract_strided_slice %0 {offsets = [7, 96], sizes = [1, 32], strides = [1, 1]} : vector<8x128xf32> to vector<1x32xf32>
    %187 = vector.broadcast %186 : vector<1x32xf32> to vector<32x32xf32>
    %188 = arith.mulf %27, %187 : vector<32x32xf32>
    %189 = arith.truncf %188 : vector<32x32xf32> to vector<32x32xbf16>
    %cst_42 = arith.constant dense<0.000000e+00> : vector<32x32xf32>
    %190 = tpu.matmul %189, %30, %cst_42 {dimension_numbers = #tpu.dot_dimension_numbers<[1], [1], [0], [0], [0, 0, 1, 0], [], []>} : vector<32x32xbf16>, vector<32x32xbf16>, vector<32x32xf32> -> vector<32x32xf32>
    %191 = vector.broadcast %7 : vector<1x32xf32> to vector<32x32xf32>
    %192 = arith.addf %190, %191 : vector<32x32xf32>
    %cst_43 = arith.constant dense<0xFF800000> : vector<32xf32>
    %193 = vector.multi_reduction <maximumf>, %192, %cst_43 [1] : vector<32x32xf32> to vector<32xf32>
    %194 = vector.shape_cast %193 : vector<32xf32> to vector<32x1xf32>
    %195 = vector.broadcast %194 : vector<32x1xf32> to vector<32x32xf32>
    %196 = arith.subf %192, %195 : vector<32x32xf32>
    %197 = math.exp %196 : vector<32x32xf32>
    %cst_44 = arith.constant dense<0.000000e+00> : vector<32xf32>
    %198 = vector.multi_reduction <add>, %197, %cst_44 [1] : vector<32x32xf32> to vector<32xf32>
    %199 = vector.shape_cast %198 : vector<32xf32> to vector<32x1xf32>
    %200 = vector.broadcast %199 : vector<32x1xf32> to vector<32x32xf32>
    %201 = arith.divf %197, %200 : vector<32x32xf32>
    %202 = arith.truncf %201 : vector<32x32xf32> to vector<32x32xbf16>
    %203 = vector.broadcast %186 : vector<1x32xf32> to vector<32x32xf32>
    %204 = arith.mulf %29, %203 : vector<32x32xf32>
    %205 = arith.truncf %204 : vector<32x32xf32> to vector<32x32xbf16>
    %cst_45 = arith.constant dense<0.000000e+00> : vector<32x32xf32>
    %206 = tpu.matmul %202, %205, %cst_45 {dimension_numbers = #tpu.dot_dimension_numbers<[1], [0], [0], [1], [0, 0, 1, 1], [], []>} : vector<32x32xbf16>, vector<32x32xbf16>, vector<32x32xf32> -> vector<32x32xf32>
    %207 = arith.addf %185, %206 : vector<32x32xf32>
    %208 = arith.truncf %207 : vector<32x32xf32> to vector<32x32xbf16>
    %c288 = arith.constant 288 : index
    %c0_46 = arith.constant 0 : index
    %209 = vector.load %arg4[%c288, %c0_46] : memref<352x32xbf16, #tpu.memory_space<vmem>>, vector<32x32xbf16>
    %cst_47 = arith.constant dense<0.000000e+00> : vector<32x32xf32>
    %210 = tpu.matmul %208, %209, %cst_47 {dimension_numbers = #tpu.dot_dimension_numbers<[1], [0], [0], [1], [0, 0, 1, 1], [], []>} : vector<32x32xbf16>, vector<32x32xbf16>, vector<32x32xf32> -> vector<32x32xf32>
    %211 = arith.addf %21, %210 : vector<32x32xf32>
    %212 = vector.broadcast %3 : vector<1x32xf32> to vector<32x32xf32>
    %213 = arith.addf %211, %212 : vector<32x32xf32>
    %cst_48 = arith.constant dense<0.000000e+00> : vector<32xf32>
    %214 = vector.multi_reduction <add>, %213, %cst_48 [1] : vector<32x32xf32> to vector<32xf32>
    %215 = vector.shape_cast %214 : vector<32xf32> to vector<32x1xf32>
    %cst_49 = arith.constant 3.200000e+01 : f32
    %216 = vector.broadcast %cst_49 : f32 to vector<32x1xf32>
    %217 = arith.divf %215, %216 : vector<32x1xf32>
    %218 = vector.broadcast %217 : vector<32x1xf32> to vector<32x32xf32>
    %219 = arith.subf %213, %218 : vector<32x32xf32>
    %220 = arith.mulf %219, %219 : vector<32x32xf32>
    %cst_50 = arith.constant dense<0.000000e+00> : vector<32xf32>
    %221 = vector.multi_reduction <add>, %220, %cst_50 [1] : vector<32x32xf32> to vector<32xf32>
    %222 = vector.shape_cast %221 : vector<32xf32> to vector<32x1xf32>
    %cst_51 = arith.constant 3.200000e+01 : f32
    %223 = vector.broadcast %cst_51 : f32 to vector<32x1xf32>
    %224 = arith.divf %222, %223 : vector<32x1xf32>
    %225 = vector.broadcast %217 : vector<32x1xf32> to vector<32x32xf32>
    %226 = arith.subf %213, %225 : vector<32x32xf32>
    %cst_52 = arith.constant 9.99999974E-6 : f32
    %227 = vector.broadcast %cst_52 : f32 to vector<32x1xf32>
    %228 = arith.addf %224, %227 : vector<32x1xf32>
    %229 = math.rsqrt %228 : vector<32x1xf32>
    %230 = vector.broadcast %229 : vector<32x1xf32> to vector<32x32xf32>
    %231 = arith.mulf %226, %230 : vector<32x32xf32>
    %232 = vector.broadcast %4 : vector<1x32xf32> to vector<32x32xf32>
    %233 = arith.mulf %231, %232 : vector<32x32xf32>
    %234 = vector.broadcast %5 : vector<1x32xf32> to vector<32x32xf32>
    %235 = arith.addf %233, %234 : vector<32x32xf32>
    %cst_53 = arith.constant dense<0.000000e+00> : vector<32xf32>
    %236 = vector.multi_reduction <add>, %235, %cst_53 [1] : vector<32x32xf32> to vector<32xf32>
    %237 = vector.shape_cast %236 : vector<32xf32> to vector<32x1xf32>
    %cst_54 = arith.constant 3.200000e+01 : f32
    %238 = vector.broadcast %cst_54 : f32 to vector<32x1xf32>
    %239 = arith.divf %237, %238 : vector<32x1xf32>
    %240 = tpu.iota {dimensions = array<i32: 0>} : vector<32x1xi32>
    %c0_i32 = arith.constant 0 : i32
    %241 = vector.broadcast %c0_i32 : i32 to vector<32x1xi32>
    %242 = arith.cmpi sge, %240, %241 : vector<32x1xi32>
    %c9_i32 = arith.constant 9 : i32
    %243 = vector.broadcast %c9_i32 : i32 to vector<32x1xi32>
    %244 = arith.cmpi slt, %240, %243 : vector<32x1xi32>
    %245 = arith.andi %242, %244 : vector<32x1xi1>
    %cst_55 = arith.constant -1.000000e+09 : f32
    %246 = vector.broadcast %cst_55 : f32 to vector<32x1xf32>
    %247 = arith.select %245, %239, %246 : vector<32x1xi1>, vector<32x1xf32>
    %cst_56 = arith.constant dense<0xFF800000> : vector<1xf32>
    %248 = vector.multi_reduction <maximumf>, %247, %cst_56 [0] : vector<32x1xf32> to vector<1xf32>
    %249 = vector.shape_cast %248 : vector<1xf32> to vector<1x1xf32>
    %250 = vector.broadcast %249 : vector<1x1xf32> to vector<32x1xf32>
    %251 = arith.subf %247, %250 : vector<32x1xf32>
    %252 = math.exp %251 : vector<32x1xf32>
    %cst_57 = arith.constant dense<0.000000e+00> : vector<1xf32>
    %253 = vector.multi_reduction <add>, %252, %cst_57 [0] : vector<32x1xf32> to vector<1xf32>
    %254 = vector.shape_cast %253 : vector<1xf32> to vector<1x1xf32>
    %255 = vector.broadcast %254 : vector<1x1xf32> to vector<32x1xf32>
    %256 = arith.divf %252, %255 : vector<32x1xf32>
    %257 = vector.broadcast %256 : vector<32x1xf32> to vector<32x32xf32>
    %258 = arith.mulf %235, %257 : vector<32x32xf32>
    %cst_58 = arith.constant dense<0.000000e+00> : vector<32xf32>
    %259 = vector.multi_reduction <add>, %258, %cst_58 [0] : vector<32x32xf32> to vector<32xf32>
    %260 = vector.shape_cast %259 : vector<32xf32> to vector<1x32xf32>
    %261 = arith.truncf %260 : vector<1x32xf32> to vector<1x32xbf16>
    %c320 = arith.constant 320 : index
    %c0_59 = arith.constant 0 : index
    %262 = vector.load %arg4[%c320, %c0_59] : memref<352x32xbf16, #tpu.memory_space<vmem>>, vector<32x32xbf16>
    %cst_60 = arith.constant dense<0.000000e+00> : vector<1x32xf32>
    %263 = tpu.matmul %261, %262, %cst_60 {dimension_numbers = #tpu.dot_dimension_numbers<[1], [0], [0], [1], [0, 0, 1, 1], [], []>} : vector<1x32xbf16>, vector<32x32xbf16>, vector<1x32xf32> -> vector<1x32xf32>
    %264 = arith.addf %263, %6 : vector<1x32xf32>
    %265 = tpu.concatenate %264, %264, %264, %264 in 1 : vector<1x32xf32>, vector<1x32xf32>, vector<1x32xf32>, vector<1x32xf32> -> vector<1x128xf32>
    %c0_61 = arith.constant 0 : index
    %c0_62 = arith.constant 0 : index
    %c0_63 = arith.constant 0 : index
    %266 = vector.load %arg0[%c0_61, %c0_62, %c0_63] : memref<2x64x128xf32, #tpu.memory_space<vmem>>, vector<1x64x128xf32>
    %267 = vector.shape_cast %266 : vector<1x64x128xf32> to vector<64x128xf32>
    %268 = vector.broadcast %265 : vector<1x128xf32> to vector<64x128xf32>
    %269 = arith.addf %267, %268 : vector<64x128xf32>
    %c0_64 = arith.constant 0 : index
    %c0_65 = arith.constant 0 : index
    %c0_66 = arith.constant 0 : index
    %270 = vector.load %arg6[%c0_64, %c0_65, %c0_66] : memref<2x64x128xf32, #tpu.memory_space<vmem>>, vector<1x64x128xf32>
    %271 = vector.shape_cast %270 : vector<1x64x128xf32> to vector<64x128xf32>
    %272 = vector.shape_cast %269 : vector<64x128xf32> to vector<1x64x128xf32>
    tpu.vector_store %arg6[%c0_64, %c0_65, %c0_66], %272 {strides = array<i32>} : memref<2x64x128xf32, #tpu.memory_space<vmem>>, vector<1x64x128xf32>,
    %c9_i32_67 = arith.constant 9 : i32
    %273 = vector.broadcast %c9_i32_67 : i32 to vector<32x1xi32>
    %274 = arith.cmpi sge, %240, %273 : vector<32x1xi32>
    %c18_i32 = arith.constant 18 : i32
    %275 = vector.broadcast %c18_i32 : i32 to vector<32x1xi32>
    %276 = arith.cmpi slt, %240, %275 : vector<32x1xi32>
    %277 = arith.andi %274, %276 : vector<32x1xi1>
    %cst_68 = arith.constant -1.000000e+09 : f32
    %278 = vector.broadcast %cst_68 : f32 to vector<32x1xf32>
    %279 = arith.select %277, %239, %278 : vector<32x1xi1>, vector<32x1xf32>
    %cst_69 = arith.constant dense<0xFF800000> : vector<1xf32>
    %280 = vector.multi_reduction <maximumf>, %279, %cst_69 [0] : vector<32x1xf32> to vector<1xf32>
    %281 = vector.shape_cast %280 : vector<1xf32> to vector<1x1xf32>
    %282 = vector.broadcast %281 : vector<1x1xf32> to vector<32x1xf32>
    %283 = arith.subf %279, %282 : vector<32x1xf32>
    %284 = math.exp %283 : vector<32x1xf32>
    %cst_70 = arith.constant dense<0.000000e+00> : vector<1xf32>
    %285 = vector.multi_reduction <add>, %284, %cst_70 [0] : vector<32x1xf32> to vector<1xf32>
    %286 = vector.shape_cast %285 : vector<1xf32> to vector<1x1xf32>
    %287 = vector.broadcast %286 : vector<1x1xf32> to vector<32x1xf32>
    %288 = arith.divf %284, %287 : vector<32x1xf32>
    %289 = vector.broadcast %288 : vector<32x1xf32> to vector<32x32xf32>
    %290 = arith.mulf %235, %289 : vector<32x32xf32>
    %cst_71 = arith.constant dense<0.000000e+00> : vector<32xf32>
    %291 = vector.multi_reduction <add>, %290, %cst_71 [0] : vector<32x32xf32> to vector<32xf32>
    %292 = vector.shape_cast %291 : vector<32xf32> to vector<1x32xf32>
    %293 = arith.truncf %292 : vector<1x32xf32> to vector<1x32xbf16>
    %c320_72 = arith.constant 320 : index
    %c0_73 = arith.constant 0 : index
    %294 = vector.load %arg4[%c320_72, %c0_73] : memref<352x32xbf16, #tpu.memory_space<vmem>>, vector<32x32xbf16>
    %cst_74 = arith.constant dense<0.000000e+00> : vector<1x32xf32>
    %295 = tpu.matmul %293, %294, %cst_74 {dimension_numbers = #tpu.dot_dimension_numbers<[1], [0], [0], [1], [0, 0, 1, 1], [], []>} : vector<1x32xbf16>, vector<32x32xbf16>, vector<1x32xf32> -> vector<1x32xf32>
    %296 = arith.addf %295, %6 : vector<1x32xf32>
    %297 = tpu.concatenate %296, %296, %296, %296 in 1 : vector<1x32xf32>, vector<1x32xf32>, vector<1x32xf32>, vector<1x32xf32> -> vector<1x128xf32>
    %c1 = arith.constant 1 : index
    %c0_75 = arith.constant 0 : index
    %c0_76 = arith.constant 0 : index
    %298 = vector.load %arg0[%c1, %c0_75, %c0_76] : memref<2x64x128xf32, #tpu.memory_space<vmem>>, vector<1x64x128xf32>
    %299 = vector.shape_cast %298 : vector<1x64x128xf32> to vector<64x128xf32>
    %300 = vector.broadcast %297 : vector<1x128xf32> to vector<64x128xf32>
    %301 = arith.addf %299, %300 : vector<64x128xf32>
    %c1_77 = arith.constant 1 : index
    %c0_78 = arith.constant 0 : index
    %c0_79 = arith.constant 0 : index
    %302 = vector.load %arg6[%c1_77, %c0_78, %c0_79] : memref<2x64x128xf32, #tpu.memory_space<vmem>>, vector<1x64x128xf32>
    %303 = vector.shape_cast %302 : vector<1x64x128xf32> to vector<64x128xf32>
    %304 = vector.shape_cast %301 : vector<64x128xf32> to vector<1x64x128xf32>
    tpu.vector_store %arg6[%c1_77, %c0_78, %c0_79], %304 {strides = array<i32>} : memref<2x64x128xf32, #tpu.memory_space<vmem>>, vector<1x64x128xf32>,
    return
  }
}

</mosaic_0001>

<bundles_post_ra>
// kernel: graph_enhanced_detect.1
= control target key start
LH: loop header
LB: loop body
LE: loop exit
PB: predicated region body
PF: predicated region fallthrough
CT: control target
= control target key end

     0   :  { %v5371_v0 = vmov 0   ;;  %vm781_vm0 = vcmask 261120   ;;  %s5372_s7 = smov 32   ;;  %s5374_s8 = smov 64   ;;  %vm5376_vm1 = vmmov 0   ;;  %vm3926_vm5 = vcmask 523264   ;;  %s7133_s4 = inlined_call_operand.vmem [shape: bf16[352,32], index: 4, kind: input, shape index: {}]   ;;  %s7134_s1 = inlined_call_operand.vmem [shape: bf16[512,288], index: 1, kind: input, shape index: {}]   ;;  %s7135_s5 = inlined_call_operand.vmem [shape: f32[8,128], index: 5, kind: input, shape index: {}]   ;;  %s7136_s2 = inlined_call_operand.vmem [shape: bf16[32,512], index: 2, kind: input, shape index: {}]   ;;  %s7137_s3 = inlined_call_operand.vmem [shape: bf16[32,96], index: 3, kind: input, shape index: {}]   ;;  %s7138_s0 = inlined_call_operand.vmem [shape: f32[2,64,128], index: 0, kind: input, shape index: {}, may-alias: {0,6}]   ;;  %s7139_s6 = inlined_call_operand.vmem [shape: f32[2,64,128], index: 6, kind: output, shape index: {}, may-alias: {0,6}]  }
   0x1   :  { %878 = vmatprep.subr.bf16.mxu0 %v5371_v0  ;;  %v4795_v1 = vld [vmem:[%s7133_s4] sm:$0xff]   ;;  %v4796_v2 = vld [vmem:[%s7133_s4 + $0x8] sm:$0xff]   ;;  %v4797_v3 = vld [vmem:[%s7133_s4 + $0x10] sm:$0xff]   ;;  %vm3928_vm6 = vcmask 785408  }
   0x2   :  { %879 = vmatpush1.bf16.msra.mxu0 %v4795_v1  ;;  %v4798_v4 = vld [vmem:[%s7133_s4 + $0x18] sm:$0xff]   ;;  %v4799_v5 = vld [vmem:[%s7133_s4 + $0x20] sm:$0xff]   ;;  %v4812_v7 = vld [vmem:[%s7133_s4 + $0x88] sm:$0xff]  }
   0x3   :  { %880 = vmatprep.subr.bf16.mxu0 %v5371_v0  ;;  %v4810_v6 = vld [vmem:[%s7133_s4 + $0x80] sm:$0xff]   ;;  %v4800_v8 = vld [vmem:[%s7133_s4 + $0x28] sm:$0xff]   ;;  %v4801_v12 = vld [vmem:[%s7133_s4 + $0x30] sm:$0xff]  }
   0x4   :  { %4517 = vmatprep.subr.bf16.mxu1 %v4810_v6  ;;  %v4815_v9 = vld [vmem:[%s7134_s1 + $0x4] ss:$12 sps:$4 sm:$0xff]   ;;  %v4816_v10 = vld [vmem:[%s7134_s1 + $0x8] ss:$12 sps:$4 sm:$0xff]   ;;  %v4817_v11 = vld [vmem:[%s7134_s1 + $0x20] ss:$12 sps:$4 sm:$0xff]  }
   0x5   :  { %4518 = vmatpush3.bf16.msra.mxu1 %v4810_v6  ;;  %910 = vmatprep.mubr.bf16.mxu0 %v4815_v9  ;;  %v4824_v13 = vld [vmem:[%s7134_s1 + $0x38] ss:$12 sps:$4 sm:$0xff]   ;;  %v4825_v16 = vld [vmem:[%s7134_s1 + $0x50] ss:$12 sps:$4 sm:$0xff]   ;;  %v4832_v17 = vld [vmem:[%s7134_s1 + $0x68] ss:$12 sps:$4 sm:$0xff]  }
   0x6   :  { %881 = vmatpush1.bf16.msra.mxu0 %v4796_v2  ;;  %4519 = vmatprep.subr.bf16.mxu1 %v4812_v7  ;;  %v4802_v14 = vld [vmem:[%s7133_s4 + $0x38] sm:$0xff]   ;;  %v4803_v15 = vld [vmem:[%s7133_s4 + $0x40] sm:$0xff]   ;;  %v4804_v18 = vld [vmem:[%s7133_s4 + $0x48] sm:$0xff]  }
   0x7   :  { %882 = vmatprep.subr.bf16.mxu0 %v5371_v0  ;;  %4521 = vmatprep.mubr.msk.bf16.mxu1 %vm781_vm0, %v4816_v10  ;;  %v4805_v19 = vld [vmem:[%s7133_s4 + $0x50] sm:$0xff]   ;;  %v4833_v20 = vld [vmem:[%s7134_s1 + $0x80] ss:$12 sps:$4 sm:$0xff]   ;;  %v4840_v21 = vld [vmem:[%s7134_s1 + $0x98] ss:$12 sps:$4 sm:$0xff]  }
   0x8   :  { %v4806_v22 = vld [vmem:[%s7133_s4 + $0x58] sm:$0xff]   ;;  %v4807_v23 = vld [vmem:[%s7133_s4 + $0x60] sm:$0xff]   ;;  %v4848_v25 = vld [vmem:[%s7134_s1 + $0xc8] ss:$12 sps:$4 sm:$0xff]  }
   0x9   :  { %4520 = vmatpush3.bf16.msra.mxu1 %v4812_v7  ;;  %v4841_v24 = vld [vmem:[%s7134_s1 + $0xb0] ss:$12 sps:$4 sm:$0xff]   ;;  %v4808_v26 = vld [vmem:[%s7133_s4 + $0x68] sm:$0xff]   ;;  %v4856_v29 = vld [vmem:[%s7134_s1 + $0xf8] ss:$12 sps:$4 sm:$0xff]  }
   0xa   :  { %883 = vmatpush1.bf16.msra.mxu0 %v4797_v3  ;;  %v4809_v27 = vld [vmem:[%s7133_s4 + $0x70] sm:$0xff]   ;;  %v4849_v28 = vld [vmem:[%s7134_s1 + $0xe0] ss:$12 sps:$4 sm:$0xff]   ;;  %v4811_v30 = vld [vmem:[%s7133_s4 + $0x78] sm:$0xff]  }
   0xb   :  { %884 = vmatprep.subr.bf16.mxu0 %v5371_v0  ;;  %v4813_v31 = vld [vmem:[%s7134_s1] ss:$12 sps:$4 sm:$0xff]   ;;  %v4857_v32 = vld [vmem:[%s7134_s1 + $0x110] ss:$12 sps:$4 sm:$0xff]   ;;  %v4864_v34 = vld [vmem:[%s7134_s1 + $0x128] ss:$12 sps:$4 sm:$0xff]  }
   0xc   :  { %4522 = vmatmul.mubr.msk.bf16.vlgmr.msra.gmra.mrb[0].mxu1 %vm781_vm0, %v4817_v11  ;;  %v4818_v33 = vld [vmem:[%s7134_s1 + $0x1c] ss:$12 sps:$4 sm:$0xff]   ;;  %v4820_v35 = vld [vmem:[%s7134_s1 + $0x18] ss:$12 sps:$4 sm:$0xff]   ;;  %v4865_v36 = vld [vmem:[%s7134_s1 + $0x140] ss:$12 sps:$4 sm:$0xff]  }
   0xd   :  { %4525 = vmatprep.mubr.msk.bf16.mxu1 %vm781_vm0, %v4824_v13  ;;  %v4821_v37 = vld [vmem:[%s7134_s1 + $0x34] ss:$12 sps:$4 sm:$0xff]   ;;  %v4872_v38 = vld [vmem:[%s7134_s1 + $0x158] ss:$12 sps:$4 sm:$0xff]   ;;  %v4823_v39 = vld [vmem:[%s7134_s1 + $0x30] ss:$12 sps:$4 sm:$0xff]  }
   0xe   :  { %885 = vmatpush1.bf16.msra.mxu0 %v4798_v4  ;;  %v4873_v40 = vld [vmem:[%s7134_s1 + $0x170] ss:$12 sps:$4 sm:$0xff]   ;;  %v4826_v41 = vld [vmem:[%s7134_s1 + $0x4c] ss:$12 sps:$4 sm:$0xff]   ;;  %v4880_v42 = vld [vmem:[%s7134_s1 + $0x188] ss:$12 sps:$4 sm:$0xff]  }
   0xf   :  { %886 = vmatprep.subr.bf16.mxu0 %v5371_v0  ;;  %v4828_v43 = vld [vmem:[%s7134_s1 + $0x48] ss:$12 sps:$4 sm:$0xff]   ;;  %v4881_v44 = vld [vmem:[%s7134_s1 + $0x1a0] ss:$12 sps:$4 sm:$0xff]   ;;  %v4829_v45 = vld [vmem:[%s7134_s1 + $0x64] ss:$12 sps:$4 sm:$0xff]  }
  0x10   :  { %v4888_v46 = vld [vmem:[%s7134_s1 + $0x1b8] ss:$12 sps:$4 sm:$0xff]   ;;  %v4831_v47 = vld [vmem:[%s7134_s1 + $0x60] ss:$12 sps:$4 sm:$0xff]   ;;  %v4889_v48 = vld [vmem:[%s7134_s1 + $0x1d0] ss:$12 sps:$4 sm:$0xff]  }
  0x11   :  { %v4834_v49 = vld [vmem:[%s7134_s1 + $0x7c] ss:$12 sps:$4 sm:$0xff]   ;;  %v4836_v51 = vld [vmem:[%s7134_s1 + $0x78] ss:$12 sps:$4 sm:$0xff]   ;;  %v4897_v52 = vld [vmem:[%s7134_s1 + $0x200] ss:$12 sps:$4 sm:$0xff]  }
  0x12   :  { %887 = vmatpush1.bf16.msra.mxu0 %v4799_v5  ;;  %v4896_v50 = vld [vmem:[%s7134_s1 + $0x1e8] ss:$12 sps:$4 sm:$0xff]   ;;  %v4839_v54 = vld [vmem:[%s7134_s1 + $0x90] ss:$12 sps:$4 sm:$0xff]   ;;  %v4842_v55 = vld [vmem:[%s7134_s1 + $0xac] ss:$12 sps:$4 sm:$0xff]  }
  0x13   :  { %888 = vmatprep.subr.bf16.mxu0 %v5371_v0  ;;  %v4837_v53 = vld [vmem:[%s7134_s1 + $0x94] ss:$12 sps:$4 sm:$0xff]   ;;  %v4904_v56 = vld [vmem:[%s7134_s1 + $0x218] ss:$12 sps:$4 sm:$0xff]   ;;  %v4905_v57 = vld [vmem:[%s7134_s1 + $0x230] ss:$12 sps:$4 sm:$0xff]  }
  0x14   :  { %4526 = vmatmul.mubr.msk.bf16.gmra.mrb[4].mxu1 %vm781_vm0, %v4825_v16  ;;  %v4844_v58 = vld [vmem:[%s7134_s1 + $0xa8] ss:$12 sps:$4 sm:$0xff]   ;;  %v4845_v59 = vld [vmem:[%s7134_s1 + $0xc4] ss:$12 sps:$4 sm:$0xff]   ;;  %v4847_v60 = vld [vmem:[%s7134_s1 + $0xc0] ss:$12 sps:$4 sm:$0xff]  }
  0x15   :  { %4529 = vmatprep.mubr.msk.bf16.mxu1 %vm781_vm0, %v4832_v17  ;;  %v4850_v61 = vld [vmem:[%s7134_s1 + $0xdc] ss:$12 sps:$4 sm:$0xff]   ;;  %v4913_v63 = vld [vmem:[%s7134_s1 + $0x260] ss:$12 sps:$4 sm:$0xff]   ;;  %v4920_v4 = vld [vmem:[%s7134_s1 + $0x278] ss:$12 sps:$4 sm:$0xff]  }
  0x16   :  { %889 = vmatpush1.bf16.msra.mxu0 %v4800_v8  ;;  %v4912_v62 = vld [vmem:[%s7134_s1 + $0x248] ss:$12 sps:$4 sm:$0xff]   ;;  %v4855_v2 = vld [vmem:[%s7134_s1 + $0xf0] ss:$12 sps:$4 sm:$0xff]   ;;  %v4858_v3 = vld [vmem:[%s7134_s1 + $0x10c] ss:$12 sps:$4 sm:$0xff]  }
  0x17   :  { %890 = vmatprep.subr.bf16.mxu0 %v5371_v0  ;;  %v4853_v1 = vld [vmem:[%s7134_s1 + $0xf4] ss:$12 sps:$4 sm:$0xff]   ;;  %v4921_v5 = vld [vmem:[%s7134_s1 + $0x290] ss:$12 sps:$4 sm:$0xff]   ;;  %v4936_v16 = vld [vmem:[%s7134_s1 + $0x2d8] ss:$12 sps:$4 sm:$0xff]  }
  0x18   :  { %v4860_v6 = vld [vmem:[%s7134_s1 + $0x108] ss:$12 sps:$4 sm:$0xff]   ;;  %v4861_v7 = vld [vmem:[%s7134_s1 + $0x124] ss:$12 sps:$4 sm:$0xff]   ;;  %v4863_v8 = vld [vmem:[%s7134_s1 + $0x120] ss:$12 sps:$4 sm:$0xff]  }
  0x19   :  { %v4866_v9 = vld [vmem:[%s7134_s1 + $0x13c] ss:$12 sps:$4 sm:$0xff]   ;;  %v4929_v11 = vld [vmem:[%s7134_s1 + $0x2c0] ss:$12 sps:$4 sm:$0xff]  }
  0x1a   :  { %891 = vmatpush1.bf16.msra.mxu0 %v4801_v12  ;;  %v4928_v10 = vld [vmem:[%s7134_s1 + $0x2a8] ss:$12 sps:$4 sm:$0xff]   ;;  %v4868_v12 = vld [vmem:[%s7134_s1 + $0x138] ss:$12 sps:$4 sm:$0xff]   ;;  %v4937_v17 = vld [vmem:[%s7134_s1 + $0x2f0] ss:$12 sps:$4 sm:$0xff]  }
  0x1b   :  { %892 = vmatprep.subr.bf16.mxu0 %v5371_v0  ;;  %v4869_v13 = vld [vmem:[%s7134_s1 + $0x154] ss:$12 sps:$4 sm:$0xff]  }
  0x1c   :  { %4530 = vmatmul.mubr.msk.bf16.gmra.mrb[8].mxu1 %vm781_vm0, %v4833_v20  ;;  %v4879_v20 = vld [vmem:[%s7134_s1 + $0x180] ss:$12 sps:$4 sm:$0xff]  }
  0x1d   :  { %4533 = vmatprep.mubr.msk.bf16.mxu1 %vm781_vm0, %v4840_v21  ;;  %v4882_v21 = vld [vmem:[%s7134_s1 + $0x19c] ss:$12 sps:$4 sm:$0xff]  }
  0x1e   :  { %893 = vmatpush1.bf16.msra.mxu0 %v4802_v14  ;;  %v4871_v14 = vld [vmem:[%s7134_s1 + $0x150] ss:$12 sps:$4 sm:$0xff]  }
  0x1f   :  { %894 = vmatprep.subr.bf16.mxu0 %v5371_v0 }
  0x22   :  { %895 = vmatpush1.bf16.msra.mxu0 %v4803_v15  ;;  %v4874_v15 = vld [vmem:[%s7134_s1 + $0x16c] ss:$12 sps:$4 sm:$0xff]  }
  0x23   :  { %896 = vmatprep.subr.bf16.mxu0 %v5371_v0 }
  0x24   :  { %4534 = vmatmul.mubr.msk.bf16.gmra.mrb[12].mxu1 %vm781_vm0, %v4841_v24  ;;  %v4887_v24 = vld [vmem:[%s7134_s1 + $0x1b0] ss:$12 sps:$4 sm:$0xff]  }
  0x25   :  { %4537 = vmatprep.mubr.msk.bf16.mxu1 %vm781_vm0, %v4848_v25  ;;  %v4890_v25 = vld [vmem:[%s7134_s1 + $0x1cc] ss:$12 sps:$4 sm:$0xff]  }
  0x26   :  { %897 = vmatpush1.bf16.msra.mxu0 %v4804_v18  ;;  %v4876_v18 = vld [vmem:[%s7134_s1 + $0x168] ss:$12 sps:$4 sm:$0xff]  }
  0x27   :  { %898 = vmatprep.subr.bf16.mxu0 %v5371_v0 }
  0x2a   :  { %899 = vmatpush1.bf16.msra.mxu0 %v4805_v19  ;;  %v4877_v19 = vld [vmem:[%s7134_s1 + $0x184] ss:$12 sps:$4 sm:$0xff]  }
  0x2b   :  { %900 = vmatprep.subr.bf16.mxu0 %v5371_v0 }
  0x2c   :  { %4538 = vmatmul.mubr.msk.bf16.gmra.mrb[16].mxu1 %vm781_vm0, %v4849_v28  ;;  %v4895_v28 = vld [vmem:[%s7134_s1 + $0x1e0] ss:$12 sps:$4 sm:$0xff]  }
  0x2d   :  { %4541 = vmatprep.mubr.msk.bf16.mxu1 %vm781_vm0, %v4856_v29  ;;  %v4898_v29 = vld [vmem:[%s7134_s1 + $0x1fc] ss:$12 sps:$4 sm:$0xff]  }
  0x2e   :  { %901 = vmatpush1.bf16.msra.mxu0 %v4806_v22  ;;  %v4884_v22 = vld [vmem:[%s7134_s1 + $0x198] ss:$12 sps:$4 sm:$0xff]  }
  0x2f   :  { %902 = vmatprep.subr.bf16.mxu0 %v5371_v0 }
  0x32   :  { %903 = vmatpush1.bf16.msra.mxu0 %v4807_v23  ;;  %v4885_v23 = vld [vmem:[%s7134_s1 + $0x1b4] ss:$12 sps:$4 sm:$0xff]  }
  0x33   :  { %904 = vmatprep.subr.bf16.mxu0 %v5371_v0 }
  0x34   :  { %4542 = vmatmul.mubr.msk.bf16.gmra.mrb[20].mxu1 %vm781_vm0, %v4857_v32 }
  0x35   :  { %4545 = vmatprep.mubr.msk.bf16.mxu1 %vm781_vm0, %v4864_v34 }
  0x36   :  { %905 = vmatpush1.bf16.msra.mxu0 %v4808_v26  ;;  %v4892_v26 = vld [vmem:[%s7134_s1 + $0x1c8] ss:$12 sps:$4 sm:$0xff]  }
  0x37   :  { %906 = vmatprep.subr.bf16.mxu0 %v5371_v0 }
  0x3a   :  { %907 = vmatpush1.bf16.msra.mxu0 %v4809_v27  ;;  %v4893_v27 = vld [vmem:[%s7134_s1 + $0x1e4] ss:$12 sps:$4 sm:$0xff]  }
  0x3b   :  { %908 = vmatprep.subr.bf16.mxu0 %v5371_v0  ;;  %v4852_v0 = vld [vmem:[%s7134_s1 + $0xd8] ss:$12 sps:$4 sm:$0xff]  }
  0x3c   :  { %4546 = vmatmul.mubr.msk.bf16.gmra.mrb[24].mxu1 %vm781_vm0, %v4865_v36 }
  0x3d   :  { %4549 = vmatprep.mubr.msk.bf16.mxu1 %vm781_vm0, %v4872_v38 }
  0x3e   :  { %909 = vmatpush1.bf16.msra.mxu0 %v4811_v30  ;;  %v4900_v30 = vld [vmem:[%s7134_s1 + $0x1f8] ss:$12 sps:$4 sm:$0xff]  }
  0x41   :  { %911 = vmatmul.mubr.bf16.vlgmr.msra.gmra.mrb[0].mxu0 %v4813_v31  ;;  %v4901_v31 = vld [vmem:[%s7134_s1 + $0x214] ss:$12 sps:$4 sm:$0xff]  }
  0x42   :  { %918 = vmatprep.mubr.bf16.mxu0 %v4818_v33  ;;  %v4903_v33 = vld [vmem:[%s7134_s1 + $0x210] ss:$12 sps:$4 sm:$0xff]  }
  0x44   :  { %4550 = vmatmul.mubr.msk.bf16.gmra.mrb[28].mxu1 %vm781_vm0, %v4873_v40 }
  0x45   :  { %4553 = vmatprep.mubr.msk.bf16.mxu1 %vm781_vm0, %v4880_v42 }
  0x49   :  { %919 = vmatmul.mubr.bf16.gmra.mrb[4].mxu0 %v4820_v35  ;;  %v4906_v35 = vld [vmem:[%s7134_s1 + $0x22c] ss:$12 sps:$4 sm:$0xff]  }
  0x4a   :  { %926 = vmatprep.mubr.bf16.mxu0 %v4821_v37 }
  0x4c   :  { %4554 = vmatmul.mubr.msk.bf16.gmra.mrb[32].mxu1 %vm781_vm0, %v4881_v44 }
  0x4d   :  { %4557 = vmatprep.mubr.msk.bf16.mxu1 %vm781_vm0, %v4888_v46 }
  0x51   :  { %927 = vmatmul.mubr.bf16.gmra.mrb[8].mxu0 %v4823_v39  ;;  %v4908_v39 = vld [vmem:[%s7134_s1 + $0x228] ss:$12 sps:$4 sm:$0xff]  }
  0x52   :  { %934 = vmatprep.mubr.bf16.mxu0 %v4826_v41  ;;  %v4909_v41 = vld [vmem:[%s7134_s1 + $0x244] ss:$12 sps:$4 sm:$0xff]  }
  0x54   :  { %4558 = vmatmul.mubr.msk.bf16.gmra.mrb[36].mxu1 %vm781_vm0, %v4889_v48 }
  0x55   :  { %4561 = vmatprep.mubr.msk.bf16.mxu1 %vm781_vm0, %v4896_v50 }
  0x59   :  { %935 = vmatmul.mubr.bf16.gmra.mrb[12].mxu0 %v4828_v43 }
  0x5a   :  { %942 = vmatprep.mubr.bf16.mxu0 %v4829_v45  ;;  %v4911_v45 = vld [vmem:[%s7134_s1 + $0x240] ss:$12 sps:$4 sm:$0xff]  }
  0x5c   :  { %4562 = vmatmul.mubr.msk.bf16.gmra.mrb[40].mxu1 %vm781_vm0, %v4897_v52  ;;  %v189_v52 = vlaneseq }
  0x5d   :  { %4565 = vmatprep.mubr.msk.bf16.mxu1 %vm781_vm0, %v4904_v56 }
  0x61   :  { %943 = vmatmul.mubr.bf16.gmra.mrb[16].mxu0 %v4831_v47  ;;  %v4914_v47 = vld [vmem:[%s7134_s1 + $0x25c] ss:$12 sps:$4 sm:$0xff]  }
  0x62   :  { %950 = vmatprep.mubr.bf16.mxu0 %v4834_v49 }
  0x64   :  { %4566 = vmatmul.mubr.msk.bf16.gmra.mrb[44].mxu1 %vm781_vm0, %v4905_v57  ;;  %v5797_v57 = vshrl.u32 %v189_v52, 7 }
  0x65   :  { %4569 = vmatprep.mubr.msk.bf16.mxu1 %vm781_vm0, %v4912_v62  ;;  %v24_v62 = vld [vmem:[%s7135_s5] sm:$0xff] }
  0x66   :  { %7142 = vst [vmem:[#allocation2_spill] sm:$0xff] %v5797_v57 }
  0x69   :  { %951 = vmatmul.mubr.bf16.gmra.mrb[20].mxu0 %v4836_v51  ;;  %v4916_v51 = vld [vmem:[%s7134_s1 + $0x258] ss:$12 sps:$4 sm:$0xff]  }
  0x6a   :  { %958 = vmatprep.mubr.bf16.mxu0 %v4837_v53 }
  0x6c   :  { %4570 = vmatmul.mubr.msk.bf16.gmra.mrb[48].mxu1 %vm781_vm0, %v4913_v63  ;;  %v4922_v63 = vld [vmem:[%s7134_s1 + $0x28c] ss:$12 sps:$4 sm:$0xff]  }
  0x6d   :  { %4573 = vmatprep.mubr.msk.bf16.mxu1 %vm781_vm0, %v4920_v4 }
  0x71   :  { %959 = vmatmul.mubr.bf16.gmra.mrb[24].mxu0 %v4839_v54  ;;  %v4917_v54 = vld [vmem:[%s7134_s1 + $0x274] ss:$12 sps:$4 sm:$0xff]  }
  0x72   :  { %966 = vmatprep.mubr.bf16.mxu0 %v4842_v55 }
  0x74   :  { %4574 = vmatmul.mubr.msk.bf16.gmra.mrb[52].mxu1 %vm781_vm0, %v4921_v5 }
  0x75   :  { %4577 = vmatprep.mubr.msk.bf16.mxu1 %vm781_vm0, %v4928_v10  ;;  %v4925_v10 = vld [vmem:[%s7134_s1 + $0x2a4] ss:$12 sps:$4 sm:$0xff]  }
  0x79   :  { %967 = vmatmul.mubr.bf16.gmra.mrb[28].mxu0 %v4844_v58 }
  0x7a   :  { %974 = vmatprep.mubr.bf16.mxu0 %v4845_v59  ;;  %v4919_v59 = vld [vmem:[%s7134_s1 + $0x270] ss:$12 sps:$4 sm:$0xff]  }
  0x7c   :  { %4578 = vmatmul.mubr.msk.bf16.gmra.mrb[56].mxu1 %vm781_vm0, %v4929_v11 }
  0x7d   :  { %4581 = vmatprep.mubr.msk.bf16.mxu1 %vm781_vm0, %v4936_v16 }
  0x81   :  { %975 = vmatmul.mubr.bf16.gmra.mrb[32].mxu0 %v4847_v60  ;;  %v191_v60 = vsub.s32 1, %v5797_v57 }
  0x82   :  { %982 = vmatprep.mubr.bf16.mxu0 %v4850_v61 }
  0x84   :  { %4582 = vmatmul.mubr.msk.bf16.gmra.mrb[60].mxu1 %vm781_vm0, %v4937_v17 }
  0x89   :  { %983 = vmatmul.mubr.bf16.gmra.mrb[36].mxu0 %v4852_v0 }
  0x8a   :  { %990 = vmatprep.mubr.bf16.mxu0 %v4853_v1 }
  0x91   :  { %991 = vmatmul.mubr.bf16.gmra.mrb[40].mxu0 %v4855_v2  ;;  %v5817_v2 = vrot.slane %v24_v62, %v191_v60  ;;  %v4933_v60 = vld [vmem:[%s7134_s1 + $0x2d4] ss:$12 sps:$4 sm:$0xff]  }
  0x92   :  { %998 = vmatprep.mubr.bf16.mxu0 %v4858_v3 }
  0x99   :  { %999 = vmatmul.mubr.bf16.gmra.mrb[44].mxu0 %v4860_v6 }
  0x9a   :  { %1006 = vmatprep.mubr.bf16.mxu0 %v4861_v7  ;;  %v4924_v7 = vld [vmem:[%s7134_s1 + $0x288] ss:$12 sps:$4 sm:$0xff]  }
  0xa1   :  { %1007 = vmatmul.mubr.bf16.gmra.mrb[48].mxu0 %v4863_v8 }
  0xa2   :  { %1014 = vmatprep.mubr.bf16.mxu0 %v4866_v9 }
  0xa9   :  { %1015 = vmatmul.mubr.bf16.gmra.mrb[52].mxu0 %v4868_v12 }
  0xaa   :  { %1022 = vmatprep.mubr.bf16.mxu0 %v4869_v13 }
  0xb1   :  { %1023 = vmatmul.mubr.bf16.gmra.mrb[56].mxu0 %v4871_v14 }
  0xb2   :  { %1030 = vmatprep.mubr.bf16.mxu0 %v4874_v15 }
  0xb9   :  { %1031 = vmatmul.mubr.bf16.gmra.mrb[60].mxu0 %v4876_v18 }
  0xba   :  { %1038 = vmatprep.mubr.bf16.mxu0 %v4877_v19 }
  0xc1   :  { %1039 = vmatmul.mubr.bf16.gmra.mrb[64].mxu0 %v4879_v20 }
  0xc2   :  { %1046 = vmatprep.mubr.bf16.mxu0 %v4882_v21 }
  0xc9   :  { %1047 = vmatmul.mubr.bf16.gmra.mrb[68].mxu0 %v4884_v22 }
  0xca   :  { %1054 = vmatprep.mubr.bf16.mxu0 %v4885_v23 }
  0xd1   :  { %1055 = vmatmul.mubr.bf16.gmra.mrb[72].mxu0 %v4887_v24 }
  0xd2   :  { %1062 = vmatprep.mubr.bf16.mxu0 %v4890_v25  ;;  %v4927_v25 = vld [vmem:[%s7134_s1 + $0x2a0] ss:$12 sps:$4 sm:$0xff]  }
  0xd9   :  { %1063 = vmatmul.mubr.bf16.gmra.mrb[76].mxu0 %v4892_v26 }
  0xda   :  { %1070 = vmatprep.mubr.bf16.mxu0 %v4893_v27 }
  0xdf   :  { %v5745_v32 = vpop.f32.mrb[0].mxu1 }
  0xe0   :  { %v1201_v34 = vpop.f32.mrb[1].mxu1 }
  0xe1   :  { %1071 = vmatmul.mubr.bf16.gmra.mrb[80].mxu0 %v4895_v28  ;;  %v5753_v36 = vpop.f32.mrb[2].mxu1  ;;  %v4930_v28 = vld [vmem:[%s7134_s1 + $0x2bc] ss:$12 sps:$4 sm:$0xff]  }
  0xe2   :  { %1078 = vmatprep.mubr.bf16.mxu0 %v4898_v29  ;;  %v1204_v37 = vpop.f32.mrb[3].mxu1 }
  0xe7   :  { %v5755_v38 = vpop.f32.mrb[4].mxu1 }
  0xe8   :  { %v5760_v40 = vpop.f32.mrb[5].mxu1 }
  0xe9   :  { %1079 = vmatmul.mubr.bf16.gmra.mrb[84].mxu0 %v4900_v30  ;;  %v5765_v42 = vpop.f32.mrb[6].mxu1 }
  0xea   :  { %1086 = vmatprep.mubr.bf16.mxu0 %v4901_v31  ;;  %v5767_v43 = vpop.f32.mrb[7].mxu1 }
  0xef   :  { %v5769_v44 = vpop.f32.mrb[8].mxu1 }
  0xf0   :  { %v5774_v46 = vpop.f32.mrb[9].mxu1 }
  0xf1   :  { %1087 = vmatmul.mubr.bf16.gmra.mrb[88].mxu0 %v4903_v33  ;;  %v5779_v48 = vpop.f32.mrb[10].mxu1 }
  0xf2   :  { %1094 = vmatprep.mubr.bf16.mxu0 %v4906_v35  ;;  %v5781_v49 = vpop.f32.mrb[11].mxu1 }
  0xf7   :  { %v5783_v50 = vpop.f32.mrb[12].mxu1 }
  0xf8   :  { %v5788_v53 = vpop.f32.mrb[13].mxu1 }
  0xf9   :  { %1095 = vmatmul.mubr.bf16.gmra.mrb[92].mxu0 %v4908_v39  ;;  %v5793_v55 = vpop.f32.mrb[14].mxu1 }
  0xfa   :  { %1102 = vmatprep.mubr.bf16.mxu0 %v4909_v41  ;;  %v5795_v56 = vpop.f32.mrb[15].mxu1 }
  0xff   :  { %v5799_v58 = vpop.f32.mrb[16].mxu1 }
 0x100   :  { %v5805_v61 = vpop.f32.mrb[17].mxu1 }
 0x101   :  { %1103 = vmatmul.mubr.bf16.gmra.mrb[96].mxu0 %v4911_v45  ;;  %v5813_v0 = vpop.f32.mrb[18].mxu1 }
 0x102   :  { %1110 = vmatprep.mubr.bf16.mxu0 %v4914_v47  ;;  %v5815_v1 = vpop.f32.mrb[19].mxu1 }
 0x107   :  { %v5819_v4 = vpop.f32.mrb[20].mxu1 }
 0x108   :  { %v5825_v8 = vpop.f32.mrb[21].mxu1 }
 0x109   :  { %1111 = vmatmul.mubr.bf16.gmra.mrb[100].mxu0 %v4916_v51  ;;  %v5830_v11 = vpop.f32.mrb[22].mxu1 }
 0x10a   :  { %1118 = vmatprep.mubr.bf16.mxu0 %v4917_v54  ;;  %v5835_v15 = vpop.f32.mrb[23].mxu1  ;;  %v4932_v54 = vld [vmem:[%s7134_s1 + $0x2b8] ss:$12 sps:$4 sm:$0xff]  }
 0x10f   :  { %v5841_v21 = vpop.f32.mrb[24].mxu1 }
 0x110   :  { %v5847_v26 = vpop.f32.mrb[25].mxu1 }
 0x111   :  { %1119 = vmatmul.mubr.bf16.gmra.mrb[104].mxu0 %v4919_v59  ;;  %v5852_v29 = vpop.f32.mrb[26].mxu1 }
 0x112   :  { %1126 = vmatprep.mubr.bf16.mxu0 %v4922_v63 }
 0x114   :  { %v912_v3 = vpop.f32.mrb[0].mxu0 }
 0x115   :  { %v913_v5 = vadd.f32 %v912_v3, %v5817_v2  ;;  %v914_v6 = vpop.f32.mrb[1].mxu0 }
 0x116   :  { %v915_v9 = vpop.f32.mrb[2].mxu0 }
 0x117   :  { %v916_v12 = vadd.f32 %v915_v9, %v5817_v2  ;;  %v5833_v13 = vadd.f32 %v1201_v34, %v913_v5  ;;  %v917_v14 = vpop.f32.mrb[3].mxu0  ;;  %v5858_v34 = vpop.f32.mrb[27].mxu1 }
 0x118   :  { %v5865_v47 = vpop.f32.mrb[28].mxu1 }
 0x119   :  { %v1456_v16 = vsub.f32 0.0, %v5833_v13  ;;  %v5838_v17 = vadd.f32 %v1204_v37, %v916_v12  ;;  %1127 = vmatmul.mubr.bf16.gmra.mrb[108].mxu0 %v4924_v7  ;;  %v5871_v59 = vpop.f32.mrb[29].mxu1 }
 0x11a   :  { %1134 = vmatprep.mubr.bf16.mxu0 %v4925_v10  ;;  %v5876_v62 = vpop.f32.mrb[30].mxu1 }
 0x11b   :  { %v1520_v18 = vmul.f32 1.442695, %v1456_v16  ;;  %v1457_v19 = vsub.f32 0.0, %v5838_v17  ;;  %v5882_v7 = vpop.f32.mrb[31].mxu1 }
 0x11c   :  { %v920_v20 = vpop.f32.mrb[4].mxu0 }
 0x11d   :  { %4961 = vpow2.f32 %v1520_v18  ;;  %v1522_v22 = vmul.f32 1.442695, %v1457_v19  ;;  %v921_v23 = vadd.f32 %v920_v20, %v5817_v2  ;;  %v922_v24 = vpop.f32.mrb[5].mxu0 }
 0x11e   :  { %v923_v27 = vpop.f32.mrb[6].mxu0 }
 0x11f   :  { %4963 = vpow2.f32 %v1522_v22  ;;  %v5855_v30 = vadd.f32 %v5745_v32, %v921_v23  ;;  %v924_v31 = vadd.f32 %v923_v27, %v5817_v2  ;;  %v925_v33 = vpop.f32.mrb[7].mxu0  ;;  %v5889_v20 = vpop.f32.mrb[32].mxu1 }
 0x121   :  { %v1458_v35 = vsub.f32 0.0, %v5855_v30  ;;  %v5862_v37 = vadd.f32 %v5753_v36, %v924_v31  ;;  %1135 = vmatmul.mubr.bf16.gmra.mrb[112].mxu0 %v4927_v25  ;;  %v5895_v25 = vpop.f32.mrb[33].mxu1 }
 0x122   :  { %1142 = vmatprep.mubr.bf16.mxu0 %v4930_v28  ;;  %v4938_v28 = vld [vmem:[%s7134_s1 + $0x2ec] ss:$12 sps:$4 sm:$0xff]   ;;  %v5900_v31 = vpop.f32.mrb[34].mxu1 }
 0x123   :  { %v1524_v39 = vmul.f32 1.442695, %v1458_v35  ;;  %v1459_v41 = vsub.f32 0.0, %v5862_v37 }
 0x124   :  { %v928_v45 = vpop.f32.mrb[8].mxu0 }
 0x125   :  { %4965 = vpow2.f32 %v1524_v39  ;;  %v1526_v32 = vmul.f32 1.442695, %v1459_v41  ;;  %v929_v51 = vadd.f32 %v928_v45, %v5817_v2  ;;  %v930_v52 = vpop.f32.mrb[9].mxu0  ;;  %v5906_v45 = vpop.f32.mrb[35].mxu1 }
 0x126   :  { %v931_v36 = vpop.f32.mrb[10].mxu0 }
 0x127   :  { %v4962_v63 = vpop.eup %4961  ;;  %4967 = vpow2.f32 %v1526_v32  ;;  %v932_v3 = vadd.f32 %v931_v36, %v5817_v2  ;;  %v5880_v5 = vadd.f32 %v5760_v40, %v929_v51  ;;  %v933_v6 = vpop.f32.mrb[11].mxu0 }
 0x128   :  { %v1648_v9 = vadd.f32 1.0, %v4962_v63  ;;  %v5913_v6 = vpop.f32.mrb[36].mxu1 }
 0x129   :  { %v4964_v10 = vpop.eup %4963  ;;  %v1460_v12 = vsub.f32 0.0, %v5880_v5  ;;  %v5886_v14 = vadd.f32 %v5767_v43, %v932_v3  ;;  %1143 = vmatmul.mubr.bf16.gmra.mrb[116].mxu0 %v4932_v54  ;;  %v4935_v43 = vld [vmem:[%s7134_s1 + $0x2d0] ss:$12 sps:$4 sm:$0xff]  }
 0x12a   :  { %4969 = vrcp.f32 %v1648_v9  ;;  %v1649_v16 = vadd.f32 1.0, %v4964_v10  ;;  %1150 = vmatprep.mubr.bf16.mxu0 %v4933_v60 }
 0x12b   :  { %v1528_v18 = vmul.f32 1.442695, %v1460_v12  ;;  %v1461_v19 = vsub.f32 0.0, %v5886_v14 }
 0x12c   :  { %4971 = vrcp.f32 %v1649_v16  ;;  %v936_v40 = vpop.f32.mrb[12].mxu0  ;;  %v5919_v16 = vpop.f32.mrb[37].mxu1 }
 0x12d   :  { %4973 = vpow2.f32 %v1528_v18  ;;  %v1530_v22 = vmul.f32 1.442695, %v1461_v19  ;;  %v937_v23 = vadd.f32 %v936_v40, %v5817_v2  ;;  %v938_v24 = vpop.f32.mrb[13].mxu0 }
 0x12e   :  { %v939_v27 = vpop.f32.mrb[14].mxu0 }
 0x12f   :  { %v4966_v33 = vpop.eup %4965  ;;  %4975 = vpow2.f32 %v1530_v22  ;;  %v5903_v35 = vadd.f32 %v5755_v38, %v937_v23  ;;  %v940_v39 = vadd.f32 %v939_v27, %v5817_v2  ;;  %v941_v41 = vpop.f32.mrb[15].mxu0 }
 0x130   :  { %v1650_v32 = vadd.f32 1.0, %v4966_v33  ;;  %v5924_v22 = vpop.f32.mrb[38].mxu1 }
 0x131   :  { %v4968_v51 = vpop.eup %4967  ;;  %v1462_v52 = vsub.f32 0.0, %v5903_v35  ;;  %v5910_v54 = vadd.f32 %v5765_v42, %v940_v39  ;;  %1151 = vmatmul.mubr.bf16.gmra.mrb[120].mxu0 %v4935_v43  ;;  %v4940_v42 = vld [vmem:[%s7134_s1 + $0x2e8] ss:$12 sps:$4 sm:$0xff]   ;;  %v5933_v33 = vpop.f32.mrb[39].mxu1 }
 0x132   :  { %4977 = vrcp.f32 %v1650_v32  ;;  %v1651_v36 = vadd.f32 1.0, %v4968_v51  ;;  %1158 = vmatprep.mubr.bf16.mxu0 %v4938_v28 }
 0x133   :  { %v1532_v60 = vmul.f32 1.442695, %v1462_v52  ;;  %v1463_v38 = vsub.f32 0.0, %v5910_v54 }
 0x134   :  { %v4970_v63 = vpop.eup %4969  ;;  %4979 = vrcp.f32 %v1651_v36  ;;  %v944_v3 = vpop.f32.mrb[16].mxu0 }
 0x135   :  { %4981 = vpow2.f32 %v1532_v60  ;;  %v1534_v9 = vmul.f32 1.442695, %v1463_v38  ;;  %v945_v10 = vadd.f32 %v944_v3, %v5817_v2  ;;  %v946_v12 = vpop.f32.mrb[17].mxu0  ;;  %v5922_v19 = vmul.f32 %v4970_v63, %v5833_v13  ;;  %v5942_v38 = vpop.f32.mrb[40].mxu1 }
 0x136   :  { %v4972_v18 = vpop.eup %4971  ;;  %v947_v40 = vpop.f32.mrb[18].mxu0 }
 0x137   :  { %v4974_v23 = vpop.eup %4973  ;;  %v5927_v24 = vmul.f32 %v4972_v18, %v5838_v17  ;;  %4983 = vpow2.f32 %v1534_v9  ;;  %v948_v43 = vadd.f32 %v947_v40, %v5817_v2  ;;  %v5931_v27 = vadd.f32 %v5774_v46, %v945_v10  ;;  %v949_v28 = vpop.f32.mrb[19].mxu0 }
 0x138   :  { %v1652_v39 = vadd.f32 1.0, %v4974_v23  ;;  %v5945_v10 = vpop.f32.mrb[41].mxu1 }
 0x139   :  { %v4976_v41 = vpop.eup %4975  ;;  %v1464_v32 = vsub.f32 0.0, %v5931_v27  ;;  %v5939_v51 = vadd.f32 %v5781_v49, %v948_v43  ;;  %1159 = vmatmul.mubr.bf16.gmra.mrb[124].mxu0 %v4940_v42  ;;  %v5950_v18 = vpop.f32.mrb[42].mxu1 }
 0x13a   :  { %4985 = vrcp.f32 %v1652_v39  ;;  %v1653_v17 = vadd.f32 1.0, %v4976_v41  ;;  %v5959_v41 = vpop.f32.mrb[43].mxu1 }
 0x13b   :  { %v1536_v52 = vmul.f32 1.442695, %v1464_v32  ;;  %v1465_v46 = vsub.f32 0.0, %v5939_v51 }
 0x13c   :  { %v4978_v36 = vpop.eup %4977  ;;  %4987 = vrcp.f32 %v1653_v17  ;;  %v952_v60 = vpop.f32.mrb[20].mxu0 }
 0x13d   :  { %4989 = vpow2.f32 %v1536_v52  ;;  %v1538_v63 = vmul.f32 1.442695, %v1465_v46  ;;  %v953_v3 = vadd.f32 %v952_v60, %v5817_v2  ;;  %v954_v9 = vpop.f32.mrb[21].mxu0  ;;  %v5948_v12 = vmul.f32 %v4978_v36, %v5855_v30 }
 0x13e   :  { %v4980_v49 = vpop.eup %4979  ;;  %v955_v42 = vpop.f32.mrb[22].mxu0 }
 0x13f   :  { %v4982_v40 = vpop.eup %4981  ;;  %v5953_v23 = vmul.f32 %v4980_v49, %v5862_v37  ;;  %4991 = vpow2.f32 %v1538_v63  ;;  %v5956_v43 = vadd.f32 %v5769_v44, %v953_v3  ;;  %v956_v28 = vadd.f32 %v955_v42, %v5817_v2  ;;  %v957_v39 = vpop.f32.mrb[23].mxu0 }
 0x140   :  { %v1654_v32 = vadd.f32 1.0, %v4982_v40  ;;  %v5969_v42 = vpop.f32.mrb[44].mxu1 }
 0x141   :  { %v4984_v17 = vpop.eup %4983  ;;  %v1466_v52 = vsub.f32 0.0, %v5956_v43  ;;  %v5965_v46 = vadd.f32 %v5779_v48, %v956_v28  ;;  %v5974_v28 = vpop.f32.mrb[45].mxu1 }
 0x142   :  { %4993 = vrcp.f32 %v1654_v32  ;;  %v1655_v37 = vadd.f32 1.0, %v4984_v17 }
 0x143   :  { %v1540_v36 = vmul.f32 1.442695, %v1466_v52  ;;  %v1467_v44 = vsub.f32 0.0, %v5965_v46 }
 0x144   :  { %v4986_v60 = vpop.eup %4985  ;;  %4995 = vrcp.f32 %v1655_v37  ;;  %v960_v63 = vpop.f32.mrb[24].mxu0 }
 0x145   :  { %4997 = vpow2.f32 %v1540_v36  ;;  %v1542_v3 = vmul.f32 1.442695, %v1467_v44  ;;  %v961_v9 = vadd.f32 %v960_v63, %v5817_v2  ;;  %v962_v49 = vpop.f32.mrb[25].mxu0  ;;  %v5972_v39 = vmul.f32 %v4986_v60, %v5880_v5  ;;  %v5983_v44 = vpop.f32.mrb[46].mxu1 }
 0x146   :  { %v4988_v40 = vpop.eup %4987  ;;  %v963_v48 = vpop.f32.mrb[26].mxu0  ;;  %7143 = vst [vmem:[#allocation3_spill] sm:$0xff] %v5983_v44 }
 0x147   :  { %v4990_v32 = vpop.eup %4989  ;;  %v5977_v17 = vmul.f32 %v4988_v40, %v5886_v14  ;;  %4999 = vpow2.f32 %v1542_v3  ;;  %v964_v52 = vadd.f32 %v963_v48, %v5817_v2  ;;  %v5981_v37 = vadd.f32 %v5788_v53, %v961_v9  ;;  %v965_v36 = vpop.f32.mrb[27].mxu0 }
 0x148   :  { %v1656_v63 = vadd.f32 1.0, %v4990_v32  ;;  %v5985_v49 = vpop.f32.mrb[47].mxu1 }
 0x149   :  { %v4992_v5 = vpop.eup %4991  ;;  %v1468_v30 = vsub.f32 0.0, %v5981_v37  ;;  %v5991_v14 = vadd.f32 %v5795_v56, %v964_v52 }
 0x14a   :  { %5001 = vrcp.f32 %v1656_v63  ;;  %v1657_v3 = vadd.f32 1.0, %v4992_v5 }
 0x14b   :  { %v1544_v40 = vmul.f32 1.442695, %v1468_v30  ;;  %v1469_v53 = vsub.f32 0.0, %v5991_v14 }
 0x14c   :  { %v4994_v9 = vpop.eup %4993  ;;  %5003 = vrcp.f32 %v1657_v3  ;;  %v968_v48 = vpop.f32.mrb[28].mxu0 }
 0x14d   :  { %5005 = vpow2.f32 %v1544_v40  ;;  %v1546_v32 = vmul.f32 1.442695, %v1469_v53  ;;  %v969_v36 = vadd.f32 %v968_v48, %v5817_v2  ;;  %v970_v13 = vpop.f32.mrb[29].mxu0  ;;  %v5996_v60 = vmul.f32 %v4994_v9, %v5903_v35 }
 0x14e   :  { %v4996_v57 = vpop.eup %4995  ;;  %v971_v44 = vpop.f32.mrb[30].mxu0 }
 0x14f   :  { %v4998_v56 = vpop.eup %4997  ;;  %v5999_v52 = vmul.f32 %v4996_v57, %v5910_v54  ;;  %5007 = vpow2.f32 %v1546_v32  ;;  %v6002_v30 = vadd.f32 %v5783_v50, %v969_v36  ;;  %v972_v63 = vadd.f32 %v971_v44, %v5817_v2  ;;  %v973_v5 = vpop.f32.mrb[31].mxu0 }
 0x150   :  { %v1658_v3 = vadd.f32 1.0, %v4998_v56  ;;  %v6013_v56 = vpop.f32.mrb[48].mxu1 }
 0x151   :  { %v5000_v40 = vpop.eup %4999  ;;  %v1470_v35 = vsub.f32 0.0, %v6002_v30  ;;  %v6009_v53 = vadd.f32 %v5793_v55, %v972_v63  ;;  %7144 = vst [vmem:[#allocation4_spill] sm:$0xff] %v6013_v56  ;;  %v6018_v63 = vpop.f32.mrb[49].mxu1 }
 0x152   :  { %5009 = vrcp.f32 %v1658_v3  ;;  %v1659_v57 = vadd.f32 1.0, %v5000_v40  ;;  %7145 = vst [vmem:[#allocation5_spill] sm:$0xff] %v6018_v63 }
 0x153   :  { %v1548_v54 = vmul.f32 1.442695, %v1470_v35  ;;  %v1471_v9 = vsub.f32 0.0, %v6009_v53 }
 0x154   :  { %v5002_v50 = vpop.eup %5001  ;;  %5011 = vrcp.f32 %v1659_v57  ;;  %v976_v48 = vpop.f32.mrb[32].mxu0 }
 0x155   :  { %5013 = vpow2.f32 %v1548_v54  ;;  %v1550_v44 = vmul.f32 1.442695, %v1471_v9  ;;  %v977_v32 = vadd.f32 %v976_v48, %v5817_v2  ;;  %v978_v36 = vpop.f32.mrb[33].mxu0  ;;  %v6016_v13 = vmul.f32 %v5002_v50, %v5931_v27  ;;  %v6027_v9 = vpop.f32.mrb[50].mxu1 }
 0x156   :  { %v5004_v5 = vpop.eup %5003  ;;  %v979_v55 = vpop.f32.mrb[34].mxu0  ;;  %7146 = vst [vmem:[#allocation6_spill] sm:$0xff] %v6027_v9 }
 0x157   :  { %v5006_v3 = vpop.eup %5005  ;;  %v6021_v40 = vmul.f32 %v5004_v5, %v5939_v51  ;;  %5015 = vpow2.f32 %v1550_v44  ;;  %v980_v35 = vadd.f32 %v979_v55, %v5817_v2  ;;  %v6025_v57 = vadd.f32 %v5805_v61, %v977_v32  ;;  %v981_v54 = vpop.f32.mrb[35].mxu0 }
 0x158   :  { %v1660_v48 = vadd.f32 1.0, %v5006_v3  ;;  %v6029_v36 = vpop.f32.mrb[51].mxu1 }
 0x159   :  { %7147 = vst [vmem:[#allocation7_spill] sm:$0xff] %v6029_v36  ;;  %v5008_v27 = vpop.eup %5007  ;;  %v1472_v56 = vsub.f32 0.0, %v6025_v57  ;;  %v6035_v51 = vadd.f32 %v5815_v1, %v980_v35 }
 0x15a   :  { %5017 = vrcp.f32 %v1660_v48  ;;  %v1661_v44 = vadd.f32 1.0, %v5008_v27 }
 0x15b   :  { %v1552_v5 = vmul.f32 1.442695, %v1472_v56  ;;  %v1473_v61 = vsub.f32 0.0, %v6035_v51 }
 0x15c   :  { %v5010_v32 = vpop.eup %5009  ;;  %5019 = vrcp.f32 %v1661_v44  ;;  %v984_v55 = vpop.f32.mrb[36].mxu0 }
 0x15d   :  { %5021 = vpow2.f32 %v1552_v5  ;;  %v1554_v3 = vmul.f32 1.442695, %v1473_v61  ;;  %v985_v54 = vadd.f32 %v984_v55, %v5817_v2  ;;  %v986_v9 = vpop.f32.mrb[37].mxu0  ;;  %v6040_v50 = vmul.f32 %v5010_v32, %v5956_v43 }
 0x15e   :  { %v5012_v36 = vpop.eup %5011  ;;  %v987_v63 = vpop.f32.mrb[38].mxu0 }
 0x15f   :  { %v5014_v1 = vpop.eup %5013  ;;  %v6043_v35 = vmul.f32 %v5012_v36, %v5965_v46  ;;  %5023 = vpow2.f32 %v1554_v3  ;;  %v6046_v56 = vadd.f32 %v5799_v58, %v985_v54  ;;  %v988_v48 = vadd.f32 %v987_v63, %v5817_v2  ;;  %v989_v27 = vpop.f32.mrb[39].mxu0 }
 0x160   :  { %v1662_v44 = vadd.f32 1.0, %v5014_v1  ;;  %v6057_v1 = vpop.f32.mrb[52].mxu1 }
 0x161   :  { %v5016_v5 = vpop.eup %5015  ;;  %v1474_v43 = vsub.f32 0.0, %v6046_v56  ;;  %v6053_v61 = vadd.f32 %v5813_v0, %v988_v48  ;;  %7148 = vst [vmem:[#allocation8_spill] sm:$0xff] %v6057_v1  ;;  %v6062_v48 = vpop.f32.mrb[53].mxu1 }
 0x162   :  { %5025 = vrcp.f32 %v1662_v44  ;;  %v1663_v46 = vadd.f32 1.0, %v5016_v5  ;;  %7149 = vst [vmem:[#allocation9_spill] sm:$0xff] %v6062_v48 }
 0x163   :  { %v1556_v36 = vmul.f32 1.442695, %v1474_v43  ;;  %v1475_v32 = vsub.f32 0.0, %v6053_v61 }
 0x164   :  { %v5018_v58 = vpop.eup %5017  ;;  %5027 = vrcp.f32 %v1663_v46  ;;  %v992_v55 = vpop.f32.mrb[40].mxu0 }
 0x165   :  { %5029 = vpow2.f32 %v1556_v36  ;;  %v1558_v63 = vmul.f32 1.442695, %v1475_v32  ;;  %v993_v3 = vadd.f32 %v992_v55, %v5817_v2  ;;  %v994_v54 = vpop.f32.mrb[41].mxu0  ;;  %v6060_v9 = vmul.f32 %v5018_v58, %v5981_v37  ;;  %v6071_v32 = vpop.f32.mrb[54].mxu1 }
 0x166   :  { %v5020_v27 = vpop.eup %5019  ;;  %v995_v0 = vpop.f32.mrb[42].mxu0  ;;  %7150 = vst [vmem:[#allocation10_spill] sm:$0xff] %v6071_v32 }
 0x167   :  { %v5022_v44 = vpop.eup %5021  ;;  %v6065_v5 = vmul.f32 %v5020_v27, %v5991_v14  ;;  %5031 = vpow2.f32 %v1558_v63  ;;  %v996_v43 = vadd.f32 %v995_v0, %v5817_v2  ;;  %v6069_v46 = vadd.f32 %v5825_v8, %v993_v3  ;;  %v997_v36 = vpop.f32.mrb[43].mxu0 }
 0x168   :  { %v1664_v55 = vadd.f32 1.0, %v5022_v44  ;;  %v6073_v54 = vpop.f32.mrb[55].mxu1 }
 0x169   :  { %7151 = vst [vmem:[#allocation11_spill] sm:$0xff] %v6073_v54  ;;  %v5024_v37 = vpop.eup %5023  ;;  %v1476_v1 = vsub.f32 0.0, %v6069_v46  ;;  %v6079_v14 = vadd.f32 %v5835_v15, %v996_v43 }
 0x16a   :  { %5033 = vrcp.f32 %v1664_v55  ;;  %v1665_v63 = vadd.f32 1.0, %v5024_v37 }
 0x16b   :  { %v1560_v27 = vmul.f32 1.442695, %v1476_v1  ;;  %v1477_v8 = vsub.f32 0.0, %v6079_v14 }
 0x16c   :  { %v5026_v3 = vpop.eup %5025  ;;  %5035 = vrcp.f32 %v1665_v63  ;;  %v1000_v0 = vpop.f32.mrb[44].mxu0 }
 0x16d   :  { %5037 = vpow2.f32 %v1560_v27  ;;  %v1562_v44 = vmul.f32 1.442695, %v1477_v8  ;;  %v1001_v36 = vadd.f32 %v1000_v0, %v5817_v2  ;;  %v1002_v32 = vpop.f32.mrb[45].mxu0  ;;  %v6084_v58 = vmul.f32 %v5026_v3, %v6002_v30 }
 0x16e   :  { %v5028_v54 = vpop.eup %5027  ;;  %v1003_v48 = vpop.f32.mrb[46].mxu0 }
 0x16f   :  { %v5030_v15 = vpop.eup %5029  ;;  %v6087_v43 = vmul.f32 %v5028_v54, %v6009_v53  ;;  %5039 = vpow2.f32 %v1562_v44  ;;  %v6090_v1 = vadd.f32 %v5819_v4, %v1001_v36  ;;  %v1004_v55 = vadd.f32 %v1003_v48, %v5817_v2  ;;  %v1005_v37 = vpop.f32.mrb[47].mxu0 }
 0x170   :  { %v1666_v63 = vadd.f32 1.0, %v5030_v15  ;;  %v6101_v15 = vpop.f32.mrb[56].mxu1 }
 0x171   :  { %v5032_v27 = vpop.eup %5031  ;;  %v1478_v30 = vsub.f32 0.0, %v6090_v1  ;;  %v6097_v8 = vadd.f32 %v5830_v11, %v1004_v55  ;;  %7152 = vst [vmem:[#allocation12_spill] sm:$0xff] %v6101_v15  ;;  %v6104_v55 = vpop.f32.mrb[57].mxu1 }
 0x172   :  { %5041 = vrcp.f32 %v1666_v63  ;;  %v1667_v53 = vadd.f32 1.0, %v5032_v27  ;;  %7153 = vst [vmem:[#allocation13_spill] sm:$0xff] %v6104_v55 }
 0x173   :  { %v1564_v54 = vmul.f32 1.442695, %v1478_v30  ;;  %v1479_v3 = vsub.f32 0.0, %v6097_v8 }
 0x174   :  { %v5034_v4 = vpop.eup %5033  ;;  %5043 = vrcp.f32 %v1667_v53  ;;  %v1008_v0 = vpop.f32.mrb[48].mxu0 }
 0x175   :  { %5045 = vpow2.f32 %v1564_v54  ;;  %v1566_v48 = vmul.f32 1.442695, %v1479_v3  ;;  %v1009_v44 = vadd.f32 %v1008_v0, %v5817_v2  ;;  %v1010_v36 = vpop.f32.mrb[49].mxu0  ;;  %v1745_v32 = vmul.f32 %v5034_v4, %v6025_v57  ;;  %v6111_v3 = vpop.f32.mrb[58].mxu1 }
 0x176   :  { %v5036_v37 = vpop.eup %5035  ;;  %v1011_v11 = vpop.f32.mrb[50].mxu0 }
 0x177   :  { %v5038_v63 = vpop.eup %5037  ;;  %v1747_v27 = vmul.f32 %v5036_v37, %v6035_v51  ;;  %5047 = vpow2.f32 %v1566_v48  ;;  %v1012_v30 = vadd.f32 %v1011_v11, %v5817_v2  ;;  %v6109_v53 = vadd.f32 %v5847_v26, %v1009_v44  ;;  %v1013_v54 = vpop.f32.mrb[51].mxu0  ;;  %v4943_v51 = vld [vmem:[%s7136_s2 + $0x4] ss:$16 sps:$4 sm:$0xff]  }
 0x178   :  { %v1668_v0 = vadd.f32 1.0, %v5038_v63  ;;  %v6113_v36 = vpop.f32.mrb[59].mxu1  ;;  %1952 = vmatprep.mubr.bf16.mxu1 %v4943_v51  ;;  %v7154_v63 = vpack.c.bf16 %v5927_v24, %v5922_v19 }
 0x179   :  { %v5040_v15 = vpop.eup %5039  ;;  %v1480_v57 = vsub.f32 0.0, %v6109_v53  ;;  %v6117_v4 = vadd.f32 %v5858_v34, %v1012_v30  ;;  %v1856_v55 = vpack.c.bf16 %v1747_v27, %v1745_v32 }
 0x17a   :  { %5049 = vrcp.f32 %v1668_v0  ;;  %v1669_v26 = vadd.f32 1.0, %v5040_v15 }
 0x17b   :  { %v1568_v48 = vmul.f32 1.442695, %v1480_v57  ;;  %v1481_v44 = vsub.f32 0.0, %v6117_v4  ;;  %4383 = vmatprep.subr.bf16.mxu1 %v1856_v55 }
 0x17c   :  { %v5042_v37 = vpop.eup %5041  ;;  %5051 = vrcp.f32 %v1669_v26  ;;  %v1016_v11 = vpop.f32.mrb[52].mxu0  ;;  %4384 = vmatpush3.bf16.msra.mxu1 %v7154_v63 }
 0x17d   :  { %5053 = vpow2.f32 %v1568_v48  ;;  %v1570_v34 = vmul.f32 1.442695, %v1481_v44  ;;  %v1017_v32 = vadd.f32 %v1016_v11, %v5817_v2  ;;  %v1018_v27 = vpop.f32.mrb[53].mxu0  ;;  %v1749_v15 = vmul.f32 %v5042_v37, %v6046_v56 }
 0x17e   :  { %v5044_v30 = vpop.eup %5043  ;;  %v1019_v54 = vpop.f32.mrb[54].mxu0 }
 0x17f   :  { %v5046_v0 = vpop.eup %5045  ;;  %v1751_v55 = vmul.f32 %v5044_v30, %v6053_v61  ;;  %5055 = vpow2.f32 %v1570_v34  ;;  %v6130_v57 = vadd.f32 %v5841_v21, %v1017_v32  ;;  %v1020_v51 = vadd.f32 %v1019_v54, %v5817_v2  ;;  %v1021_v19 = vpop.f32.mrb[55].mxu0 }
 0x180   :  { %v1670_v24 = vadd.f32 1.0, %v5046_v0  ;;  %v7155_v34 = vpack.c.bf16 %v5953_v23, %v5948_v12  ;;  %v6142_v30 = vpop.f32.mrb[60].mxu1 }
 0x181   :  { %v5048_v26 = vpop.eup %5047  ;;  %v1482_v48 = vsub.f32 0.0, %v6130_v57  ;;  %v6135_v44 = vadd.f32 %v5852_v29, %v1020_v51  ;;  %v1857_v11 = vpack.c.bf16 %v1751_v55, %v1749_v15  ;;  %v6145_v55 = vpop.f32.mrb[61].mxu1 }
 0x182   :  { %5057 = vrcp.f32 %v1670_v24  ;;  %v1671_v56 = vadd.f32 1.0, %v5048_v26  ;;  %v6152_v26 = vpop.f32.mrb[62].mxu1 }
 0x183   :  { %v1572_v37 = vmul.f32 1.442695, %v1482_v48  ;;  %v1483_v61 = vsub.f32 0.0, %v6135_v44  ;;  %4385 = vmatprep.subr.bf16.mxu1 %v1857_v11  ;;  %v6154_v11 = vpop.f32.mrb[63].mxu1 }
 0x184   :  { %v5050_v63 = vpop.eup %5049  ;;  %5059 = vrcp.f32 %v1671_v56  ;;  %v1024_v21 = vpop.f32.mrb[56].mxu0  ;;  %4386 = vmatpush3.bf16.msra.mxu1 %v7155_v34 }
 0x185   :  { %5061 = vpow2.f32 %v1572_v37  ;;  %v1574_v32 = vmul.f32 1.442695, %v1483_v61  ;;  %v1025_v27 = vadd.f32 %v1024_v21, %v5817_v2  ;;  %v1026_v29 = vpop.f32.mrb[57].mxu0  ;;  %v1753_v54 = vmul.f32 %v5050_v63, %v6069_v46 }
 0x186   :  { %v5052_v15 = vpop.eup %5051  ;;  %v1027_v0 = vpop.f32.mrb[58].mxu0 }
 0x187   :  { %v5054_v51 = vpop.eup %5053  ;;  %v1755_v19 = vmul.f32 %v5052_v15, %v6079_v14  ;;  %5063 = vpow2.f32 %v1574_v32  ;;  %v1028_v12 = vadd.f32 %v1027_v0, %v5817_v2  ;;  %v6150_v23 = vadd.f32 %v5871_v59, %v1025_v27  ;;  %v1029_v24 = vpop.f32.mrb[59].mxu0 }
 0x188   :  { %v1672_v48 = vadd.f32 1.0, %v5054_v51  ;;  %v7156_v32 = vpack.c.bf16 %v5977_v17, %v5972_v39 }
 0x189   :  { %v5056_v56 = vpop.eup %5055  ;;  %v1484_v46 = vsub.f32 0.0, %v6150_v23  ;;  %v6158_v37 = vadd.f32 %v5882_v7, %v1028_v12  ;;  %v1858_v61 = vpack.c.bf16 %v1755_v19, %v1753_v54 }
 0x18a   :  { %5065 = vrcp.f32 %v1672_v48  ;;  %v1673_v14 = vadd.f32 1.0, %v5056_v56 }
 0x18b   :  { %v1576_v63 = vmul.f32 1.442695, %v1484_v46  ;;  %v1485_v21 = vsub.f32 0.0, %v6158_v37  ;;  %4387 = vmatprep.subr.bf16.mxu1 %v1858_v61 }
 0x18c   :  { %v5058_v59 = vpop.eup %5057  ;;  %5067 = vrcp.f32 %v1673_v14  ;;  %v1032_v34 = vpop.f32.mrb[60].mxu0  ;;  %4388 = vmatpush3.bf16.msra.mxu1 %v7156_v32 }
 0x18d   :  { %5069 = vpow2.f32 %v1576_v63  ;;  %v1578_v27 = vmul.f32 1.442695, %v1485_v21  ;;  %v1033_v29 = vadd.f32 %v1032_v34, %v5817_v2  ;;  %v1034_v7 = vpop.f32.mrb[61].mxu0  ;;  %v1757_v54 = vmul.f32 %v5058_v59, %v6090_v1 }
 0x18e   :  { %v5060_v15 = vpop.eup %5059  ;;  %v1035_v0 = vpop.f32.mrb[62].mxu0  ;;  %v7157_v21 = vpack.c.bf16 %v5999_v52, %v5996_v60 }
 0x18f   :  { %v5062_v51 = vpop.eup %5061  ;;  %v1759_v19 = vmul.f32 %v5060_v15, %v6097_v8  ;;  %5071 = vpow2.f32 %v1578_v27  ;;  %v6168_v12 = vadd.f32 %v5865_v47, %v1033_v29  ;;  %v1036_v24 = vadd.f32 %v1035_v0, %v5817_v2  ;;  %v1037_v39 = vpop.f32.mrb[63].mxu0 }
 0x190   :  { %v1674_v17 = vadd.f32 1.0, %v5062_v51 }
 0x191   :  { %v5064_v48 = vpop.eup %5063  ;;  %v1486_v56 = vsub.f32 0.0, %v6168_v12  ;;  %v6173_v46 = vadd.f32 %v5876_v62, %v1036_v24  ;;  %v1859_v61 = vpack.c.bf16 %v1759_v19, %v1757_v54 }
 0x192   :  { %5073 = vrcp.f32 %v1674_v17  ;;  %v1675_v1 = vadd.f32 1.0, %v5064_v48 }
 0x193   :  { %v1580_v14 = vmul.f32 1.442695, %v1486_v56  ;;  %v1487_v8 = vsub.f32 0.0, %v6173_v46  ;;  %4389 = vmatprep.subr.bf16.mxu1 %v1859_v61 }
 0x194   :  { %v5066_v63 = vpop.eup %5065  ;;  %5075 = vrcp.f32 %v1675_v1  ;;  %v1040_v47 = vpop.f32.mrb[64].mxu0  ;;  %4390 = vmatpush3.bf16.msra.mxu1 %v7157_v21 }
 0x195   :  { %5077 = vpow2.f32 %v1580_v14  ;;  %v1582_v59 = vmul.f32 1.442695, %v1487_v8  ;;  %v1041_v34 = vadd.f32 %v1040_v47, %v5817_v2  ;;  %v1042_v62 = vpop.f32.mrb[65].mxu0  ;;  %v1761_v27 = vmul.f32 %v5066_v63, %v6109_v53 }
 0x196   :  { %v5068_v32 = vpop.eup %5067  ;;  %v1043_v29 = vpop.f32.mrb[66].mxu0 }
 0x197   :  { %v5070_v7 = vpop.eup %5069  ;;  %v1763_v15 = vmul.f32 %v5068_v32, %v6117_v4  ;;  %5079 = vpow2.f32 %v1582_v59  ;;  %v1044_v54 = vadd.f32 %v1043_v29, %v5817_v2  ;;  %v6184_v0 = vadd.f32 %v5895_v25, %v1041_v34  ;;  %v1045_v60 = vpop.f32.mrb[67].mxu0 }
 0x198   :  { %v1676_v52 = vadd.f32 1.0, %v5070_v7  ;;  %v7158_v25 = vpack.c.bf16 %v6021_v40, %v6016_v13 }
 0x199   :  { %v5072_v51 = vpop.eup %5071  ;;  %v1488_v19 = vsub.f32 0.0, %v6184_v0  ;;  %v6188_v24 = vadd.f32 %v5906_v45, %v1044_v54  ;;  %v1860_v39 = vpack.c.bf16 %v1763_v15, %v1761_v27  ;;  %v7159_v54 = vpack.c.bf16 %v6043_v35, %v6040_v50 }
 0x19a   :  { %5081 = vrcp.f32 %v1676_v52  ;;  %v1677_v53 = vadd.f32 1.0, %v5072_v51 }
 0x19b   :  { %v1584_v17 = vmul.f32 1.442695, %v1488_v19  ;;  %v1489_v4 = vsub.f32 0.0, %v6188_v24  ;;  %4391 = vmatprep.subr.bf16.mxu1 %v1860_v39 }
 0x19c   :  { %v5074_v48 = vpop.eup %5073  ;;  %5083 = vrcp.f32 %v1677_v53  ;;  %v1048_v56 = vpop.f32.mrb[68].mxu0  ;;  %4392 = vmatpush3.bf16.msra.mxu1 %v7158_v25 }
 0x19d   :  { %5085 = vpow2.f32 %v1584_v17  ;;  %v1586_v61 = vmul.f32 1.442695, %v1489_v4  ;;  %v1049_v1 = vadd.f32 %v1048_v56, %v5817_v2  ;;  %v1050_v45 = vpop.f32.mrb[69].mxu0  ;;  %v1765_v8 = vmul.f32 %v5074_v48, %v6130_v57 }
 0x19e   :  { %v5076_v14 = vpop.eup %5075  ;;  %v1051_v63 = vpop.f32.mrb[70].mxu0 }
 0x19f   :  { %v5078_v47 = vpop.eup %5077  ;;  %v1767_v21 = vmul.f32 %v5076_v14, %v6135_v44  ;;  %5087 = vpow2.f32 %v1586_v61  ;;  %v6198_v59 = vadd.f32 %v5889_v20, %v1049_v1  ;;  %v1052_v34 = vadd.f32 %v1051_v63, %v5817_v2  ;;  %v1053_v13 = vpop.f32.mrb[71].mxu0 }
 0x1a0   :  { %v1678_v40 = vadd.f32 1.0, %v5078_v47 }
 0x1a1   :  { %v5080_v62 = vpop.eup %5079  ;;  %v1490_v32 = vsub.f32 0.0, %v6198_v59  ;;  %v6203_v27 = vadd.f32 %v5900_v31, %v1052_v34  ;;  %v1861_v29 = vpack.c.bf16 %v1767_v21, %v1765_v8 }
 0x1a2   :  { %5089 = vrcp.f32 %v1678_v40  ;;  %v1679_v57 = vadd.f32 1.0, %v5080_v62 }
 0x1a3   :  { %v1588_v7 = vmul.f32 1.442695, %v1490_v32  ;;  %v1491_v44 = vsub.f32 0.0, %v6203_v27  ;;  %4393 = vmatprep.subr.bf16.mxu1 %v1861_v29 }
 0x1a4   :  { %v5082_v15 = vpop.eup %5081  ;;  %5091 = vrcp.f32 %v1679_v57  ;;  %v1056_v20 = vpop.f32.mrb[72].mxu0  ;;  %4394 = vmatpush3.bf16.msra.mxu1 %v7159_v54 }
 0x1a5   :  { %5093 = vpow2.f32 %v1588_v7  ;;  %v1590_v60 = vmul.f32 1.442695, %v1491_v44  ;;  %v1057_v52 = vadd.f32 %v1056_v20, %v5817_v2  ;;  %v1058_v31 = vpop.f32.mrb[73].mxu0  ;;  %v1769_v19 = vmul.f32 %v5082_v15, %v6150_v23 }
 0x1a6   :  { %v5084_v51 = vpop.eup %5083  ;;  %v1059_v39 = vpop.f32.mrb[74].mxu0 }
 0x1a7   :  { %v5086_v53 = vpop.eup %5085  ;;  %v1771_v17 = vmul.f32 %v5084_v51, %v6158_v37  ;;  %5095 = vpow2.f32 %v1590_v60  ;;  %v1060_v4 = vadd.f32 %v1059_v39, %v5817_v2  ;;  %v6214_v48 = vadd.f32 %v5919_v16, %v1057_v52  ;;  %v1061_v50 = vpop.f32.mrb[75].mxu0 }
 0x1a8   :  { %v1680_v35 = vadd.f32 1.0, %v5086_v53  ;;  %v7160_v16 = vpack.c.bf16 %v6065_v5, %v6060_v9  ;;  %v7161_v52 = vpack.c.bf16 %v6087_v43, %v6084_v58 }
 0x1a9   :  { %v5088_v56 = vpop.eup %5087  ;;  %v1492_v25 = vsub.f32 0.0, %v6214_v48  ;;  %v6218_v61 = vadd.f32 %v5933_v33, %v1060_v4  ;;  %v1862_v1 = vpack.c.bf16 %v1771_v17, %v1769_v19 }
 0x1aa   :  { %5097 = vrcp.f32 %v1680_v35  ;;  %v1681_v23 = vadd.f32 1.0, %v5088_v56 }
 0x1ab   :  { %v1592_v45 = vmul.f32 1.442695, %v1492_v25  ;;  %v1493_v37 = vsub.f32 0.0, %v6218_v61  ;;  %4395 = vmatprep.subr.bf16.mxu1 %v1862_v1 }
 0x1ac   :  { %v5090_v14 = vpop.eup %5089  ;;  %5099 = vrcp.f32 %v1681_v23  ;;  %v1064_v8 = vpop.f32.mrb[76].mxu0  ;;  %4396 = vmatpush3.bf16.msra.mxu1 %v7160_v16  ;;  %v4949_v16 = vld [vmem:[%s7136_s2 + $0xc] ss:$16 sps:$4 sm:$0xff]  }
 0x1ad   :  { %5101 = vpow2.f32 %v1592_v45  ;;  %v1594_v63 = vmul.f32 1.442695, %v1493_v37  ;;  %v1065_v47 = vadd.f32 %v1064_v8, %v5817_v2  ;;  %v1066_v33 = vpop.f32.mrb[77].mxu0  ;;  %v1773_v34 = vmul.f32 %v5090_v14, %v6168_v12 }
 0x1ae   :  { %v5092_v21 = vpop.eup %5091  ;;  %v1067_v13 = vpop.f32.mrb[78].mxu0 }
 0x1af   :  { %v5094_v40 = vpop.eup %5093  ;;  %v1775_v62 = vmul.f32 %v5092_v21, %v6173_v46  ;;  %5103 = vpow2.f32 %v1594_v63  ;;  %v6228_v32 = vadd.f32 %v5913_v6, %v1065_v47  ;;  %v1068_v29 = vadd.f32 %v1067_v13, %v5817_v2  ;;  %v1069_v9 = vpop.f32.mrb[79].mxu0  ;;  %v4941_v6 = vld [vmem:[%s7136_s2] ss:$16 sps:$4 sm:$0xff]  }
 0x1b0   :  { %v1682_v5 = vadd.f32 1.0, %v5094_v40 }
 0x1b1   :  { %v5096_v57 = vpop.eup %5095  ;;  %v1494_v7 = vsub.f32 0.0, %v6228_v32  ;;  %v6233_v44 = vadd.f32 %v5924_v22, %v1068_v29  ;;  %v1863_v15 = vpack.c.bf16 %v1775_v62, %v1773_v34  ;;  %v4944_v22 = vld [vmem:[%s7136_s2 + $0x24] ss:$16 sps:$4 sm:$0xff]  }
 0x1b2   :  { %5105 = vrcp.f32 %v1682_v5  ;;  %v1683_v12 = vadd.f32 1.0, %v5096_v57 }
 0x1b3   :  { %v1596_v20 = vmul.f32 1.442695, %v1494_v7  ;;  %v1495_v46 = vsub.f32 0.0, %v6233_v44  ;;  %4397 = vmatprep.subr.bf16.mxu1 %v1863_v15 }
 0x1b4   :  { %v5098_v54 = vpop.eup %5097  ;;  %5107 = vrcp.f32 %v1683_v12  ;;  %v1072_v60 = vpop.f32.mrb[80].mxu0  ;;  %4398 = vmatpush3.bf16.msra.mxu1 %v7161_v52 }
 0x1b5   :  { %5109 = vpow2.f32 %v1596_v20  ;;  %v1598_v31 = vmul.f32 1.442695, %v1495_v46  ;;  %v1073_v51 = vadd.f32 %v1072_v60, %v5817_v2  ;;  %v1074_v19 = vpop.f32.mrb[81].mxu0  ;;  %v6247_v53 = vmul.f32 %v5098_v54, %v6184_v0 }
 0x1b6   :  { %v5100_v39 = vpop.eup %5099  ;;  %v1075_v17 = vpop.f32.mrb[82].mxu0 }
 0x1b7   :  { %v5102_v4 = vpop.eup %5101  ;;  %v6250_v50 = vmul.f32 %v5100_v39, %v6188_v24  ;;  %5111 = vpow2.f32 %v1598_v31  ;;  %v1076_v58 = vadd.f32 %v1075_v17, %v5817_v2  ;;  %v6254_v43 = vadd.f32 %v5945_v10, %v1073_v51  ;;  %v1077_v35 = vpop.f32.mrb[83].mxu0  ;;  %1953 = vmatmul.mubr.bf16.vlgmr.msra.gmra.mrb[64].mxu1 %v4941_v6  ;;  %v4946_v10 = vld [vmem:[%s7136_s2 + $0x20] ss:$16 sps:$4 sm:$0xff]  }
 0x1b8   :  { %v1684_v56 = vadd.f32 1.0, %v5102_v4  ;;  %1960 = vmatprep.mubr.bf16.mxu1 %v4944_v22 }
 0x1b9   :  { %v5104_v25 = vpop.eup %5103  ;;  %v1864_v0 = vpack.c.bf16 %v6250_v50, %v6247_v53  ;;  %v1496_v1 = vsub.f32 0.0, %v6254_v43  ;;  %v6260_v23 = vadd.f32 %v5959_v41, %v1076_v58 }
 0x1ba   :  { %5113 = vrcp.f32 %v1684_v56  ;;  %v1685_v24 = vadd.f32 1.0, %v5104_v25 }
 0x1bb   :  { %v1600_v45 = vmul.f32 1.442695, %v1496_v1  ;;  %v1497_v37 = vsub.f32 0.0, %v6260_v23 }
 0x1bc   :  { %v5106_v14 = vpop.eup %5105  ;;  %5115 = vrcp.f32 %v1685_v24  ;;  %v1080_v8 = vpop.f32.mrb[84].mxu0 }
 0x1bd   :  { %5117 = vpow2.f32 %v1600_v45  ;;  %v1602_v63 = vmul.f32 1.442695, %v1497_v37  ;;  %v1081_v41 = vadd.f32 %v1080_v8, %v5817_v2  ;;  %v1082_v47 = vpop.f32.mrb[85].mxu0  ;;  %v6271_v21 = vmul.f32 %v5106_v14, %v6198_v59 }
 0x1be   :  { %v5108_v33 = vpop.eup %5107  ;;  %v1083_v34 = vpop.f32.mrb[86].mxu0 }
 0x1bf   :  { %v5110_v13 = vpop.eup %5109  ;;  %v6274_v40 = vmul.f32 %v5108_v33, %v6203_v27  ;;  %5119 = vpow2.f32 %v1602_v63  ;;  %v6277_v62 = vadd.f32 %v5942_v38, %v1081_v41  ;;  %v1084_v29 = vadd.f32 %v1083_v34, %v5817_v2  ;;  %v1085_v9 = vpop.f32.mrb[87].mxu0  ;;  %1961 = vmatmul.mubr.bf16.gmra.mrb[68].mxu1 %v4946_v10 }
 0x1c0   :  { %v1686_v5 = vadd.f32 1.0, %v5110_v13  ;;  %2001 = vmatprep.mubr.bf16.mxu1 %v4949_v16  ;;  %v7162_v9 = vld [vmem:[#allocation3_spill] sm:$0xff] }
 0x1c1   :  { %v5112_v57 = vpop.eup %5111  ;;  %v1865_v59 = vpack.c.bf16 %v6274_v40, %v6271_v21  ;;  %v1498_v7 = vsub.f32 0.0, %v6277_v62  ;;  %v6284_v15 = vadd.f32 %v5950_v18, %v1084_v29 }
 0x1c2   :  { %5121 = vrcp.f32 %v1686_v5  ;;  %v1687_v27 = vadd.f32 1.0, %v5112_v57 }
 0x1c3   :  { %v1604_v12 = vmul.f32 1.442695, %v1498_v7  ;;  %v1499_v38 = vsub.f32 0.0, %v6284_v15 }
 0x1c4   :  { %v5114_v20 = vpop.eup %5113  ;;  %5123 = vrcp.f32 %v1687_v27  ;;  %v1088_v46 = vpop.f32.mrb[88].mxu0 }
 0x1c5   :  { %5125 = vpow2.f32 %v1604_v12  ;;  %v1606_v6 = vmul.f32 1.442695, %v1499_v38  ;;  %v1089_v54 = vadd.f32 %v1088_v46, %v5817_v2  ;;  %v1090_v60 = vpop.f32.mrb[89].mxu0  ;;  %v6289_v22 = vmul.f32 %v5114_v20, %v6214_v48 }
 0x1c6   :  { %v5116_v52 = vpop.eup %5115  ;;  %v1091_v31 = vpop.f32.mrb[90].mxu0 }
 0x1c7   :  { %v5118_v18 = vpop.eup %5117  ;;  %v6292_v51 = vmul.f32 %v5116_v52, %v6218_v61  ;;  %5127 = vpow2.f32 %v1606_v6  ;;  %v1092_v19 = vadd.f32 %v1091_v31, %v5817_v2  ;;  %v6296_v39 = vadd.f32 %v5974_v28, %v1089_v54  ;;  %v1093_v17 = vpop.f32.mrb[91].mxu0 }
 0x1c8   :  { %v1688_v4 = vadd.f32 1.0, %v5118_v18  ;;  %v7163_v18 = vld [vmem:[#allocation5_spill] sm:$0xff] }
 0x1c9   :  { %v5120_v58 = vpop.eup %5119  ;;  %v1866_v35 = vpack.c.bf16 %v6292_v51, %v6289_v22  ;;  %v1500_v48 = vsub.f32 0.0, %v6296_v39  ;;  %v6302_v56 = vadd.f32 %v5985_v49, %v1092_v19 }
 0x1ca   :  { %5129 = vrcp.f32 %v1688_v4  ;;  %v1689_v61 = vadd.f32 1.0, %v5120_v58 }
 0x1cb   :  { %v1608_v25 = vmul.f32 1.442695, %v1500_v48  ;;  %v1501_v1 = vsub.f32 0.0, %v6302_v56 }
 0x1cc   :  { %v5122_v24 = vpop.eup %5121  ;;  %5131 = vrcp.f32 %v1689_v61  ;;  %v1096_v28 = vpop.f32.mrb[92].mxu0  ;;  %v7164_v61 = vld [vmem:[#allocation7_spill] sm:$0xff] }
 0x1cd   :  { %5133 = vpow2.f32 %v1608_v25  ;;  %v1610_v45 = vmul.f32 1.442695, %v1501_v1  ;;  %v1097_v37 = vadd.f32 %v1096_v28, %v5817_v2  ;;  %v1098_v10 = vpop.f32.mrb[93].mxu0  ;;  %v6307_v8 = vmul.f32 %v5122_v24, %v6228_v32 }
 0x1ce   :  { %v5124_v14 = vpop.eup %5123  ;;  %v1099_v16 = vpop.f32.mrb[94].mxu0 }
 0x1cf   :  { %v5126_v49 = vpop.eup %5125  ;;  %v6310_v63 = vmul.f32 %v5124_v14, %v6233_v44  ;;  %5135 = vpow2.f32 %v1610_v45  ;;  %v6313_v41 = vadd.f32 %v5969_v42, %v1097_v37  ;;  %v1100_v47 = vadd.f32 %v1099_v16, %v5817_v2  ;;  %v1101_v33 = vpop.f32.mrb[95].mxu0 }
 0x1d0   :  { %v1690_v34 = vadd.f32 1.0, %v5126_v49 }
 0x1d1   :  { %v5128_v13 = vpop.eup %5127  ;;  %v1867_v29 = vpack.c.bf16 %v6310_v63, %v6307_v8  ;;  %v1502_v32 = vsub.f32 0.0, %v6313_v41  ;;  %v6320_v5 = vadd.f32 %v7162_v9, %v1100_v47 }
 0x1d2   :  { %5137 = vrcp.f32 %v1690_v34  ;;  %v1691_v44 = vadd.f32 1.0, %v5128_v13  ;;  %v7165_v13 = vld [vmem:[#allocation4_spill] sm:$0xff] }
 0x1d3   :  { %v1612_v57 = vmul.f32 1.442695, %v1502_v32  ;;  %v1503_v7 = vsub.f32 0.0, %v6320_v5 }
 0x1d4   :  { %v5130_v42 = vpop.eup %5129  ;;  %5139 = vrcp.f32 %v1691_v44  ;;  %v1104_v27 = vpop.f32.mrb[96].mxu0 }
 0x1d5   :  { %5141 = vpow2.f32 %v1612_v57  ;;  %v1614_v12 = vmul.f32 1.442695, %v1503_v7  ;;  %v1105_v38 = vadd.f32 %v1104_v27, %v5817_v2  ;;  %v1106_v20 = vpop.f32.mrb[97].mxu0  ;;  %v6325_v6 = vmul.f32 %v5130_v42, %v6254_v43  ;;  %v7166_v27 = vld [vmem:[#allocation6_spill] sm:$0xff] }
 0x1d6   :  { %v5132_v46 = vpop.eup %5131  ;;  %v1107_v54 = vpop.f32.mrb[98].mxu0 }
 0x1d7   :  { %v5134_v60 = vpop.eup %5133  ;;  %v6328_v52 = vmul.f32 %v5132_v46, %v6260_v23  ;;  %5143 = vpow2.f32 %v1614_v12  ;;  %v1108_v31 = vadd.f32 %v1107_v54, %v5817_v2  ;;  %v6332_v19 = vadd.f32 %v7163_v18, %v1105_v38  ;;  %v1109_v17 = vpop.f32.mrb[99].mxu0 }
 0x1d8   :  { %v1692_v4 = vadd.f32 1.0, %v5134_v60 }
 0x1d9   :  { %v5136_v58 = vpop.eup %5135  ;;  %v1868_v48 = vpack.c.bf16 %v6328_v52, %v6325_v6  ;;  %v1504_v43 = vsub.f32 0.0, %v6332_v19  ;;  %v6338_v25 = vadd.f32 %v7164_v61, %v1108_v31 }
 0x1da   :  { %5145 = vrcp.f32 %v1692_v4  ;;  %v1693_v23 = vadd.f32 1.0, %v5136_v58 }
 0x1db   :  { %v1616_v1 = vmul.f32 1.442695, %v1504_v43  ;;  %v1505_v24 = vsub.f32 0.0, %v6338_v25 }
 0x1dc   :  { %v5138_v28 = vpop.eup %5137  ;;  %5147 = vrcp.f32 %v1693_v23  ;;  %v1112_v45 = vpop.f32.mrb[100].mxu0 }
 0x1dd   :  { %5149 = vpow2.f32 %v1616_v1  ;;  %v1618_v37 = vmul.f32 1.442695, %v1505_v24  ;;  %v1113_v10 = vadd.f32 %v1112_v45, %v5817_v2  ;;  %v1114_v14 = vpop.f32.mrb[101].mxu0  ;;  %v6343_v49 = vmul.f32 %v5138_v28, %v6277_v62  ;;  %v7167_v1 = vld [vmem:[#allocation9_spill] sm:$0xff] }
 0x1de   :  { %v5140_v16 = vpop.eup %5139  ;;  %v1115_v47 = vpop.f32.mrb[102].mxu0  ;;  %v7168_v14 = vld [vmem:[#allocation11_spill] sm:$0xff] }
 0x1df   :  { %v5142_v33 = vpop.eup %5141  ;;  %v6346_v34 = vmul.f32 %v5140_v16, %v6284_v15  ;;  %5151 = vpow2.f32 %v1618_v37  ;;  %v6349_v32 = vadd.f32 %v7165_v13, %v1113_v10  ;;  %v1116_v9 = vadd.f32 %v1115_v47, %v5817_v2  ;;  %v1117_v44 = vpop.f32.mrb[103].mxu0 }
 0x1e0   :  { %v1694_v57 = vadd.f32 1.0, %v5142_v33 }
 0x1e1   :  { %v5144_v7 = vpop.eup %5143  ;;  %v1869_v42 = vpack.c.bf16 %v6346_v34, %v6343_v49  ;;  %v1506_v62 = vsub.f32 0.0, %v6349_v32  ;;  %v6356_v12 = vadd.f32 %v7166_v27, %v1116_v9  ;;  %v4947_v49 = vld [vmem:[%s7136_s2 + $0x8] ss:$16 sps:$4 sm:$0xff]   ;;  %v4950_v34 = vld [vmem:[%s7136_s2 + $0x2c] ss:$16 sps:$4 sm:$0xff]  }
 0x1e2   :  { %5153 = vrcp.f32 %v1694_v57  ;;  %v1695_v15 = vadd.f32 1.0, %v5144_v7 }
 0x1e3   :  { %v1620_v38 = vmul.f32 1.442695, %v1506_v62  ;;  %v1507_v20 = vsub.f32 0.0, %v6356_v12 }
 0x1e4   :  { %v5146_v46 = vpop.eup %5145  ;;  %5155 = vrcp.f32 %v1695_v15  ;;  %v1120_v54 = vpop.f32.mrb[104].mxu0 }
 0x1e5   :  { %5157 = vpow2.f32 %v1620_v38  ;;  %v1622_v60 = vmul.f32 1.442695, %v1507_v20  ;;  %v1121_v31 = vadd.f32 %v1120_v54, %v5817_v2  ;;  %v1122_v18 = vpop.f32.mrb[105].mxu0  ;;  %v6361_v4 = vmul.f32 %v5146_v46, %v6296_v39  ;;  %v7169_v46 = vld [vmem:[#allocation8_spill] sm:$0xff] }
 0x1e6   :  { %v5148_v17 = vpop.eup %5147  ;;  %v1123_v58 = vpop.f32.mrb[106].mxu0 }
 0x1e7   :  { %v5150_v43 = vpop.eup %5149  ;;  %v6364_v61 = vmul.f32 %v5148_v17, %v6302_v56  ;;  %5159 = vpow2.f32 %v1622_v60  ;;  %v1124_v23 = vadd.f32 %v1123_v58, %v5817_v2  ;;  %v6368_v24 = vadd.f32 %v7167_v1, %v1121_v31  ;;  %v1125_v28 = vpop.f32.mrb[107].mxu0 }
 0x1e8   :  { %v1696_v45 = vadd.f32 1.0, %v5150_v43  ;;  %v7170_v43 = vld [vmem:[#allocation10_spill] sm:$0xff] }
 0x1e9   :  { %v5152_v37 = vpop.eup %5151  ;;  %v1870_v10 = vpack.c.bf16 %v6364_v61, %v6361_v4  ;;  %v1508_v39 = vsub.f32 0.0, %v6368_v24  ;;  %v6374_v16 = vadd.f32 %v7168_v14, %v1124_v23 }
 0x1ea   :  { %5161 = vrcp.f32 %v1696_v45  ;;  %v1697_v56 = vadd.f32 1.0, %v5152_v37 }
 0x1eb   :  { %v1624_v47 = vmul.f32 1.442695, %v1508_v39  ;;  %v1509_v33 = vsub.f32 0.0, %v6374_v16 }
 0x1ec   :  { %v5154_v13 = vpop.eup %5153  ;;  %5163 = vrcp.f32 %v1697_v56  ;;  %v1128_v9 = vpop.f32.mrb[108].mxu0 }
 0x1ed   :  { %5165 = vpow2.f32 %v1624_v47  ;;  %v1626_v44 = vmul.f32 1.442695, %v1509_v33  ;;  %v1129_v57 = vadd.f32 %v1128_v9, %v5817_v2  ;;  %v1130_v7 = vpop.f32.mrb[109].mxu0  ;;  %v6379_v27 = vmul.f32 %v5154_v13, %v6313_v41 }
 0x1ee   :  { %v5156_v62 = vpop.eup %5155  ;;  %v1131_v15 = vpop.f32.mrb[110].mxu0  ;;  %v7171_v7 = vld [vmem:[#allocation13_spill] sm:$0xff] }
 0x1ef   :  { %v5158_v38 = vpop.eup %5157  ;;  %v6382_v20 = vmul.f32 %v5156_v62, %v6320_v5  ;;  %5167 = vpow2.f32 %v1626_v44  ;;  %v6385_v54 = vadd.f32 %v7169_v46, %v1129_v57  ;;  %v1132_v60 = vadd.f32 %v1131_v15, %v5817_v2  ;;  %v1133_v31 = vpop.f32.mrb[111].mxu0 }
 0x1f0   :  { %v1698_v18 = vadd.f32 1.0, %v5158_v38 }
 0x1f1   :  { %v5160_v17 = vpop.eup %5159  ;;  %v1871_v58 = vpack.c.bf16 %v6382_v20, %v6379_v27  ;;  %v1510_v41 = vsub.f32 0.0, %v6385_v54  ;;  %v6392_v23 = vadd.f32 %v7170_v43, %v1132_v60  ;;  %v4953_v27 = vld [vmem:[%s7137_s3] sm:$0xff]  }
 0x1f2   :  { %5169 = vrcp.f32 %v1698_v18  ;;  %v1699_v5 = vadd.f32 1.0, %v5160_v17 }
 0x1f3   :  { %v1628_v1 = vmul.f32 1.442695, %v1510_v41  ;;  %v1511_v28 = vsub.f32 0.0, %v6392_v23 }
 0x1f4   :  { %v5162_v45 = vpop.eup %5161  ;;  %5171 = vrcp.f32 %v1699_v5  ;;  %v1136_v37 = vpop.f32.mrb[112].mxu0 }
 0x1f5   :  { %5173 = vpow2.f32 %v1628_v1  ;;  %v1630_v39 = vmul.f32 1.442695, %v1511_v28  ;;  %v1137_v14 = vadd.f32 %v1136_v37, %v5817_v2  ;;  %v1138_v56 = vpop.f32.mrb[113].mxu0  ;;  %v1809_v33 = vmul.f32 %v5162_v45, %v6332_v19 }
 0x1f6   :  { %v5164_v47 = vpop.eup %5163  ;;  %v1139_v13 = vpop.f32.mrb[114].mxu0  ;;  %v7172_v56 = vld [vmem:[#allocation12_spill] sm:$0xff] }
 0x1f7   :  { %v5166_v9 = vpop.eup %5165  ;;  %v1811_v44 = vmul.f32 %v5164_v47, %v6338_v25  ;;  %5175 = vpow2.f32 %v1630_v39  ;;  %v1140_v57 = vadd.f32 %v1139_v13, %v5817_v2  ;;  %v6400_v62 = vadd.f32 %v7171_v7, %v1137_v14  ;;  %v1141_v15 = vpop.f32.mrb[115].mxu0 }
 0x1f8   :  { %v1700_v38 = vadd.f32 1.0, %v5166_v9 }
 0x1f9   :  { %v5168_v46 = vpop.eup %5167  ;;  %v1512_v60 = vsub.f32 0.0, %v6400_v62  ;;  %v6404_v31 = vadd.f32 %v6113_v36, %v1140_v57  ;;  %v1872_v18 = vpack.c.bf16 %v1811_v44, %v1809_v33 }
 0x1fa   :  { %5177 = vrcp.f32 %v1700_v38  ;;  %v1701_v19 = vadd.f32 1.0, %v5168_v46 }
 0x1fb   :  { %v1632_v17 = vmul.f32 1.442695, %v1512_v60  ;;  %v1513_v25 = vsub.f32 0.0, %v6404_v31  ;;  %4411 = vmatprep.subr.bf16.mxu1 %v1872_v18 }
 0x1fc   :  { %v5170_v41 = vpop.eup %5169  ;;  %5179 = vrcp.f32 %v1701_v19  ;;  %v1144_v43 = vpop.f32.mrb[116].mxu0  ;;  %4412 = vmatpush3.bf16.msra.mxu1 %v1864_v0 }
 0x1fd   :  { %5181 = vpow2.f32 %v1632_v17  ;;  %v1634_v5 = vmul.f32 1.442695, %v1513_v25  ;;  %v1145_v1 = vadd.f32 %v1144_v43, %v5817_v2  ;;  %v1146_v36 = vpop.f32.mrb[117].mxu0  ;;  %v1813_v45 = vmul.f32 %v5170_v41, %v6349_v32 }
 0x1fe   :  { %v5172_v28 = vpop.eup %5171  ;;  %v1147_v37 = vpop.f32.mrb[118].mxu0 }
 0x1ff   :  { %v5174_v39 = vpop.eup %5173  ;;  %v1815_v14 = vmul.f32 %v5172_v28, %v6356_v12  ;;  %5183 = vpow2.f32 %v1634_v5  ;;  %v6414_v47 = vadd.f32 %v7172_v56, %v1145_v1  ;;  %v1148_v33 = vadd.f32 %v1147_v37, %v5817_v2  ;;  %v1149_v53 = vpop.f32.mrb[119].mxu0 }
 0x200   :  { %v1702_v50 = vadd.f32 1.0, %v5174_v39 }
 0x201   :  { %v5176_v0 = vpop.eup %5175  ;;  %v1514_v13 = vsub.f32 0.0, %v6414_v47  ;;  %v6419_v9 = vadd.f32 %v6111_v3, %v1148_v33  ;;  %v1873_v44 = vpack.c.bf16 %v1815_v14, %v1813_v45 }
 0x202   :  { %5185 = vrcp.f32 %v1702_v50  ;;  %v1703_v32 = vadd.f32 1.0, %v5176_v0 }
 0x203   :  { %v1636_v57 = vmul.f32 1.442695, %v1514_v13  ;;  %v1515_v12 = vsub.f32 0.0, %v6419_v9  ;;  %4413 = vmatprep.subr.bf16.mxu1 %v1873_v44 }
 0x204   :  { %v5178_v7 = vpop.eup %5177  ;;  %5187 = vrcp.f32 %v1703_v32  ;;  %v1152_v15 = vpop.f32.mrb[120].mxu0  ;;  %4414 = vmatpush3.bf16.msra.mxu1 %v1865_v59 }
 0x205   :  { %5189 = vpow2.f32 %v1636_v57  ;;  %v1638_v38 = vmul.f32 1.442695, %v1515_v12  ;;  %v1153_v46 = vadd.f32 %v1152_v15, %v5817_v2  ;;  %v1154_v3 = vpop.f32.mrb[121].mxu0  ;;  %v1817_v18 = vmul.f32 %v5178_v7, %v6368_v24 }
 0x206   :  { %v5180_v60 = vpop.eup %5179  ;;  %v1155_v19 = vpop.f32.mrb[122].mxu0 }
 0x207   :  { %v5182_v17 = vpop.eup %5181  ;;  %v1819_v25 = vmul.f32 %v5180_v60, %v6374_v16  ;;  %5191 = vpow2.f32 %v1638_v38  ;;  %v1156_v41 = vadd.f32 %v1155_v19, %v5817_v2  ;;  %v6430_v43 = vadd.f32 %v6145_v55, %v1153_v46  ;;  %v1157_v21 = vpop.f32.mrb[123].mxu0 }
 0x208   :  { %v1704_v40 = vadd.f32 1.0, %v5182_v17 }
 0x209   :  { %v5184_v59 = vpop.eup %5183  ;;  %v1516_v5 = vsub.f32 0.0, %v6430_v43  ;;  %v6434_v1 = vadd.f32 %v6154_v11, %v1156_v41  ;;  %v1874_v36 = vpack.c.bf16 %v1819_v25, %v1817_v18 }
 0x20a   :  { %5193 = vrcp.f32 %v1704_v40  ;;  %v1705_v24 = vadd.f32 1.0, %v5184_v59 }
 0x20b   :  { %v1640_v28 = vmul.f32 1.442695, %v1516_v5  ;;  %v1517_v16 = vsub.f32 0.0, %v6434_v1  ;;  %4415 = vmatprep.subr.bf16.mxu1 %v1874_v36 }
 0x20c   :  { %v5186_v45 = vpop.eup %5185  ;;  %5195 = vrcp.f32 %v1705_v24  ;;  %v1160_v37 = vpop.f32.mrb[124].mxu0  ;;  %4416 = vmatpush3.bf16.msra.mxu1 %v1866_v35 }
 0x20d   :  { %5197 = vpow2.f32 %v1640_v28  ;;  %v1642_v55 = vmul.f32 1.442695, %v1517_v16  ;;  %v1161_v39 = vadd.f32 %v1160_v37, %v5817_v2  ;;  %v1162_v11 = vpop.f32.mrb[125].mxu0  ;;  %v1821_v56 = vmul.f32 %v5186_v45, %v6385_v54 }
 0x20e   :  { %v5188_v14 = vpop.eup %5187  ;;  %v1163_v33 = vpop.f32.mrb[126].mxu0  ;;  %v7173_v11 = vld [vmem:[#allocation2_spill] sm:$0xff] }
 0x20f   :  { %v5190_v53 = vpop.eup %5189  ;;  %v1823_v50 = vmul.f32 %v5188_v14, %v6392_v23  ;;  %5199 = vpow2.f32 %v1642_v55  ;;  %v1450_v0 = vadd.f32 %v6142_v30, %v1161_v39  ;;  %v1164_v13 = vadd.f32 %v1163_v33, %v5817_v2  ;;  %v1165_v44 = vpop.f32.mrb[127].mxu0  ;;  %v4954_v39 = vld [vmem:[%s7137_s3 + $0x8] sm:$0xff]   ;;  %s5373_s3 = smov 96  }
 0x210   :  { %v1706_v22 = vadd.f32 1.0, %v5190_v53  ;;  %v6483_v14 = vsub.s32 0, %v7173_v11 }
 0x211   :  { %v5192_v51 = vpop.eup %5191  ;;  %v1518_v35 = vsub.f32 0.0, %v1450_v0  ;;  %v1453_v32 = vadd.f32 %v6152_v26, %v1164_v13  ;;  %v1875_v57 = vpack.c.bf16 %v1823_v50, %v1821_v56  ;;  %v6488_v56 = vld [vmem:[%s7135_s5] sm:$0xff] }
 0x212   :  { %5201 = vrcp.f32 %v1706_v22  ;;  %v1707_v12 = vadd.f32 1.0, %v5192_v51  ;;  %v6492_v33 = vrot.slane %v6488_v56, %v6483_v14 }
 0x213   :  { %v1644_v7 = vmul.f32 1.442695, %v1518_v35  ;;  %v1519_v54 = vsub.f32 0.0, %v1453_v32  ;;  %4417 = vmatprep.subr.bf16.mxu1 %v1875_v57 }
 0x214   :  { %v5194_v15 = vpop.eup %5193  ;;  %5203 = vrcp.f32 %v1707_v12  ;;  %4418 = vmatpush3.bf16.msra.mxu1 %v1867_v29  ;;  %2098 = vrot.lane.b32.xlu1 %v6492_v33, %s5372_s7 }
 0x215   :  { %5205 = vpow2.f32 %v1644_v7  ;;  %v1646_v30 = vmul.f32 1.442695, %v1519_v54  ;;  %v1825_v46 = vmul.f32 %v5194_v15, %v6400_v62 }
 0x216   :  { %v5196_v23 = vpop.eup %5195 }
 0x217   :  { %v5198_v38 = vpop.eup %5197  ;;  %v1827_v26 = vmul.f32 %v5196_v23, %v6404_v31  ;;  %5207 = vpow2.f32 %v1646_v30 }
 0x218   :  { %v1708_v3 = vadd.f32 1.0, %v5198_v38  ;;  %2234 = vrot.lane.b32.xlu1 %v5817_v2, %s5372_s7 }
 0x219   :  { %v5200_v60 = vpop.eup %5199  ;;  %v1876_v18 = vpack.c.bf16 %v1827_v26, %v1825_v46 }
 0x21a   :  { %5209 = vrcp.f32 %v1708_v3  ;;  %v1709_v19 = vadd.f32 1.0, %v5200_v60 }
 0x21b   :  { %4419 = vmatprep.subr.bf16.mxu1 %v1876_v18 }
 0x21c   :  { %v5202_v17 = vpop.eup %5201  ;;  %5211 = vrcp.f32 %v1709_v19  ;;  %4420 = vmatpush3.bf16.msra.mxu1 %v1868_v48 }
 0x21d   :  { %v1829_v29 = vmul.f32 %v5202_v17, %v6414_v47 }
 0x21e   :  { %v5204_v8 = vpop.eup %5203 }
 0x21f   :  { %v5206_v63 = vpop.eup %5205  ;;  %v1831_v62 = vmul.f32 %v5204_v8, %v6419_v9 }
 0x220   :  { %v1710_v31 = vadd.f32 1.0, %v5206_v63 }
 0x221   :  { %v5208_v25 = vpop.eup %5207  ;;  %v1877_v41 = vpack.c.bf16 %v1831_v62, %v1829_v29 }
 0x222   :  { %5213 = vrcp.f32 %v1710_v31  ;;  %v1711_v21 = vadd.f32 1.0, %v5208_v25 }
 0x223   :  { %4421 = vmatprep.subr.bf16.mxu1 %v1877_v41 }
 0x224   :  { %v5210_v40 = vpop.eup %5209  ;;  %5215 = vrcp.f32 %v1711_v21  ;;  %4422 = vmatpush3.bf16.msra.mxu1 %v1869_v42  ;;  %v4952_v42 = vld [vmem:[%s7136_s2 + $0x28] ss:$16 sps:$4 sm:$0xff]  }
 0x225   :  { %v1833_v52 = vmul.f32 %v5210_v40, %v6430_v43 }
 0x226   :  { %v5212_v6 = vpop.eup %5211 }
 0x227   :  { %v1835_v48 = vmul.f32 %v5212_v6, %v6434_v1 }
 0x229   :  { %v1878_v47 = vpack.c.bf16 %v1835_v48, %v1833_v52 }
 0x22b   :  { %4423 = vmatprep.subr.bf16.mxu1 %v1878_v47 }
 0x22c   :  { %v5214_v9 = vpop.eup %5213  ;;  %4424 = vmatpush3.bf16.msra.mxu1 %v1870_v10 }
 0x22d   :  { %v1837_v5 = vmul.f32 %v5214_v9, %v1450_v0 }
 0x22e   :  { %v5216_v59 = vpop.eup %5215 }
 0x22f   :  { %v1839_v36 = vmul.f32 %v5216_v59, %v1453_v32 }
 0x231   :  { %v1879_v24 = vpack.c.bf16 %v1839_v36, %v1837_v5 }
 0x233   :  { %4425 = vmatprep.subr.bf16.mxu1 %v1879_v24 }
 0x234   :  { %4426 = vmatpush3.bf16.msra.mxu1 %v1871_v58 }
 0x235   :  { %4585 = vmatprep.subr.bf16.mxu1 %v4953_v27 }
 0x237   :  { %2002 = vmatmul.mubr.bf16.vlgmr.msra.gmra.mrb[72].mxu1 %v4947_v49 }
 0x238   :  { %2009 = vmatprep.mubr.bf16.mxu1 %v4950_v34  ;;  %4586 = vmatpush3.bf16.msra.mxu1 %v4953_v27 }
 0x239   :  { %4587 = vmatprep.subr.bf16.mxu1 %v4954_v39 }
 0x23c   :  { %4588 = vmatpush3.bf16.msra.mxu1 %v4954_v39 }
 0x23f   :  { %2010 = vmatmul.mubr.bf16.gmra.mrb[76].mxu1 %v4952_v42 }
 0x286   :  { %v2099_v8 = vpop.permute.xlu1 %2098 }
 0x28a   :  { %v4399_v4 = vpop.f32.mrb[64].mxu1  ;;  %v2235_v47 = vpop.permute.xlu1 %2234 }
 0x28b   :  { %v4400_v61 = vpop.f32.mrb[65].mxu1 }
 0x28c   :  { %v4401_v10 = vadd.f32 %v4400_v61, %v4399_v4  ;;  %v4402_v43 = vpop.f32.mrb[66].mxu1 }
 0x28d   :  { %v4403_v1 = vpop.f32.mrb[67].mxu1 }
 0x28e   :  { %v4404_v28 = vadd.f32 %v4403_v1, %v4402_v43 }
 0x292   :  { %v4405_v20 = vpop.f32.mrb[68].mxu1 }
 0x293   :  { %v4406_v58 = vpop.f32.mrb[69].mxu1 }
 0x294   :  { %v4407_v16 = vadd.f32 %v4406_v58, %v4405_v20  ;;  %v4408_v45 = vpop.f32.mrb[70].mxu1 }
 0x295   :  { %v4409_v37 = vpop.f32.mrb[71].mxu1 }
 0x296   :  { %v4410_v55 = vadd.f32 %v4409_v37, %v4408_v45 }
 0x30a   :  { %v4427_v53 = vpop.f32.mrb[72].mxu1 }
 0x30b   :  { %v4428_v50 = vpop.f32.mrb[73].mxu1 }
 0x30c   :  { %v4429_v0 = vadd.f32 %v4428_v50, %v4427_v53  ;;  %v4430_v13 = vpop.f32.mrb[74].mxu1 }
 0x30d   :  { %v4431_v44 = vpop.f32.mrb[75].mxu1 }
 0x30e   :  { %v6498_v22 = vadd.f32 %v4429_v0, %v4401_v10  ;;  %v4432_v51 = vadd.f32 %v4431_v44, %v4430_v13 }
 0x310   :  { %v6500_v35 = vadd.f32 %v4432_v51, %v4404_v28  ;;  %v2109_v28 = vsub.s32 6, %v7173_v11 }
 0x312   :  { %v2018_v32 = vpack.c.bf16 %v6500_v35, %v6498_v22  ;;  %v4433_v57 = vpop.f32.mrb[76].mxu1  ;;  %v6576_v27 = vrot.slane %v6488_v56, %v2109_v28 }
 0x313   :  { %v4434_v12 = vpop.f32.mrb[77].mxu1 }
 0x314   :  { %v4435_v7 = vadd.f32 %v4434_v12, %v4433_v57  ;;  %v4436_v54 = vpop.f32.mrb[78].mxu1  ;;  %4589 = vmatprep.mubr.msk.bf16.mxu1 %vm781_vm0, %v2018_v32 }
 0x315   :  { %v4437_v15 = vpop.f32.mrb[79].mxu1 }
 0x316   :  { %v6505_v30 = vadd.f32 %v4435_v7, %v4407_v16  ;;  %v4438_v23 = vadd.f32 %v4437_v15, %v4436_v54 }
 0x318   :  { %v6507_v38 = vadd.f32 %v4438_v23, %v4410_v55 }
 0x31a   :  { %v2019_v46 = vpack.c.bf16 %v6507_v38, %v6505_v30 }
 0x31c   :  { %4590 = vmatmul.mubr.msk.bf16.vlgmr.msra.gmra.mrb[80].mxu1 %vm781_vm0, %v2019_v46 }
 0x3ef   :  { %v4591_v26 = vpop.f32.mrb[80].mxu1 }
 0x3f0   :  { %v2080_v3 = vpop.f32.mrb[81].mxu1  ;;  %v6526_v25 = vadd.f32 %v4591_v26, %v6492_v33 }
 0x3f1   :  { %v6513_v60 = vadd.f32 %v2080_v3, %v6492_v33  ;;  %v4592_v18 = vpop.f32.mrb[82].mxu1 }
 0x3f2   :  { %v2083_v19 = vpop.f32.mrb[83].mxu1  ;;  %v6519_v63 = vadd.f32 %v4592_v18, %v6492_v33  ;;  %v2103_v5 = vmul.f32 %v2099_v8, %v6526_v25  ;;  %v2239_v42 = vmul.f32 %v2235_v47, %v6526_v25 }
 0x3f3   :  { %v6516_v17 = vadd.f32 %v2083_v19, %v6492_v33  ;;  %v2101_v62 = vmul.f32 %v2099_v8, %v6513_v60  ;;  %v2237_v36 = vmul.f32 %v2235_v47, %v6513_v60 }
 0x3f4   :  { %v2096_v21 = vpack.c.bf16 %v6519_v63, %v6526_v25  ;;  %v2104_v9 = vmul.f32 %v2099_v8, %v6519_v63  ;;  %v2240_v34 = vmul.f32 %v2235_v47, %v6519_v63 }
 0x3f5   :  { %v2095_v29 = vpack.c.bf16 %v6516_v17, %v6513_v60  ;;  %v2102_v31 = vmul.f32 %v2099_v8, %v6516_v17  ;;  %v2238_v59 = vmul.f32 %v2235_v47, %v6516_v17 }
 0x3f6   :  { %v2106_v24 = vpack.c.bf16 %v2104_v9, %v2103_v5  ;;  %v2242_v4 = vpack.c.bf16 %v2240_v34, %v2239_v42 }
 0x3f7   :  { %2113 = vrot.lane.b32.xlu0 %v2095_v29, %s5373_s3  ;;  %v2105_v41 = vpack.c.bf16 %v2102_v31, %v2101_v62  ;;  %v2241_v49 = vpack.c.bf16 %v2238_v59, %v2237_v36 }
 0x3f9   :  { %4597 = vmatprep.mubr.msk.bf16.mxu1 %vm781_vm0, %v2105_v41 }
 0x3fb   :  { %2115 = vrot.lane.b32.xlu0 %v2096_v21, %s5373_s3 }
 0x469   :  { %v6533_v40 = vpop.permute.xlu0 %2113 }
 0x46a   :  { %4773 = vmatprep.subr.msk.bf16.mxu1 %vm781_vm0, %v6533_v40  ;;  %4783 = vmatprep.subr.msk.bf16.mxu0 %vm781_vm0, %v6533_v40  ;;  %v6541_v6 = vsel %vm781_vm0, %v6533_v40, 0 }
 0x46b   :  { %4594 = vmatpush3.bf16.xpose.msra.mxu1 %v6541_v6  ;;  %4674 = vmatpush3.bf16.xpose.msra.mxu0 %v6541_v6 }
 0x46d   :  { %v6545_v52 = vpop.permute.xlu0 %2115 }
 0x46e   :  { %4774 = vmatprep.subr.msk.bf16.mxu1 %vm781_vm0, %v6545_v52  ;;  %4784 = vmatprep.subr.msk.bf16.mxu0 %vm781_vm0, %v6545_v52  ;;  %v6553_v48 = vsel %vm781_vm0, %v6545_v52, 0 }
 0x473   :  { %4596 = vmatpush3.bf16.xpose.msra.mxu1 %v6553_v48  ;;  %4676 = vmatpush3.bf16.xpose.msra.mxu0 %v6553_v48 }
 0x474   :  { %4775 = vmatprep.subr.msk.bf16.mxu1 %vm781_vm0, %v6533_v40  ;;  %4787 = vmatprep.subr.msk.bf16.mxu0 %vm781_vm0, %v6533_v40 }
 0x47a   :  { %4598 = vmatmul.mubr.msk.bf16.vlgmr.msra.gmra.mrb[84].mxu1 %vm781_vm0, %v2106_v24 }
 0x47b   :  { %4602 = vmatpush3.bf16.xpose.msra.mxu1 %v6541_v6  ;;  %4605 = vmatprep.mubr.msk.bf16.mxu1 %vm781_vm0, %v2241_v49 }
 0x47c   :  { %4776 = vmatprep.subr.msk.bf16.mxu1 %vm781_vm0, %v6545_v52 }
 0x483   :  { %4604 = vmatpush3.bf16.xpose.msra.mxu1 %v6553_v48 }
 0x48a   :  { %4606 = vmatmul.mubr.msk.bf16.vlgmr.msra.gmra.mrb[88].mxu1 %vm781_vm0, %v2242_v4 }
 0x54d   :  { %v4599_v61 = vpop.f32.mrb[84].mxu1 }
 0x54e   :  { %v2163_v10 = vpop.f32.mrb[85].mxu1  ;;  %v2172_v51 = vadd.f32 %v4599_v61, %v6576_v27 }
 0x54f   :  { %v4600_v43 = vpop.f32.mrb[86].mxu1  ;;  %v2164_v50 = vadd.f32 %v2163_v10, %v6576_v27 }
 0x550   :  { %v2166_v1 = vpop.f32.mrb[87].mxu1  ;;  %v2184_v7 = vsel %vm781_vm0, %v2172_v51, -inf  ;;  %v2175_v54 = vadd.f32 %v4600_v43, %v6576_v27 }
 0x551   :  { %v2178_v32 = vsel %vm781_vm0, %v2164_v50, -inf  ;;  %v2167_v57 = vadd.f32 %v2166_v1, %v6576_v27 }
 0x552   :  { %v2187_v23 = vsel %vm781_vm0, %v2175_v54, -inf }
 0x553   :  { %v2181_v15 = vsel %vm781_vm0, %v2167_v57, -inf }
 0x55d   :  { %v4607_v20 = vpop.f32.mrb[88].mxu1 }
 0x55e   :  { %v2283_v58 = vpop.f32.mrb[89].mxu1  ;;  %v6582_v55 = vadd.f32 %v4607_v20, %v6576_v27 }
 0x55f   :  { %v6579_v16 = vadd.f32 %v2283_v58, %v6576_v27  ;;  %v4608_v45 = vpop.f32.mrb[90].mxu1 }
 0x560   :  { %v2286_v37 = vpop.f32.mrb[91].mxu1  ;;  %v2295_v13 = vadd.f32 %v4608_v45, %v6576_v27  ;;  %v2304_v44 = vsel %vm781_vm0, %v6582_v55, -inf }
 0x561   :  { %v2287_v39 = vadd.f32 %v2286_v37, %v6576_v27  ;;  %v2298_v53 = vsel %vm781_vm0, %v6579_v16, -inf }
 0x562   :  { %2299 = vmax.xlane.f32.xlu0 %v2298_v53  ;;  %v2307_v12 = vsel %vm781_vm0, %v2295_v13, -inf }
 0x563   :  { %v2301_v0 = vsel %vm781_vm0, %v2287_v39, -inf }
 0x564   :  { %2302 = vmax.xlane.f32.xlu1 %v2301_v0 }
 0x566   :  { %2305 = vmax.xlane.f32.xlu0 %v2304_v44 }
 0x568   :  { %2179 = vmax.xlane.f32.xlu1 %v2178_v32 }
 0x56a   :  { %2308 = vmax.xlane.f32.xlu0 %v2307_v12 }
 0x56c   :  { %2185 = vmax.xlane.f32.xlu1 %v2184_v7 }
 0x56e   :  { %2182 = vmax.xlane.f32.xlu0 %v2181_v15 }
 0x572   :  { %2188 = vmax.xlane.f32.xlu0 %v2187_v23 }
 0x57d   :  { %2344 = vrot.lane.b32.xlu1 %v5817_v2, %s5373_s3 }
 0x588   :  { %2224 = vrot.lane.b32.xlu0 %v6492_v33, %s5373_s3 }
 0x5ef   :  { %v2300_v46 = vpop.xlane.xlu0 %2299 }
 0x5f0   :  { %v2310_v53 = vsub.f32 %v6579_v16, %v2300_v46 }
 0x5f1   :  { %v2303_v26 = vpop.xlane.xlu1 %2302 }
 0x5f2   :  { %v2311_v33 = vsub.f32 %v2287_v39, %v2303_v26 }
 0x5f3   :  { %v2306_v3 = vpop.xlane.xlu0 %2305 }
 0x5f4   :  { %v2316_v49 = vmul.f32 1.442695, %v2311_v33  ;;  %v2312_v45 = vsub.f32 %v6582_v55, %v2306_v3 }
 0x5f5   :  { %v2180_v18 = vpop.xlane.xlu1 %2179 }
 0x5f6   :  { %v2190_v1 = vsub.f32 %v2164_v50, %v2180_v18  ;;  %v2318_v0 = vmul.f32 1.442695, %v2312_v45  ;;  %v2314_v50 = vmul.f32 1.442695, %v2310_v53 }
 0x5f7   :  { %v2309_v19 = vpop.xlane.xlu0 %2308 }
 0x5f8   :  { %v2313_v2 = vsub.f32 %v2295_v13, %v2309_v19  ;;  %v2194_v37 = vmul.f32 1.442695, %v2190_v1 }
 0x5f9   :  { %v2186_v8 = vpop.xlane.xlu1 %2185 }
 0x5fa   :  { %v2320_v24 = vmul.f32 1.442695, %v2313_v2  ;;  %v2192_v61 = vsub.f32 %v2172_v51, %v2186_v8 }
 0x5fb   :  { %v2183_v29 = vpop.xlane.xlu0 %2182 }
 0x5fc   :  { %v2191_v31 = vsub.f32 %v2167_v57, %v2183_v29  ;;  %v2198_v28 = vmul.f32 1.442695, %v2192_v61 }
 0x5fd   :  { %v2345_v62 = vpop.permute.xlu1 %2344 }
 0x5fe   :  { %v2347_v41 = vmul.f32 %v2345_v62, %v6513_v60  ;;  %v2348_v21 = vmul.f32 %v2345_v62, %v6516_v17  ;;  %v2196_v5 = vmul.f32 1.442695, %v2191_v31  ;;  %v2349_v57 = vmul.f32 %v2345_v62, %v6526_v25 }
 0x5ff   :  { %v2189_v47 = vpop.xlane.xlu0 %2188  ;;  %v2350_v16 = vmul.f32 %v2345_v62, %v6519_v63 }
 0x600   :  { %v2193_v9 = vsub.f32 %v2175_v54, %v2189_v47  ;;  %v2351_v59 = vpack.c.bf16 %v2348_v21, %v2347_v41  ;;  %v2481_v54 = vsub.s32 2, %v7173_v11 }
 0x601   :  { %v2352_v15 = vpack.c.bf16 %v2350_v16, %v2349_v57 }
 0x602   :  { %v2200_v36 = vmul.f32 1.442695, %v2193_v9  ;;  %2355 = vrot.lane.b32.xlu1 %v2351_v59, %s5374_s8  ;;  %v6637_v46 = vrot.slane %v6488_v56, %v2481_v54 }
 0x603   :  { %v2225_v26 = vpop.permute.xlu0 %2224 }
 0x604   :  { %5217 = vpow2.f32 %v2200_v36  ;;  %v2227_v3 = vmul.f32 %v2225_v26, %v6513_v60  ;;  %v2228_v18 = vmul.f32 %v2225_v26, %v6516_v17  ;;  %v2229_v8 = vmul.f32 %v2225_v26, %v6526_v25 }
 0x605   :  { %5219 = vpow2.f32 %v2196_v5  ;;  %v2230_v29 = vmul.f32 %v2225_v26, %v6519_v63 }
 0x606   :  { %5221 = vpow2.f32 %v2320_v24  ;;  %v2231_v19 = vpack.c.bf16 %v2228_v18, %v2227_v3 }
 0x607   :  { %5223 = vpow2.f32 %v2316_v49  ;;  %v2232_v62 = vpack.c.bf16 %v2230_v29, %v2229_v8 }
 0x608   :  { %5225 = vpow2.f32 %v2198_v28 }
 0x609   :  { %5227 = vpow2.f32 %v2194_v37 }
 0x60a   :  { %5229 = vpow2.f32 %v2318_v0 }
 0x60b   :  { %5231 = vpow2.f32 %v2314_v50 }
 0x60e   :  { %v6607_v34 = vpop.eup %5217 }
 0x60f   :  { %v2211_v42 = vsel %vm781_vm0, %v6607_v34, 0.0  ;;  %v6611_v4 = vpop.eup %5219 }
 0x610   :  { %2212 = vadd.xlane.f32.xlu0 %v2211_v42  ;;  %v2205_v10 = vsel %vm781_vm0, %v6611_v4, 0.0  ;;  %v6615_v43 = vpop.eup %5221 }
 0x611   :  { %v2331_v20 = vsel %vm781_vm0, %v6615_v43, 0.0  ;;  %v6619_v58 = vpop.eup %5223 }
 0x612   :  { %v2325_v39 = vsel %vm781_vm0, %v6619_v58, 0.0  ;;  %v6625_v13 = vpop.eup %5225 }
 0x613   :  { %v2208_v44 = vsel %vm781_vm0, %v6625_v13, 0.0  ;;  %v5228_v55 = vpop.eup %5227 }
 0x614   :  { %2206 = vadd.xlane.f32.xlu0 %v2205_v10  ;;  %v2202_v51 = vsel %vm781_vm0, %v5228_v55, 0.0  ;;  %v5230_v32 = vpop.eup %5229 }
 0x615   :  { %v2328_v12 = vsel %vm781_vm0, %v5230_v32, 0.0  ;;  %v5232_v7 = vpop.eup %5231 }
 0x616   :  { %v2322_v23 = vsel %vm781_vm0, %v5232_v7, 0.0 }
 0x618   :  { %2332 = vadd.xlane.f32.xlu0 %v2331_v20 }
 0x61c   :  { %2326 = vadd.xlane.f32.xlu0 %v2325_v39 }
 0x626   :  { %2209 = vadd.xlane.f32.xlu1 %v2208_v44 }
 0x62a   :  { %2203 = vadd.xlane.f32.xlu1 %v2202_v51 }
 0x62e   :  { %2329 = vadd.xlane.f32.xlu1 %v2328_v12 }
 0x632   :  { %2357 = vrot.lane.b32.xlu0 %v2352_v15, %s5374_s8  ;;  %2323 = vadd.xlane.f32.xlu1 %v2322_v23 }
 0x636   :  { %2484 = vrot.lane.b32.xlu0 %v6637_v46, %s5372_s7 }
 0x643   :  { %2418 = vrot.lane.b32.xlu1 %v2231_v19, %s5374_s8 }
 0x647   :  { %2420 = vrot.lane.b32.xlu1 %v2232_v62, %s5374_s8 }
 0x674   :  { %v2356_v31 = vpop.permute.xlu1 %2355 }
 0x675   :  { %4609 = vmatprep.subr.bf16.mxu1 %v2356_v31 }
 0x676   :  { %4610 = vmatpush3.bf16.msra.mxu1 %v2356_v31 }
 0x69d   :  { %v2213_v41 = vpop.xlane.xlu0 %2212 }
 0x6a1   :  { %v2207_v21 = vpop.xlane.xlu0 %2206 }
 0x6a2   :  { %5233 = vrcp.f32 %v2207_v21 }
 0x6a5   :  { %v2333_v47 = vpop.xlane.xlu0 %2332 }
 0x6a9   :  { %v2327_v9 = vpop.xlane.xlu0 %2326 }
 0x6aa   :  { %5235 = vrcp.f32 %v2327_v9 }
 0x6ac   :  { %v5234_v49 = vpop.eup %5233 }
 0x6ad   :  { %v2358_v59 = vpop.permute.xlu0 %2357  ;;  %v2217_v50 = vmul.f32 %v5234_v49, %v6611_v4 }
 0x6ae   :  { %4611 = vmatprep.subr.bf16.mxu1 %v2358_v59 }
 0x6af   :  { %4612 = vmatpush3.bf16.msra.mxu1 %v2358_v59 }
 0x6b1   :  { %v2485_v16 = vpop.permute.xlu0 %2484 }
 0x6b2   :  { %v2487_v4 = vmul.f32 %v2485_v16, %v6513_v60  ;;  %v2490_v15 = vmul.f32 %v2485_v16, %v6519_v63 }
 0x6b3   :  { %v2210_v2 = vpop.xlane.xlu1 %2209 }
 0x6b4   :  { %v5236_v42 = vpop.eup %5235 }
 0x6b5   :  { %v2337_v37 = vmul.f32 %v5236_v42, %v6619_v58 }
 0x6b7   :  { %v2204_v5 = vpop.xlane.xlu1 %2203 }
 0x6bb   :  { %v2330_v36 = vpop.xlane.xlu1 %2329 }
 0x6bc   :  { %5237 = vrcp.f32 %v2330_v36 }
 0x6bd   :  { %5239 = vrcp.f32 %v2204_v5 }
 0x6be   :  { %5241 = vrcp.f32 %v2333_v47 }
 0x6bf   :  { %v2324_v33 = vpop.xlane.xlu1 %2323 }
 0x6c0   :  { %5243 = vrcp.f32 %v2324_v33 }
 0x6c1   :  { %5245 = vrcp.f32 %v2210_v2 }
 0x6c2   :  { %5247 = vrcp.f32 %v2213_v41 }
 0x6c3   :  { %v2419_v24 = vpop.permute.xlu1 %2418 }
 0x6c4   :  { %4617 = vmatprep.subr.bf16.mxu1 %v2419_v24 }
 0x6c6   :  { %v5238_v61 = vpop.eup %5237 }
 0x6c7   :  { %v5240_v10 = vpop.eup %5239  ;;  %v2339_v20 = vmul.f32 %v5238_v61, %v5230_v32  ;;  %v2421_v57 = vpop.permute.xlu1 %2420 }
 0x6c8   :  { %v5242_v1 = vpop.eup %5241  ;;  %v2215_v39 = vmul.f32 %v5240_v10, %v5228_v55  ;;  %v2488_v55 = vmul.f32 %v2485_v16, %v6516_v17 }
 0x6c9   :  { %v2341_v53 = vmul.f32 %v5242_v1, %v6615_v43 }
 0x6ca   :  { %v5244_v28 = vpop.eup %5243  ;;  %v2222_v51 = vpack.c.bf16 %v2217_v50, %v2215_v39  ;;  %v2491_v54 = vpack.c.bf16 %v2488_v55, %v2487_v4 }
 0x6cb   :  { %v2335_v45 = vmul.f32 %v5244_v28, %v5232_v7  ;;  %v2343_v44 = vpack.c.bf16 %v2341_v53, %v2339_v20  ;;  %v5246_v32 = vpop.eup %5245  ;;  %v2672_v28 = vsub.s32 3, %v7173_v11 }
 0x6cc   :  { %v5248_v58 = vpop.eup %5247  ;;  %v2219_v43 = vmul.f32 %v5246_v32, %v6625_v13  ;;  %v2489_v13 = vmul.f32 %v2485_v16, %v6526_v25 }
 0x6cd   :  { %v2342_v0 = vpack.c.bf16 %v2337_v37, %v2335_v45  ;;  %v2221_v12 = vmul.f32 %v5248_v58, %v6607_v34  ;;  %v6683_v39 = vrot.slane %v6488_v56, %v2672_v28 }
 0x6ce   :  { %v2492_v23 = vpack.c.bf16 %v2490_v15, %v2489_v13 }
 0x6cf   :  { %4613 = vmatprep.mubr.msk.bf16.mxu1 %vm781_vm0, %v2342_v0  ;;  %v2223_v7 = vpack.c.bf16 %v2221_v12, %v2219_v43 }
 0x6d0   :  { %4614 = vmatmul.mubr.msk.bf16.vlgmr.msra.gmra.mrb[92].mxu1 %vm781_vm0, %v2343_v44 }
 0x6d1   :  { %4618 = vmatpush3.bf16.msra.mxu1 %v2419_v24  ;;  %4621 = vmatprep.mubr.msk.bf16.mxu1 %vm781_vm0, %v2222_v51 }
 0x6d2   :  { %4619 = vmatprep.subr.bf16.mxu1 %v2421_v57 }
 0x6d5   :  { %4620 = vmatpush3.bf16.msra.mxu1 %v2421_v57 }
 0x6d6   :  { %4777 = vmatprep.subr.msk.bf16.mxu1 %vm781_vm0, %v6533_v40 }
 0x6dc   :  { %4622 = vmatmul.mubr.msk.bf16.vlgmr.msra.gmra.mrb[92].mxu1 %vm781_vm0, %v2223_v7 }
 0x6dd   :  { %4629 = vmatprep.mubr.msk.bf16.mxu1 %vm781_vm0, %v2491_v54 }
 0x6de   :  { %4626 = vmatpush3.bf16.xpose.msra.mxu1 %v6541_v6 }
 0x6df   :  { %4778 = vmatprep.subr.msk.bf16.mxu1 %vm781_vm0, %v6545_v52 }
 0x6e6   :  { %4628 = vmatpush3.bf16.xpose.msra.mxu1 %v6553_v48 }
 0x6ed   :  { %4630 = vmatmul.mubr.msk.bf16.vlgmr.msra.gmra.mrb[96].mxu1 %vm781_vm0, %v2492_v23 }
 0x7c0   :  { %v4631_v34 = vpop.f32.mrb[96].mxu1 }
 0x7c1   :  { %v2533_v26 = vpop.f32.mrb[97].mxu1  ;;  %v2542_v31 = vadd.f32 %v4631_v34, %v6576_v27 }
 0x7c2   :  { %v2534_v3 = vadd.f32 %v2533_v26, %v6576_v27  ;;  %v4632_v18 = vpop.f32.mrb[98].mxu1 }
 0x7c3   :  { %v2536_v19 = vpop.f32.mrb[99].mxu1  ;;  %v2545_v8 = vadd.f32 %v4632_v18, %v6576_v27  ;;  %v2554_v47 = vsel %vm781_vm0, %v2542_v31, -inf }
 0x7c4   :  { %v2537_v29 = vadd.f32 %v2536_v19, %v6576_v27  ;;  %v2548_v62 = vsel %vm781_vm0, %v2534_v3, -inf }
 0x7c5   :  { %2549 = vmax.xlane.f32.xlu1 %v2548_v62  ;;  %v2557_v21 = vsel %vm781_vm0, %v2545_v8, -inf }
 0x7c6   :  { %v2551_v41 = vsel %vm781_vm0, %v2537_v29, -inf }
 0x7c7   :  { %2552 = vmax.xlane.f32.xlu0 %v2551_v41 }
 0x7c9   :  { %2558 = vmax.xlane.f32.xlu1 %v2557_v21 }
 0x7cb   :  { %2555 = vmax.xlane.f32.xlu0 %v2554_v47 }
 0x7e1   :  { %2594 = vrot.lane.b32.xlu0 %v6637_v46, %s5373_s3 }
 0x852   :  { %v2550_v9 = vpop.xlane.xlu1 %2549 }
 0x853   :  { %v2560_v2 = vsub.f32 %v2534_v3, %v2550_v9 }
 0x854   :  { %v2553_v59 = vpop.xlane.xlu0 %2552 }
 0x855   :  { %v2564_v24 = vmul.f32 1.442695, %v2560_v2  ;;  %v2561_v20 = vsub.f32 %v2537_v29, %v2553_v59 }
 0x856   :  { %v2559_v5 = vpop.xlane.xlu1 %2558 }
 0x857   :  { %v2563_v49 = vsub.f32 %v2545_v8, %v2559_v5  ;;  %v2566_v53 = vmul.f32 1.442695, %v2561_v20 }
 0x858   :  { %v2556_v36 = vpop.xlane.xlu0 %2555 }
 0x859   :  { %v2562_v33 = vsub.f32 %v2542_v31, %v2556_v36  ;;  %v2570_v45 = vmul.f32 1.442695, %v2563_v49 }
 0x85b   :  { %v2568_v42 = vmul.f32 1.442695, %v2562_v33 }
 0x85c   :  { %v2595_v61 = vpop.permute.xlu0 %2594 }
 0x85d   :  { %5249 = vpow2.f32 %v2568_v42  ;;  %v2599_v10 = vmul.f32 %v2595_v61, %v6526_v25  ;;  %v2600_v1 = vmul.f32 %v2595_v61, %v6519_v63  ;;  %v2597_v43 = vmul.f32 %v2595_v61, %v6513_v60 }
 0x85e   :  { %5251 = vpow2.f32 %v2564_v24  ;;  %v2598_v4 = vmul.f32 %v2595_v61, %v6516_v17 }
 0x85f   :  { %v2602_v37 = vpack.c.bf16 %v2600_v1, %v2599_v10  ;;  %5253 = vpow2.f32 %v2570_v45 }
 0x860   :  { %5255 = vpow2.f32 %v2566_v53  ;;  %v2601_v55 = vpack.c.bf16 %v2598_v4, %v2597_v43 }
 0x861   :  { %2607 = vrot.lane.b32.xlu0 %v2602_v37, %s5374_s8 }
 0x865   :  { %2675 = vrot.lane.b32.xlu0 %v6683_v39, %s5372_s7 }
 0x867   :  { %v5250_v0 = vpop.eup %5249 }
 0x868   :  { %v2578_v50 = vsel %vm781_vm0, %v5250_v0, 0.0  ;;  %v5252_v44 = vpop.eup %5251 }
 0x869   :  { %2579 = vadd.xlane.f32.xlu1 %v2578_v50  ;;  %v2572_v51 = vsel %vm781_vm0, %v5252_v44, 0.0  ;;  %v5254_v57 = vpop.eup %5253 }
 0x86a   :  { %v2581_v32 = vsel %vm781_vm0, %v5254_v57, 0.0  ;;  %v5256_v16 = vpop.eup %5255 }
 0x86b   :  { %v2575_v58 = vsel %vm781_vm0, %v5256_v16, 0.0 }
 0x86d   :  { %2573 = vadd.xlane.f32.xlu1 %v2572_v51 }
 0x871   :  { %2582 = vadd.xlane.f32.xlu1 %v2581_v32 }
 0x875   :  { %2576 = vadd.xlane.f32.xlu1 %v2575_v58 }
 0x886   :  { %2605 = vrot.lane.b32.xlu1 %v2601_v55, %s5374_s8 }
 0x8d3   :  { %v2608_v15 = vpop.permute.xlu0 %2607 }
 0x8d7   :  { %v2676_v3 = vpop.permute.xlu0 %2675 }
 0x8d8   :  { %v2678_v29 = vmul.f32 %v2676_v3, %v6513_v60  ;;  %v2679_v62 = vmul.f32 %v2676_v3, %v6516_v17  ;;  %v2680_v2 = vmul.f32 %v2676_v3, %v6526_v25  ;;  %v2681_v5 = vmul.f32 %v2676_v3, %v6519_v63 }
 0x8da   :  { %v2682_v59 = vpack.c.bf16 %v2679_v62, %v2678_v29  ;;  %v2683_v36 = vpack.c.bf16 %v2681_v5, %v2680_v2 }
 0x8f6   :  { %v2580_v12 = vpop.xlane.xlu1 %2579 }
 0x8fa   :  { %v2574_v7 = vpop.xlane.xlu1 %2573 }
 0x8fe   :  { %v2583_v54 = vpop.xlane.xlu1 %2582 }
 0x8ff   :  { %5257 = vrcp.f32 %v2583_v54 }
 0x900   :  { %5259 = vrcp.f32 %v2574_v7 }
 0x901   :  { %5261 = vrcp.f32 %v2580_v12 }
 0x902   :  { %v2577_v13 = vpop.xlane.xlu1 %2576 }
 0x903   :  { %5263 = vrcp.f32 %v2577_v13  ;;  %v2863_v13 = vsub.s32 4, %v7173_v11 }
 0x906   :  { %v2606_v23 = vpop.permute.xlu1 %2605 }
 0x907   :  { %4633 = vmatprep.subr.bf16.mxu1 %v2606_v23 }
 0x908   :  { %4634 = vmatpush3.bf16.msra.mxu1 %v2606_v23 }
 0x909   :  { %4635 = vmatprep.subr.bf16.mxu1 %v2608_v15  ;;  %v5258_v34 = vpop.eup %5257 }
 0x90a   :  { %v5260_v26 = vpop.eup %5259  ;;  %v2591_v8 = vmul.f32 %v5258_v34, %v5254_v57  ;;  %v6723_v34 = vrot.slane %v6488_v56, %v2863_v13 }
 0x90b   :  { %v5262_v18 = vpop.eup %5261  ;;  %v2585_v31 = vmul.f32 %v5260_v26, %v5252_v44  ;;  %v3054_v26 = vsub.s32 5, %v7173_v11 }
 0x90c   :  { %4636 = vmatpush3.bf16.msra.mxu1 %v2608_v15  ;;  %v2589_v21 = vmul.f32 %v5262_v18, %v5250_v0 }
 0x90d   :  { %v5264_v19 = vpop.eup %5263  ;;  %4779 = vmatprep.subr.msk.bf16.mxu1 %vm781_vm0, %v6533_v40 }
 0x90e   :  { %v2587_v41 = vmul.f32 %v5264_v19, %v5256_v16  ;;  %v2593_v9 = vpack.c.bf16 %v2591_v8, %v2589_v21  ;;  %v6730_v8 = vrot.slane %v6488_v56, %v3054_v26 }
 0x910   :  { %v2592_v47 = vpack.c.bf16 %v2587_v41, %v2585_v31 }
 0x912   :  { %4637 = vmatprep.mubr.msk.bf16.mxu1 %vm781_vm0, %v2592_v47 }
 0x913   :  { %4638 = vmatmul.mubr.msk.bf16.vlgmr.msra.gmra.mrb[92].mxu1 %vm781_vm0, %v2593_v9 }
 0x914   :  { %4645 = vmatprep.mubr.msk.bf16.mxu1 %vm781_vm0, %v2682_v59 }
 0x915   :  { %4642 = vmatpush3.bf16.xpose.msra.mxu1 %v6541_v6 }
 0x916   :  { %4780 = vmatprep.subr.msk.bf16.mxu1 %vm781_vm0, %v6545_v52 }
 0x91d   :  { %4644 = vmatpush3.bf16.xpose.msra.mxu1 %v6553_v48 }
 0x924   :  { %4646 = vmatmul.mubr.msk.bf16.vlgmr.msra.gmra.mrb[100].mxu1 %vm781_vm0, %v2683_v36 }
 0x9f7   :  { %v4647_v33 = vpop.f32.mrb[100].mxu1 }
 0x9f8   :  { %v2724_v24 = vpop.f32.mrb[101].mxu1  ;;  %v2733_v10 = vadd.f32 %v4647_v33, %v6576_v27 }
 0x9f9   :  { %v2725_v49 = vadd.f32 %v2724_v24, %v6576_v27  ;;  %v4648_v42 = vpop.f32.mrb[102].mxu1 }
 0x9fa   :  { %v2727_v61 = vpop.f32.mrb[103].mxu1  ;;  %v2736_v45 = vadd.f32 %v4648_v42, %v6576_v27  ;;  %v2745_v37 = vsel %vm781_vm0, %v2733_v10, -inf }
 0x9fb   :  { %v2728_v1 = vadd.f32 %v2727_v61, %v6576_v27  ;;  %v2739_v28 = vsel %vm781_vm0, %v2725_v49, -inf }
 0x9fc   :  { %2740 = vmax.xlane.f32.xlu0 %v2739_v28  ;;  %v2748_v53 = vsel %vm781_vm0, %v2736_v45, -inf }
 0x9fd   :  { %v2742_v20 = vsel %vm781_vm0, %v2728_v1, -inf }
 0x9fe   :  { %2743 = vmax.xlane.f32.xlu1 %v2742_v20 }
 0xa00   :  { %2746 = vmax.xlane.f32.xlu0 %v2745_v37 }
 0xa04   :  { %2749 = vmax.xlane.f32.xlu0 %v2748_v53 }
 0xa1a   :  { %2785 = vrot.lane.b32.xlu0 %v6683_v39, %s5373_s3 }
 0xa89   :  { %v2741_v0 = vpop.xlane.xlu0 %2740 }
 0xa8a   :  { %v2751_v50 = vsub.f32 %v2725_v49, %v2741_v0 }
 0xa8b   :  { %v2744_v16 = vpop.xlane.xlu1 %2743 }
 0xa8c   :  { %v2755_v57 = vmul.f32 1.442695, %v2751_v50  ;;  %v2752_v4 = vsub.f32 %v2728_v1, %v2744_v16 }
 0xa8d   :  { %v2747_v44 = vpop.xlane.xlu0 %2746 }
 0xa8e   :  { %v2753_v51 = vsub.f32 %v2733_v10, %v2747_v44  ;;  %v2757_v15 = vmul.f32 1.442695, %v2752_v4 }
 0xa90   :  { %v2759_v32 = vmul.f32 1.442695, %v2753_v51 }
 0xa91   :  { %v2750_v58 = vpop.xlane.xlu0 %2749 }
 0xa92   :  { %5265 = vpow2.f32 %v2759_v32  ;;  %v2754_v43 = vsub.f32 %v2736_v45, %v2750_v58 }
 0xa93   :  { %5267 = vpow2.f32 %v2755_v57 }
 0xa94   :  { %v2761_v55 = vmul.f32 1.442695, %v2754_v43 }
 0xa95   :  { %v2786_v12 = vpop.permute.xlu0 %2785 }
 0xa96   :  { %v2790_v7 = vmul.f32 %v2786_v12, %v6526_v25  ;;  %v2791_v54 = vmul.f32 %v2786_v12, %v6519_v63  ;;  %5269 = vpow2.f32 %v2761_v55  ;;  %v2788_v47 = vmul.f32 %v2786_v12, %v6513_v60 }
 0xa97   :  { %5271 = vpow2.f32 %v2757_v15  ;;  %v2789_v9 = vmul.f32 %v2786_v12, %v6516_v17 }
 0xa98   :  { %v2793_v23 = vpack.c.bf16 %v2791_v54, %v2790_v7 }
 0xa99   :  { %v2792_v56 = vpack.c.bf16 %v2789_v9, %v2788_v47 }
 0xa9a   :  { %2798 = vrot.lane.b32.xlu0 %v2793_v23, %s5374_s8 }
 0xa9c   :  { %v5266_v3 = vpop.eup %5265 }
 0xa9d   :  { %v2769_v18 = vsel %vm781_vm0, %v5266_v3, 0.0  ;;  %v5268_v19 = vpop.eup %5267 }
 0xa9e   :  { %2770 = vadd.xlane.f32.xlu1 %v2769_v18  ;;  %2866 = vrot.lane.b32.xlu0 %v6723_v34, %s5372_s7  ;;  %v2763_v29 = vsel %vm781_vm0, %v5268_v19, 0.0 }
 0xaa0   :  { %v5270_v62 = vpop.eup %5269 }
 0xaa1   :  { %v2772_v31 = vsel %vm781_vm0, %v5270_v62, 0.0  ;;  %v5272_v41 = vpop.eup %5271 }
 0xaa2   :  { %2764 = vadd.xlane.f32.xlu1 %v2763_v29  ;;  %3057 = vrot.lane.b32.xlu0 %v6730_v8, %s5372_s7  ;;  %v2766_v21 = vsel %vm781_vm0, %v5272_v41, 0.0 }
 0xaa6   :  { %2773 = vadd.xlane.f32.xlu1 %v2772_v31 }
 0xaaa   :  { %2767 = vadd.xlane.f32.xlu1 %v2766_v21 }
 0xabb   :  { %2796 = vrot.lane.b32.xlu1 %v2792_v56, %s5374_s8 }
 0xb0c   :  { %v2799_v59 = vpop.permute.xlu0 %2798 }
 0xb10   :  { %v2867_v2 = vpop.permute.xlu0 %2866 }
 0xb11   :  { %v2869_v51 = vmul.f32 %v2867_v2, %v6513_v60  ;;  %v2870_v57 = vmul.f32 %v2867_v2, %v6516_v17  ;;  %v2871_v12 = vmul.f32 %v2867_v2, %v6526_v25  ;;  %v2872_v7 = vmul.f32 %v2867_v2, %v6519_v63 }
 0xb13   :  { %v2873_v55 = vpack.c.bf16 %v2870_v57, %v2869_v51  ;;  %v2874_v54 = vpack.c.bf16 %v2872_v7, %v2871_v12 }
 0xb14   :  { %v3058_v5 = vpop.permute.xlu0 %3057 }
 0xb15   :  { %v3060_v36 = vmul.f32 %v3058_v5, %v6513_v60  ;;  %v3061_v33 = vmul.f32 %v3058_v5, %v6516_v17  ;;  %v3062_v24 = vmul.f32 %v3058_v5, %v6526_v25  ;;  %v3063_v49 = vmul.f32 %v3058_v5, %v6519_v63 }
 0xb17   :  { %v3065_v42 = vpack.c.bf16 %v3063_v49, %v3062_v24  ;;  %v3064_v61 = vpack.c.bf16 %v3061_v33, %v3060_v36 }
 0xb19   :  { %4677 = vmatprep.mubr.msk.bf16.mxu0 %vm781_vm0, %v3064_v61 }
 0xb1a   :  { %4678 = vmatmul.mubr.msk.bf16.vlgmr.msra.gmra.mrb[128].mxu0 %vm781_vm0, %v3065_v42 }
 0xb1b   :  { %4706 = vmatpush3.bf16.xpose.msra.mxu0 %v6541_v6 }
 0xb1c   :  { %4788 = vmatprep.subr.msk.bf16.mxu0 %vm781_vm0, %v6545_v52 }
 0xb23   :  { %4708 = vmatpush3.bf16.xpose.msra.mxu0 %v6553_v48 }
 0xb2b   :  { %v2771_v10 = vpop.xlane.xlu1 %2770 }
 0xb2f   :  { %v2765_v1 = vpop.xlane.xlu1 %2764 }
 0xb33   :  { %v2774_v28 = vpop.xlane.xlu1 %2773 }
 0xb34   :  { %5273 = vrcp.f32 %v2774_v28 }
 0xb35   :  { %5275 = vrcp.f32 %v2765_v1 }
 0xb36   :  { %5277 = vrcp.f32 %v2771_v10 }
 0xb37   :  { %v2768_v20 = vpop.xlane.xlu1 %2767 }
 0xb38   :  { %5279 = vrcp.f32 %v2768_v20 }
 0xb3b   :  { %v2797_v45 = vpop.permute.xlu1 %2796 }
 0xb3c   :  { %4649 = vmatprep.subr.bf16.mxu1 %v2797_v45 }
 0xb3d   :  { %4650 = vmatpush3.bf16.msra.mxu1 %v2797_v45 }
 0xb3e   :  { %4651 = vmatprep.subr.bf16.mxu1 %v2799_v59  ;;  %v5274_v37 = vpop.eup %5273 }
 0xb3f   :  { %v5276_v53 = vpop.eup %5275  ;;  %v2782_v44 = vmul.f32 %v5274_v37, %v5270_v62 }
 0xb40   :  { %v5278_v0 = vpop.eup %5277  ;;  %v2776_v32 = vmul.f32 %v5276_v53, %v5268_v19 }
 0xb41   :  { %4652 = vmatpush3.bf16.msra.mxu1 %v2799_v59  ;;  %v2780_v58 = vmul.f32 %v5278_v0, %v5266_v3 }
 0xb42   :  { %v5280_v50 = vpop.eup %5279  ;;  %4781 = vmatprep.subr.msk.bf16.mxu1 %vm781_vm0, %v6533_v40 }
 0xb43   :  { %v2778_v16 = vmul.f32 %v5280_v50, %v5272_v41  ;;  %v2784_v4 = vpack.c.bf16 %v2782_v44, %v2780_v58 }
 0xb45   :  { %v2783_v43 = vpack.c.bf16 %v2778_v16, %v2776_v32 }
 0xb47   :  { %4653 = vmatprep.mubr.msk.bf16.mxu1 %vm781_vm0, %v2783_v43 }
 0xb48   :  { %4654 = vmatmul.mubr.msk.bf16.vlgmr.msra.gmra.mrb[92].mxu1 %vm781_vm0, %v2784_v4 }
 0xb49   :  { %4661 = vmatprep.mubr.msk.bf16.mxu1 %vm781_vm0, %v2873_v55 }
 0xb4a   :  { %4658 = vmatpush3.bf16.xpose.msra.mxu1 %v6541_v6 }
 0xb4b   :  { %4782 = vmatprep.subr.msk.bf16.mxu1 %vm781_vm0, %v6545_v52 }
 0xb52   :  { %4660 = vmatpush3.bf16.xpose.msra.mxu1 %v6553_v48 }
 0xb59   :  { %4662 = vmatmul.mubr.msk.bf16.vlgmr.msra.gmra.mrb[104].mxu1 %vm781_vm0, %v2874_v54 }
 0xbed   :  { %v4679_v13 = vpop.f32.mrb[128].mxu0 }
 0xbee   :  { %v3106_v15 = vpop.f32.mrb[129].mxu0  ;;  %v3115_v18 = vadd.f32 %v4679_v13, %v6576_v27 }
 0xbef   :  { %v3107_v23 = vadd.f32 %v3106_v15, %v6576_v27  ;;  %v4680_v26 = vpop.f32.mrb[130].mxu0 }
 0xbf0   :  { %v3109_v3 = vpop.f32.mrb[131].mxu0  ;;  %v3127_v29 = vsel %vm781_vm0, %v3115_v18, -inf  ;;  %v3118_v49 = vadd.f32 %v4680_v26, %v6576_v27 }
 0xbf1   :  { %v3121_v19 = vsel %vm781_vm0, %v3107_v23, -inf  ;;  %v3110_v33 = vadd.f32 %v3109_v3, %v6576_v27 }
 0xbf2   :  { %3122 = vmax.xlane.f32.xlu1 %v3121_v19  ;;  %v3130_v61 = vsel %vm781_vm0, %v3118_v49, -inf }
 0xbf3   :  { %v3124_v42 = vsel %vm781_vm0, %v3110_v33, -inf }
 0xbf6   :  { %3128 = vmax.xlane.f32.xlu1 %v3127_v29 }
 0xc2c   :  { %v4663_v62 = vpop.f32.mrb[104].mxu1 }
 0xc2d   :  { %v6769_v31 = vadd.f32 %v4663_v62, %v6576_v27  ;;  %v2915_v41 = vpop.f32.mrb[105].mxu1 }
 0xc2e   :  { %v4664_v21 = vpop.f32.mrb[106].mxu1  ;;  %v6772_v47 = vadd.f32 %v2915_v41, %v6576_v27 }
 0xc2f   :  { %v2918_v9 = vpop.f32.mrb[107].mxu1  ;;  %v2936_v56 = vsel %vm781_vm0, %v6769_v31, -inf  ;;  %v2927_v5 = vadd.f32 %v4664_v21, %v6576_v27 }
 0xc30   :  { %v2919_v59 = vadd.f32 %v2918_v9, %v6576_v27  ;;  %2937 = vmax.xlane.f32.xlu0 %v2936_v56  ;;  %v2930_v36 = vsel %vm781_vm0, %v6772_v47, -inf }
 0xc31   :  { %v2939_v24 = vsel %vm781_vm0, %v2927_v5, -inf }
 0xc32   :  { %v2933_v2 = vsel %vm781_vm0, %v2919_v59, -inf }
 0xc33   :  { %2934 = vmax.xlane.f32.xlu1 %v2933_v2 }
 0xc34   :  { %2931 = vmax.xlane.f32.xlu0 %v2930_v36 }
 0xc38   :  { %2940 = vmax.xlane.f32.xlu0 %v2939_v24 }
 0xc3c   :  { %3125 = vmax.xlane.f32.xlu0 %v3124_v42 }
 0xc40   :  { %3131 = vmax.xlane.f32.xlu0 %v3130_v61 }
 0xc44   :  { %2976 = vrot.lane.b32.xlu1 %v6723_v34, %s5373_s3 }
 0xc56   :  { %3167 = vrot.lane.b32.xlu0 %v6730_v8, %s5373_s3 }
 0xc7f   :  { %v3123_v10 = vpop.xlane.xlu1 %3122 }
 0xc80   :  { %v3133_v1 = vsub.f32 %v3107_v23, %v3123_v10 }
 0xc82   :  { %v3137_v28 = vmul.f32 1.442695, %v3133_v1 }
 0xc83   :  { %v3129_v20 = vpop.xlane.xlu1 %3128 }
 0xc84   :  { %5281 = vpow2.f32 %v3137_v28  ;;  %v3135_v45 = vsub.f32 %v3115_v18, %v3129_v20 }
 0xc86   :  { %v3141_v37 = vmul.f32 1.442695, %v3135_v45 }
 0xc88   :  { %5283 = vpow2.f32 %v3141_v37 }
 0xc8e   :  { %v6790_v53 = vpop.eup %5281 }
 0xc8f   :  { %v3145_v0 = vsel %vm781_vm0, %v6790_v53, 0.0 }
 0xc90   :  { %3146 = vadd.xlane.f32.xlu1 %v3145_v0 }
 0xc92   :  { %v6794_v50 = vpop.eup %5283 }
 0xc93   :  { %v3151_v44 = vsel %vm781_vm0, %v6794_v50, 0.0 }
 0xc94   :  { %3152 = vadd.xlane.f32.xlu1 %v3151_v44  ;;  %v3432_v44 = vsub.s32 7, %v7173_v11 }
 0xcbd   :  { %v2938_v8 = vpop.xlane.xlu0 %2937 }
 0xcbe   :  { %v2944_v19 = vsub.f32 %v6769_v31, %v2938_v8 }
 0xcc0   :  { %v2935_v51 = vpop.xlane.xlu1 %2934  ;;  %v2950_v41 = vmul.f32 1.442695, %v2944_v19 }
 0xcc1   :  { %v2932_v57 = vpop.xlane.xlu0 %2931  ;;  %v2943_v23 = vsub.f32 %v2919_v59, %v2935_v51  ;;  %v6836_v51 = vld [vmem:[%s7135_s5] sm:$0xff] }
 0xcc2   :  { %v2942_v21 = vsub.f32 %v6772_v47, %v2932_v57  ;;  %v6839_v57 = vrot.slane %v6836_v51, %v3432_v44 }
 0xcc3   :  { %v2948_v18 = vmul.f32 1.442695, %v2943_v23 }
 0xcc4   :  { %v2977_v32 = vpop.permute.xlu1 %2976  ;;  %v2946_v31 = vmul.f32 1.442695, %v2942_v21 }
 0xcc5   :  { %v2979_v16 = vmul.f32 %v2977_v32, %v6513_v60  ;;  %v2980_v58 = vmul.f32 %v2977_v32, %v6516_v17  ;;  %v2941_v43 = vpop.xlane.xlu0 %2940  ;;  %v2981_v42 = vmul.f32 %v2977_v32, %v6526_v25  ;;  %v2982_v61 = vmul.f32 %v2977_v32, %v6519_v63 }
 0xcc6   :  { %v2945_v7 = vsub.f32 %v2927_v5, %v2941_v43 }
 0xcc7   :  { %v2983_v4 = vpack.c.bf16 %v2980_v58, %v2979_v16  ;;  %v2984_v1 = vpack.c.bf16 %v2982_v61, %v2981_v42 }
 0xcc8   :  { %v2952_v26 = vmul.f32 1.442695, %v2945_v7 }
 0xcc9   :  { %v3126_v55 = vpop.xlane.xlu0 %3125  ;;  %2987 = vrot.lane.b32.xlu1 %v2983_v4, %s5374_s8 }
 0xcca   :  { %v3134_v12 = vsub.f32 %v3110_v33, %v3126_v55 }
 0xccc   :  { %v3139_v54 = vmul.f32 1.442695, %v3134_v12 }
 0xccd   :  { %v3132_v13 = vpop.xlane.xlu0 %3131 }
 0xcce   :  { %5285 = vpow2.f32 %v3139_v54  ;;  %v3136_v15 = vsub.f32 %v3118_v49, %v3132_v13 }
 0xcd0   :  { %v3143_v3 = vmul.f32 1.442695, %v3136_v15 }
 0xcd1   :  { %v3168_v10 = vpop.permute.xlu0 %3167 }
 0xcd2   :  { %5287 = vpow2.f32 %v3143_v3  ;;  %v3170_v28 = vmul.f32 %v3168_v10, %v6513_v60  ;;  %v3171_v20 = vmul.f32 %v3168_v10, %v6516_v17  ;;  %v3172_v45 = vmul.f32 %v3168_v10, %v6526_v25 }
 0xcd3   :  { %5289 = vpow2.f32 %v2952_v26  ;;  %v3173_v37 = vmul.f32 %v3168_v10, %v6519_v63 }
 0xcd4   :  { %5291 = vpow2.f32 %v2948_v18  ;;  %v3174_v0 = vpack.c.bf16 %v3171_v20, %v3170_v28 }
 0xcd5   :  { %5293 = vpow2.f32 %v2950_v41  ;;  %v3175_v8 = vpack.c.bf16 %v3173_v37, %v3172_v45 }
 0xcd6   :  { %5295 = vpow2.f32 %v2946_v31 }
 0xcd8   :  { %v6802_v29 = vpop.eup %5285 }
 0xcd9   :  { %v3148_v62 = vsel %vm781_vm0, %v6802_v29, 0.0 }
 0xcda   :  { %3149 = vadd.xlane.f32.xlu0 %v3148_v62 }
 0xcdc   :  { %v6807_v9 = vpop.eup %5287 }
 0xcdd   :  { %v3154_v56 = vsel %vm781_vm0, %v6807_v9, 0.0  ;;  %v6811_v59 = vpop.eup %5289 }
 0xcde   :  { %3155 = vadd.xlane.f32.xlu0 %v3154_v56  ;;  %v2963_v2 = vsel %vm781_vm0, %v6811_v59, 0.0  ;;  %v6815_v5 = vpop.eup %5291 }
 0xcdf   :  { %v2957_v47 = vsel %vm781_vm0, %v6815_v5, 0.0  ;;  %v5294_v36 = vpop.eup %5293 }
 0xce0   :  { %v2960_v33 = vsel %vm781_vm0, %v5294_v36, 0.0  ;;  %v5296_v24 = vpop.eup %5295 }
 0xce1   :  { %v2954_v49 = vsel %vm781_vm0, %v5296_v24, 0.0 }
 0xce2   :  { %2964 = vadd.xlane.f32.xlu0 %v2963_v2 }
 0xce6   :  { %2958 = vadd.xlane.f32.xlu0 %v2957_v47 }
 0xced   :  { %2961 = vadd.xlane.f32.xlu1 %v2960_v33 }
 0xcf1   :  { %2955 = vadd.xlane.f32.xlu1 %v2954_v49 }
 0xcfc   :  { %2989 = vrot.lane.b32.xlu0 %v2984_v1, %s5374_s8 }
 0xd00   :  { %3244 = vrot.lane.b32.xlu0 %v6576_v27, %s5372_s7 }
 0xd02   :  { %3178 = vrot.lane.b32.xlu1 %v3174_v0, %s5374_s8 }
 0xd06   :  { %3180 = vrot.lane.b32.xlu1 %v3175_v8, %s5374_s8 }
 0xd0a   :  { %3435 = vrot.lane.b32.xlu1 %v6839_v57, %s5372_s7 }
 0xd1d   :  { %v3147_v32 = vpop.xlane.xlu1 %3146 }
 0xd21   :  { %v3153_v16 = vpop.xlane.xlu1 %3152 }
 0xd3b   :  { %v2988_v58 = vpop.permute.xlu1 %2987 }
 0xd3c   :  { %4665 = vmatprep.subr.bf16.mxu1 %v2988_v58 }
 0xd3d   :  { %4666 = vmatpush3.bf16.msra.mxu1 %v2988_v58 }
 0xd67   :  { %v3150_v43 = vpop.xlane.xlu0 %3149 }
 0xd68   :  { %5297 = vrcp.f32 %v3150_v43 }
 0xd6b   :  { %v3156_v4 = vpop.xlane.xlu0 %3155 }
 0xd6f   :  { %v2965_v55 = vpop.xlane.xlu0 %2964 }
 0xd70   :  { %5299 = vrcp.f32 %v2965_v55 }
 0xd72   :  { %v5298_v23 = vpop.eup %5297 }
 0xd73   :  { %v2959_v12 = vpop.xlane.xlu0 %2958  ;;  %v3160_v33 = vmul.f32 %v5298_v23, %v6802_v29 }
 0xd77   :  { %v2990_v7 = vpop.permute.xlu0 %2989 }
 0xd78   :  { %4667 = vmatprep.subr.bf16.mxu1 %v2990_v7 }
 0xd79   :  { %4668 = vmatpush3.bf16.msra.mxu1 %v2990_v7 }
 0xd7a   :  { %v2962_v54 = vpop.xlane.xlu1 %2961  ;;  %v5300_v26 = vpop.eup %5299 }
 0xd7b   :  { %5301 = vrcp.f32 %v2962_v54  ;;  %v2973_v56 = vmul.f32 %v5300_v26, %v6811_v59  ;;  %v3245_v45 = vpop.permute.xlu0 %3244 }
 0xd7c   :  { %5303 = vrcp.f32 %v2959_v12  ;;  %v3247_v37 = vmul.f32 %v3245_v45, %v6513_v60  ;;  %v3248_v0 = vmul.f32 %v3245_v45, %v6516_v17 }
 0xd7d   :  { %5305 = vrcp.f32 %v3147_v32 }
 0xd7e   :  { %v2956_v13 = vpop.xlane.xlu1 %2955  ;;  %v3251_v32 = vpack.c.bf16 %v3248_v0, %v3247_v37 }
 0xd7f   :  { %5307 = vrcp.f32 %v2956_v13 }
 0xd80   :  { %5309 = vrcp.f32 %v3156_v4 }
 0xd81   :  { %5311 = vrcp.f32 %v3153_v16 }
 0xd82   :  { %v3179_v15 = vpop.permute.xlu1 %3178 }
 0xd83   :  { %4681 = vmatprep.subr.bf16.mxu1 %v3179_v15 }
 0xd85   :  { %v5302_v3 = vpop.eup %5301 }
 0xd86   :  { %v3181_v18 = vpop.permute.xlu1 %3180  ;;  %v5304_v19 = vpop.eup %5303  ;;  %v2971_v21 = vmul.f32 %v5302_v3, %v5294_v36 }
 0xd87   :  { %v5306_v62 = vpop.eup %5305  ;;  %v2969_v47 = vmul.f32 %v5304_v19, %v6815_v5 }
 0xd88   :  { %v3158_v28 = vmul.f32 %v5306_v62, %v6790_v53  ;;  %v2975_v20 = vpack.c.bf16 %v2973_v56, %v2971_v21 }
 0xd89   :  { %v5308_v41 = vpop.eup %5307 }
 0xd8a   :  { %v3436_v31 = vpop.permute.xlu1 %3435  ;;  %v2967_v2 = vmul.f32 %v5308_v41, %v5296_v24  ;;  %v3165_v24 = vpack.c.bf16 %v3160_v33, %v3158_v28  ;;  %v5310_v29 = vpop.eup %5309 }
 0xd8b   :  { %v3438_v49 = vmul.f32 %v3436_v31, %v6513_v60  ;;  %v3439_v42 = vmul.f32 %v3436_v31, %v6516_v17  ;;  %v3440_v61 = vmul.f32 %v3436_v31, %v6526_v25  ;;  %v3441_v10 = vmul.f32 %v3436_v31, %v6519_v63  ;;  %v5312_v5 = vpop.eup %5311 }
 0xd8c   :  { %v2974_v1 = vpack.c.bf16 %v2969_v47, %v2967_v2  ;;  %v3164_v53 = vmul.f32 %v5310_v29, %v6807_v9  ;;  %v3162_v44 = vmul.f32 %v5312_v5, %v6794_v50  ;;  %v3250_v9 = vmul.f32 %v3245_v45, %v6519_v63 }
 0xd8d   :  { %v3443_v36 = vpack.c.bf16 %v3441_v10, %v3440_v61  ;;  %v3442_v59 = vpack.c.bf16 %v3439_v42, %v3438_v49 }
 0xd8e   :  { %4669 = vmatprep.mubr.msk.bf16.mxu1 %vm781_vm0, %v2974_v1  ;;  %v3166_v8 = vpack.c.bf16 %v3164_v53, %v3162_v44 }
 0xd8f   :  { %4670 = vmatmul.mubr.msk.bf16.vlgmr.msra.gmra.mrb[92].mxu1 %vm781_vm0, %v2975_v20  ;;  %4709 = vmatprep.mubr.msk.bf16.mxu0 %vm781_vm0, %v3442_v59 }
 0xd90   :  { %4682 = vmatpush3.bf16.msra.mxu1 %v3179_v15  ;;  %4685 = vmatprep.mubr.msk.bf16.mxu1 %vm781_vm0, %v3165_v24 }
 0xd91   :  { %4683 = vmatprep.subr.bf16.mxu1 %v3181_v18  ;;  %4710 = vmatmul.mubr.msk.bf16.vlgmr.msra.gmra.mrb[132].mxu0 %vm781_vm0, %v3443_v36 }
 0xd94   :  { %4684 = vmatpush3.bf16.msra.mxu1 %v3181_v18 }
 0xd95   :  { %4785 = vmatprep.subr.msk.bf16.mxu1 %vm781_vm0, %v6533_v40  ;;  %v3249_v40 = vmul.f32 %v3245_v45, %v6526_v25 }
 0xd97   :  { %v3252_v16 = vpack.c.bf16 %v3250_v9, %v3249_v40 }
 0xd9b   :  { %4686 = vmatmul.mubr.msk.bf16.vlgmr.msra.gmra.mrb[92].mxu1 %vm781_vm0, %v3166_v8 }
 0xd9c   :  { %4693 = vmatprep.mubr.msk.bf16.mxu1 %vm781_vm0, %v3251_v32 }
 0xd9d   :  { %4690 = vmatpush3.bf16.xpose.msra.mxu1 %v6541_v6 }
 0xd9e   :  { %4786 = vmatprep.subr.msk.bf16.mxu1 %vm781_vm0, %v6545_v52 }
 0xda5   :  { %4692 = vmatpush3.bf16.xpose.msra.mxu1 %v6553_v48 }
 0xdac   :  { %4694 = vmatmul.mubr.msk.bf16.vlgmr.msra.gmra.mrb[108].mxu1 %vm781_vm0, %v3252_v16 }
 0xe64   :  { %v4711_v50 = vpop.f32.mrb[132].mxu0 }
 0xe65   :  { %v3484_v58 = vpop.f32.mrb[133].mxu0  ;;  %v3493_v6 = vadd.f32 %v4711_v50, %v6576_v27 }
 0xe66   :  { %v3485_v43 = vadd.f32 %v3484_v58, %v6576_v27  ;;  %v4712_v4 = vpop.f32.mrb[134].mxu0 }
 0xe67   :  { %v3487_v55 = vpop.f32.mrb[135].mxu0  ;;  %v3505_v52 = vsel %vm781_vm0, %v3493_v6, -inf  ;;  %v3496_v56 = vadd.f32 %v4712_v4, %v6576_v27 }
 0xe68   :  { %v3499_v12 = vsel %vm781_vm0, %v3485_v43, -inf  ;;  %v3488_v41 = vadd.f32 %v3487_v55, %v6576_v27 }
 0xe69   :  { %3500 = vmax.xlane.f32.xlu1 %v3499_v12  ;;  %v3508_v2 = vsel %vm781_vm0, %v3496_v56, -inf }
 0xe6a   :  { %v3502_v31 = vsel %vm781_vm0, %v3488_v41, -inf }
 0xe6d   :  { %3506 = vmax.xlane.f32.xlu1 %v3505_v52 }
 0xe7f   :  { %v4695_v48 = vpop.f32.mrb[108].mxu1 }
 0xe80   :  { %v6876_v7 = vadd.f32 %v4695_v48, %v6576_v27  ;;  %v3293_v54 = vpop.f32.mrb[109].mxu1 }
 0xe81   :  { %v4696_v13 = vpop.f32.mrb[110].mxu1  ;;  %v6879_v15 = vadd.f32 %v3293_v54, %v6576_v27 }
 0xe82   :  { %v3296_v23 = vpop.f32.mrb[111].mxu1  ;;  %v3314_v26 = vsel %vm781_vm0, %v6876_v7, -inf  ;;  %v3305_v19 = vadd.f32 %v4696_v13, %v6576_v27 }
 0xe83   :  { %v3297_v3 = vadd.f32 %v3296_v23, %v6576_v27  ;;  %3315 = vmax.xlane.f32.xlu0 %v3314_v26  ;;  %v3308_v62 = vsel %vm781_vm0, %v6879_v15, -inf }
 0xe84   :  { %v3317_v21 = vsel %vm781_vm0, %v3305_v19, -inf }
 0xe85   :  { %v3311_v18 = vsel %vm781_vm0, %v3297_v3, -inf }
 0xe86   :  { %3312 = vmax.xlane.f32.xlu1 %v3311_v18 }
 0xe87   :  { %3309 = vmax.xlane.f32.xlu0 %v3308_v62 }
 0xe8b   :  { %3318 = vmax.xlane.f32.xlu0 %v3317_v21 }
 0xe8f   :  { %3503 = vmax.xlane.f32.xlu0 %v3502_v31 }
 0xe93   :  { %3509 = vmax.xlane.f32.xlu0 %v3508_v2 }
 0xe97   :  { %3354 = vrot.lane.b32.xlu1 %v6576_v27, %s5373_s3 }
 0xea9   :  { %3545 = vrot.lane.b32.xlu0 %v6839_v57, %s5373_s3 }
 0xef6   :  { %v3501_v47 = vpop.xlane.xlu1 %3500 }
 0xef7   :  { %v3511_v33 = vsub.f32 %v3485_v43, %v3501_v47 }
 0xef9   :  { %v3515_v49 = vmul.f32 1.442695, %v3511_v33 }
 0xefa   :  { %v3507_v42 = vpop.xlane.xlu1 %3506 }
 0xefb   :  { %5313 = vpow2.f32 %v3515_v49  ;;  %v3513_v61 = vsub.f32 %v3493_v6, %v3507_v42 }
 0xefd   :  { %v3519_v10 = vmul.f32 1.442695, %v3513_v61  ;;  %v4955_v61 = vld [vmem:[%s7133_s4 + $0x90] sm:$0xff]  }
 0xefe   :  { %4721 = vmatprep.subr.bf16.mxu0 %v4955_v61 }
 0xeff   :  { %5315 = vpow2.f32 %v3519_v10  ;;  %4722 = vmatpush3.bf16.msra.mxu0 %v4955_v61 }
 0xf05   :  { %v6897_v1 = vpop.eup %5313 }
 0xf06   :  { %v3523_v28 = vsel %vm781_vm0, %v6897_v1, 0.0 }
 0xf07   :  { %3524 = vadd.xlane.f32.xlu1 %v3523_v28 }
 0xf09   :  { %v6901_v36 = vpop.eup %5315 }
 0xf0a   :  { %v3529_v27 = vsel %vm781_vm0, %v6901_v36, 0.0 }
 0xf0b   :  { %3530 = vadd.xlane.f32.xlu1 %v3529_v27 }
 0xf10   :  { %v3316_v57 = vpop.xlane.xlu0 %3315 }
 0xf11   :  { %v3322_v43 = vsub.f32 %v6876_v7, %v3316_v57 }
 0xf13   :  { %v3313_v20 = vpop.xlane.xlu1 %3312  ;;  %v3328_v6 = vmul.f32 1.442695, %v3322_v43 }
 0xf14   :  { %v3310_v59 = vpop.xlane.xlu0 %3309  ;;  %v3321_v9 = vsub.f32 %v3297_v3, %v3313_v20 }
 0xf15   :  { %v3320_v12 = vsub.f32 %v6879_v15, %v3310_v59 }
 0xf16   :  { %v3326_v58 = vmul.f32 1.442695, %v3321_v9 }
 0xf17   :  { %v3355_v24 = vpop.permute.xlu1 %3354  ;;  %v3324_v7 = vmul.f32 1.442695, %v3320_v12 }
 0xf18   :  { %v3357_v29 = vmul.f32 %v3355_v24, %v6513_v60  ;;  %v3358_v5 = vmul.f32 %v3355_v24, %v6516_v17  ;;  %v3319_v45 = vpop.xlane.xlu0 %3318  ;;  %v3359_v62 = vmul.f32 %v3355_v24, %v6526_v25 }
 0xf19   :  { %v3323_v44 = vsub.f32 %v3305_v19, %v3319_v45 }
 0xf1a   :  { %v3361_v53 = vpack.c.bf16 %v3358_v5, %v3357_v29 }
 0xf1b   :  { %v3330_v16 = vmul.f32 1.442695, %v3323_v44 }
 0xf1c   :  { %v3504_v37 = vpop.xlane.xlu0 %3503  ;;  %3365 = vrot.lane.b32.xlu1 %v3361_v53, %s5374_s8 }
 0xf1d   :  { %v3512_v0 = vsub.f32 %v3488_v41, %v3504_v37  ;;  %v3360_v41 = vmul.f32 %v3355_v24, %v6519_v63 }
 0xf1f   :  { %v3517_v8 = vmul.f32 1.442695, %v3512_v0 }
 0xf20   :  { %v3510_v32 = vpop.xlane.xlu0 %3509 }
 0xf21   :  { %5317 = vpow2.f32 %v3517_v8  ;;  %v3514_v40 = vsub.f32 %v3496_v56, %v3510_v32  ;;  %v3362_v56 = vpack.c.bf16 %v3360_v41, %v3359_v62 }
 0xf23   :  { %v3521_v50 = vmul.f32 1.442695, %v3514_v40 }
 0xf24   :  { %v3546_v21 = vpop.permute.xlu0 %3545 }
 0xf25   :  { %5319 = vpow2.f32 %v3521_v50  ;;  %v3548_v31 = vmul.f32 %v3546_v21, %v6513_v60  ;;  %v3549_v2 = vmul.f32 %v3546_v21, %v6516_v17  ;;  %v3550_v47 = vmul.f32 %v3546_v21, %v6526_v25 }
 0xf26   :  { %5321 = vpow2.f32 %v3330_v16  ;;  %v3551_v33 = vmul.f32 %v3546_v21, %v6519_v63 }
 0xf27   :  { %5323 = vpow2.f32 %v3326_v58  ;;  %v3552_v49 = vpack.c.bf16 %v3549_v2, %v3548_v31 }
 0xf28   :  { %5325 = vpow2.f32 %v3328_v6  ;;  %v3553_v42 = vpack.c.bf16 %v3551_v33, %v3550_v47 }
 0xf29   :  { %5327 = vpow2.f32 %v3324_v7 }
 0xf2b   :  { %v6909_v4 = vpop.eup %5317 }
 0xf2c   :  { %v3526_v55 = vsel %vm781_vm0, %v6909_v4, 0.0 }
 0xf2d   :  { %3527 = vadd.xlane.f32.xlu0 %v3526_v55 }
 0xf2f   :  { %v6914_v52 = vpop.eup %5319 }
 0xf30   :  { %v3532_v48 = vsel %vm781_vm0, %v6914_v52, 0.0  ;;  %v6918_v54 = vpop.eup %5321 }
 0xf31   :  { %3533 = vadd.xlane.f32.xlu0 %v3532_v48  ;;  %v3341_v13 = vsel %vm781_vm0, %v6918_v54, 0.0  ;;  %v5324_v23 = vpop.eup %5323 }
 0xf32   :  { %v3335_v26 = vsel %vm781_vm0, %v5324_v23, 0.0  ;;  %v5326_v15 = vpop.eup %5325 }
 0xf33   :  { %v3338_v3 = vsel %vm781_vm0, %v5326_v15, 0.0  ;;  %v5328_v18 = vpop.eup %5327 }
 0xf34   :  { %v3332_v19 = vsel %vm781_vm0, %v5328_v18, 0.0 }
 0xf35   :  { %3342 = vadd.xlane.f32.xlu0 %v3341_v13 }
 0xf39   :  { %3336 = vadd.xlane.f32.xlu0 %v3335_v26 }
 0xf40   :  { %3339 = vadd.xlane.f32.xlu1 %v3338_v3 }
 0xf44   :  { %3333 = vadd.xlane.f32.xlu1 %v3332_v19 }
 0xf4f   :  { %3367 = vrot.lane.b32.xlu0 %v3362_v56, %s5374_s8 }
 0xf55   :  { %3556 = vrot.lane.b32.xlu1 %v3552_v49, %s5374_s8 }
 0xf59   :  { %3558 = vrot.lane.b32.xlu1 %v3553_v42, %s5374_s8 }
 0xf94   :  { %v3525_v60 = vpop.xlane.xlu1 %3524 }
 0xf95   :  { %5329 = vrcp.f32 %v3525_v60 }
 0xf98   :  { %v3531_v17 = vpop.xlane.xlu1 %3530 }
 0xf9c   :  { %v3366_v10 = vpop.permute.xlu1 %3365 }
 0xf9d   :  { %4697 = vmatprep.subr.bf16.mxu1 %v3366_v10 }
 0xf9e   :  { %4698 = vmatpush3.bf16.msra.mxu1 %v3366_v10 }
 0xf9f   :  { %v5330_v29 = vpop.eup %5329 }
 0xfa0   :  { %v3536_v50 = vmul.f32 %v5330_v29, %v6897_v1  ;;  %v4956_v1 = vld [vmem:[%s7133_s4 + $0x98] sm:$0xff]  }
 0xfa1   :  { %4723 = vmatprep.subr.bf16.mxu0 %v4956_v1 }
 0xfa2   :  { %4724 = vmatpush3.bf16.msra.mxu0 %v4956_v1 }
 0xfba   :  { %v3528_v25 = vpop.xlane.xlu0 %3527 }
 0xfbb   :  { %5331 = vrcp.f32 %v3528_v25 }
 0xfbe   :  { %v3534_v28 = vpop.xlane.xlu0 %3533 }
 0xfc2   :  { %v3343_v63 = vpop.xlane.xlu0 %3342 }
 0xfc5   :  { %v5332_v5 = vpop.eup %5331 }
 0xfc6   :  { %v3337_v27 = vpop.xlane.xlu0 %3336  ;;  %v3538_v40 = vmul.f32 %v5332_v5, %v6909_v4 }
 0xfc8   :  { %v3543_v43 = vpack.c.bf16 %v3538_v40, %v3536_v50 }
 0xfca   :  { %v3368_v57 = vpop.permute.xlu0 %3367 }
 0xfcb   :  { %4699 = vmatprep.subr.bf16.mxu1 %v3368_v57 }
 0xfcc   :  { %4700 = vmatpush3.bf16.msra.mxu1 %v3368_v57 }
 0xfcd   :  { %v3340_v20 = vpop.xlane.xlu1 %3339 }
 0xfce   :  { %5333 = vrcp.f32 %v3340_v20 }
 0xfcf   :  { %5335 = vrcp.f32 %v3337_v27 }
 0xfd0   :  { %5337 = vrcp.f32 %v3343_v63 }
 0xfd1   :  { %v3334_v59 = vpop.xlane.xlu1 %3333 }
 0xfd2   :  { %5339 = vrcp.f32 %v3334_v59 }
 0xfd3   :  { %5341 = vrcp.f32 %v3534_v28 }
 0xfd4   :  { %5343 = vrcp.f32 %v3531_v17 }
 0xfd5   :  { %v3557_v24 = vpop.permute.xlu1 %3556 }
 0xfd6   :  { %4713 = vmatprep.subr.bf16.mxu1 %v3557_v24 }
 0xfd8   :  { %v5334_v45 = vpop.eup %5333 }
 0xfd9   :  { %v5336_v53 = vpop.eup %5335  ;;  %v3349_v44 = vmul.f32 %v5334_v45, %v5326_v15  ;;  %v3559_v55 = vpop.permute.xlu1 %3558 }
 0xfda   :  { %v5338_v37 = vpop.eup %5337  ;;  %v3347_v32 = vmul.f32 %v5336_v53, %v5324_v23 }
 0xfdb   :  { %v3351_v9 = vmul.f32 %v5338_v37, %v6918_v54 }
 0xfdc   :  { %v5340_v0 = vpop.eup %5339 }
 0xfdd   :  { %v3345_v8 = vmul.f32 %v5340_v0, %v5328_v18  ;;  %v3353_v58 = vpack.c.bf16 %v3351_v9, %v3349_v44  ;;  %v5342_v6 = vpop.eup %5341 }
 0xfde   :  { %v5344_v12 = vpop.eup %5343  ;;  %v3542_v4 = vmul.f32 %v5342_v6, %v6914_v52 }
 0xfdf   :  { %v3352_v16 = vpack.c.bf16 %v3347_v32, %v3345_v8  ;;  %v3540_v48 = vmul.f32 %v5344_v12, %v6901_v36 }
 0xfe1   :  { %4701 = vmatprep.mubr.msk.bf16.mxu1 %vm781_vm0, %v3352_v16  ;;  %v3544_v54 = vpack.c.bf16 %v3542_v4, %v3540_v48 }
 0xfe2   :  { %4702 = vmatmul.mubr.msk.bf16.vlgmr.msra.gmra.mrb[92].mxu1 %vm781_vm0, %v3353_v58 }
 0xfe3   :  { %4714 = vmatpush3.bf16.msra.mxu1 %v3557_v24  ;;  %4717 = vmatprep.mubr.msk.bf16.mxu1 %vm781_vm0, %v3543_v43 }
 0xfe4   :  { %4715 = vmatprep.subr.bf16.mxu1 %v3559_v55 }
 0xfe7   :  { %4716 = vmatpush3.bf16.msra.mxu1 %v3559_v55 }
 0xfee   :  { %4718 = vmatmul.mubr.msk.bf16.vlgmr.msra.gmra.mrb[92].mxu1 %vm781_vm0, %v3544_v54 }
0x10c1   :  { %v4719_v7 = vpop.f32.mrb[92].mxu1 }
0x10c2   :  { %v3602_v13 = vpop.f32.mrb[93].mxu1 }
0x10c3   :  { %v4720_v23 = vpop.f32.mrb[94].mxu1 }
0x10c4   :  { %v3622_v26 = vpack.c.bf16 %v4720_v23, %v4719_v7  ;;  %v3605_v15 = vpop.f32.mrb[95].mxu1 }
0x10c5   :  { %v3621_v3 = vpack.c.bf16 %v3605_v15, %v3602_v13 }
0x10c7   :  { %4725 = vmatprep.mubr.msk.bf16.mxu0 %vm781_vm0, %v3621_v3 }
0x10c8   :  { %4726 = vmatmul.mubr.msk.bf16.vlgmr.msra.gmra.mrb[136].mxu0 %vm781_vm0, %v3622_v26 }
0x119b   :  { %v4727_v36 = vpop.f32.mrb[136].mxu0 }
0x119c   :  { %v3696_v52 = vadd.f32 %v4727_v36, %v6505_v30  ;;  %v3679_v18 = vpop.f32.mrb[137].mxu0 }
0x119d   :  { %v4728_v19 = vpop.f32.mrb[138].mxu0  ;;  %v3694_v21 = vadd.f32 %v3679_v18, %v6498_v22  ;;  %v4958_v18 = vld [vmem:[%s7133_s4 + $0xa0] sm:$0xff]  }
0x119e   :  { %v3700_v62 = vadd.f32 %v3696_v52, %v6637_v46  ;;  %v3682_v41 = vpop.f32.mrb[139].mxu0  ;;  %v3697_v61 = vadd.f32 %v4728_v19, %v6507_v38  ;;  %v4957_v52 = vld [vmem:[%s7133_s4 + $0xa0] sm:$0xff]   ;;  %v5375_v19 = vmov 0.0  }
0x119f   :  { %v3695_v56 = vadd.f32 %v3682_v41, %v6500_v35  ;;  %v3698_v47 = vadd.f32 %v3694_v21, %v6637_v46  ;;  %4737 = vmatprep.subr.bf16.mxu1 %v5375_v19  ;;  %4729 = vmatprep.subr.bf16.mxu0 %v5375_v19  ;;  %v4960_v41 = vld [vmem:[%s7133_s4 + $0xa8] sm:$0xff]   ;;  %v3782_v21 = vadd.s32 16, %v7173_v11 }
0x11a0   :  { %v3708_v31 = vsel %vm781_vm0, %v3700_v62, 0.0  ;;  %v3701_v25 = vadd.f32 %v3697_v61, %v6637_v46  ;;  %4738 = vmatpush3.bf16.msra.mxu1 %v4957_v52  ;;  %4730 = vmatpush3.bf16.msra.mxu0 %v4958_v18 }
0x11a1   :  { %v3699_v2 = vadd.f32 %v3695_v56, %v6637_v46  ;;  %3709 = vadd.xlane.f32.xlu1 %v3708_v31  ;;  %v3702_v30 = vsel %vm781_vm0, %v3698_v47, 0.0  ;;  %4739 = vmatprep.subr.bf16.mxu1 %v5375_v19  ;;  %v3781_v56 = vadd.s32 8, %v7173_v11  ;;  %vm3964_vm2 = vcmp.lt.s32.totalorder %v3782_v21, 18 }
0x11a2   :  { %v3711_v24 = vsel %vm781_vm0, %v3701_v25, 0.0  ;;  %4731 = vmatprep.subr.bf16.mxu0 %v5375_v19  ;;  %4741 = vmatprep.mubr.msk.bf16.mxu1 %vm5376_vm1, %v5375_v19 }
0x11a3   :  { %v3705_v33 = vsel %vm781_vm0, %v3699_v2, 0.0  ;;  %4733 = vmatprep.mubr.msk.bf16.mxu0 %vm5376_vm1, %v5375_v19  ;;  %vm3959_vm3 = vcmp.ge.s32.totalorder %v3781_v56, 9  ;;  %vm3789_vm4 = vcmp.lt.s32.totalorder %v3781_v56, 9 }
0x11a4   :  { %3706 = vadd.xlane.f32.xlu0 %v3705_v33  ;;  %4732 = vmatpush3.bf16.msra.mxu0 %v4960_v41 }
0x11a8   :  { %3703 = vadd.xlane.f32.xlu0 %v3702_v30 }
0x122e   :  { %v3710_v49 = vpop.xlane.xlu1 %3709 }
0x122f   :  { %v3717_v42 = vmul.f32 0.03125, %v3710_v49 }
0x1231   :  { %v3721_v22 = vsub.f32 %v3700_v62, %v3717_v42  ;;  %v3707_v60 = vpop.xlane.xlu0 %3706  ;;  %v4959_v62 = vld [vmem:[%s7133_s4 + $0xa8] sm:$0xff]  }
0x1232   :  { %v3716_v35 = vmul.f32 0.03125, %v3707_v60  ;;  %4740 = vmatpush3.bf16.msra.mxu1 %v4959_v62 }
0x1233   :  { %v3725_v17 = vmul.f32 %v3721_v22, %v3721_v22 }
0x1234   :  { %v3720_v10 = vsub.f32 %v3699_v2, %v3716_v35 }
0x1235   :  { %v3704_v28 = vpop.xlane.xlu0 %3703  ;;  %v3733_v63 = vsel %vm781_vm0, %v3725_v17, 0.0 }
0x1236   :  { %v3715_v27 = vmul.f32 0.03125, %v3704_v28  ;;  %3734 = vadd.xlane.f32.xlu1 %v3733_v63  ;;  %v3724_v57 = vmul.f32 %v3720_v10, %v3720_v10 }
0x1238   :  { %v3719_v20 = vsub.f32 %v3698_v47, %v3715_v27  ;;  %v3730_v59 = vsel %vm781_vm0, %v3724_v57, 0.0 }
0x1239   :  { %3731 = vadd.xlane.f32.xlu0 %v3730_v59 }
0x123a   :  { %3712 = vadd.xlane.f32.xlu1 %v3711_v24  ;;  %v3723_v38 = vmul.f32 %v3719_v20, %v3719_v20 }
0x123c   :  { %v3727_v29 = vsel %vm781_vm0, %v3723_v38, 0.0 }
0x123d   :  { %3728 = vadd.xlane.f32.xlu0 %v3727_v29 }
0x12c3   :  { %v3735_v5 = vpop.xlane.xlu1 %3734 }
0x12c4   :  { %v3741_v45 = vmul.f32 0.03125, %v3735_v5 }
0x12c6   :  { %v3745_v46 = vadd.f32 1e-05, %v3741_v45  ;;  %v3732_v53 = vpop.xlane.xlu0 %3731 }
0x12c7   :  { %v3740_v37 = vmul.f32 0.03125, %v3732_v53  ;;  %v3713_v40 = vpop.xlane.xlu1 %3712 }
0x12c8   :  { %5345 = vrsqrt.f32 %v3745_v46  ;;  %v3718_v9 = vmul.f32 0.03125, %v3713_v40 }
0x12c9   :  { %v3744_v0 = vadd.f32 1e-05, %v3740_v37 }
0x12ca   :  { %v3729_v44 = vpop.xlane.xlu0 %3728  ;;  %v6966_v43 = vsub.f32 %v3701_v25, %v3718_v9 }
0x12cb   :  { %5347 = vrsqrt.f32 %v3744_v0  ;;  %v3739_v8 = vmul.f32 0.03125, %v3729_v44 }
0x12cc   :  { %v3726_v1 = vmul.f32 %v6966_v43, %v6966_v43 }
0x12cd   :  { %v3743_v32 = vadd.f32 1e-05, %v3739_v8 }
0x12ce   :  { %v3736_v15 = vsel %vm781_vm0, %v3726_v1, 0.0 }
0x12cf   :  { %5349 = vrsqrt.f32 %v3743_v32 }
0x12d2   :  { %v5346_v16 = vpop.eup %5345 }
0x12d3   :  { %v3753_v50 = vmul.f32 %v5346_v16, %v3721_v22 }
0x12d5   :  { %v5348_v58 = vpop.eup %5347  ;;  %v3757_v55 = vmul.f32 %v3753_v50, %v6683_v39 }
0x12d6   :  { %v3752_v6 = vmul.f32 %v5348_v58, %v3720_v10 }
0x12d7   :  { %v6970_v12 = vadd.f32 %v3757_v55, %v6723_v34 }
0x12d8   :  { %v3756_v4 = vmul.f32 %v3752_v6, %v6683_v39 }
0x12d9   :  { %v5350_v48 = vpop.eup %5349  ;;  %v3769_v54 = vsel %vm781_vm0, %v6970_v12, 0.0 }
0x12da   :  { %3770 = vadd.xlane.f32.xlu1 %v3769_v54  ;;  %v6978_v7 = vadd.f32 %v3756_v4, %v6723_v34  ;;  %v3751_v13 = vmul.f32 %v5350_v48, %v3719_v20 }
0x12dc   :  { %v3766_v23 = vsel %vm781_vm0, %v6978_v7, 0.0  ;;  %v3755_v26 = vmul.f32 %v3751_v13, %v6683_v39 }
0x12dd   :  { %3767 = vadd.xlane.f32.xlu0 %v3766_v23 }
0x12de   :  { %3737 = vadd.xlane.f32.xlu1 %v3736_v15  ;;  %v6985_v3 = vadd.f32 %v3755_v26, %v6723_v34 }
0x12e0   :  { %v3763_v36 = vsel %vm781_vm0, %v6985_v3, 0.0 }
0x12e1   :  { %3764 = vadd.xlane.f32.xlu0 %v3763_v36 }
0x1367   :  { %v3771_v31 = vpop.xlane.xlu1 %3770 }
0x1368   :  { %v3777_v2 = vmul.f32 0.03125, %v3771_v31 }
0x136a   :  { %v3768_v47 = vpop.xlane.xlu0 %3767  ;;  %v3972_v33 = vsel %vm3964_vm2, %v3777_v2, -1e+09 }
0x136b   :  { %v3776_v30 = vmul.f32 0.03125, %v3768_v47  ;;  %v3975_v42 = vmax.f32 %v3972_v33, -1e+09  ;;  %v3738_v4 = vpop.xlane.xlu1 %3737 }
0x136c   :  { %v3742_v26 = vmul.f32 0.03125, %v3738_v4 }
0x136d   :  { %v3971_v49 = vsel %vm3959_vm3, %v3776_v30, -1e+09  ;;  %v3797_v35 = vsel %vm3789_vm4, %v3776_v30, -1e+09 }
0x136e   :  { %v3974_v61 = vmax.f32 %v3971_v49, -1e+09  ;;  %v3765_v22 = vpop.xlane.xlu0 %3764  ;;  %v3746_v62 = vadd.f32 1e-05, %v3742_v26 }
0x136f   :  { %v3775_v60 = vmul.f32 0.03125, %v3765_v22 }
0x1370   :  { %v3976_v17 = vmax.f32 %v3974_v61, %v3975_v42 }
0x1371   :  { %v3800_v10 = vmax.f32 %v3775_v60, %v3797_v35 }
0x1372   :  { %v3977_v25 = vrot.slane %v3976_v17, 4 }
0x1373   :  { %v3802_v28 = vmax.f32 %v3800_v10, -1e+09 }
0x1374   :  { %v3978_v63 = vmax.f32 %v3976_v17, %v3977_v25 }
0x1375   :  { %v3803_v11 = vrot.slane %v3802_v28, 4 }
0x1376   :  { %v3979_v27 = vrot.slane %v3978_v63, 2 }
0x1377   :  { %v3804_v57 = vmax.f32 %v3802_v28, %v3803_v11 }
0x1378   :  { %v3980_v20 = vmax.f32 %v3978_v63, %v3979_v27 }
0x1379   :  { %v3805_v59 = vrot.slane %v3804_v57, 2 }
0x137a   :  { %v3981_v24 = vrot.slane %v3980_v20, 1 }
0x137b   :  { %v3806_v38 = vmax.f32 %v3804_v57, %v3805_v59 }
0x137c   :  { %v3982_v29 = vmax.f32 %v3980_v20, %v3981_v24 }
0x137d   :  { %v3807_v5 = vrot.slane %v3806_v38, 1 }
0x137e   :  { %v3983_v45 = vsub.f32 -1e+09, %v3982_v29  ;;  %v3984_v46 = vsub.f32 %v3971_v49, %v3982_v29  ;;  %v3985_v53 = vsub.f32 %v3972_v33, %v3982_v29 }
0x137f   :  { %v3808_v37 = vmax.f32 %v3806_v38, %v3807_v5 }
0x1380   :  { %v3987_v0 = vmul.f32 1.442695, %v3983_v45  ;;  %v3989_v44 = vmul.f32 1.442695, %v3984_v46  ;;  %v3991_v8 = vmul.f32 1.442695, %v3985_v53 }
0x1381   :  { %v3809_v32 = vsub.f32 %v3775_v60, %v3808_v37  ;;  %v3810_v40 = vsub.f32 %v3797_v35, %v3808_v37  ;;  %v3811_v9 = vsub.f32 -1e+09, %v3808_v37 }
0x1382   :  { %5351 = vpow2.f32 %v3987_v0 }
0x1383   :  { %5353 = vpow2.f32 %v3989_v44  ;;  %v3813_v16 = vmul.f32 1.442695, %v3809_v32  ;;  %v3815_v50 = vmul.f32 1.442695, %v3810_v40  ;;  %v3817_v58 = vmul.f32 1.442695, %v3811_v9 }
0x1384   :  { %5355 = vpow2.f32 %v3991_v8 }
0x1385   :  { %5357 = vpow2.f32 %v3813_v16 }
0x1386   :  { %5359 = vpow2.f32 %v3815_v50 }
0x1387   :  { %5361 = vpow2.f32 %v3817_v58 }
0x1388   :  { %5363 = vrsqrt.f32 %v3746_v62 }
0x138c   :  { %v5352_v55 = vpop.eup %5351 }
0x138d   :  { %v5354_v6 = vpop.eup %5353 }
0x138e   :  { %v5356_v48 = vpop.eup %5355  ;;  %v3995_v54 = vadd.f32 %v5354_v6, %v5352_v55 }
0x138f   :  { %v5358_v1 = vpop.eup %5357 }
0x1390   :  { %v5360_v13 = vpop.eup %5359  ;;  %v3996_v23 = vadd.f32 %v5356_v48, %v3995_v54 }
0x1391   :  { %v3821_v15 = vadd.f32 %v5360_v13, %v5358_v1  ;;  %v5362_v36 = vpop.eup %5361 }
0x1392   :  { %v3997_v52 = vadd.f32 %v5352_v55, %v3996_v23  ;;  %v5364_v60 = vpop.eup %5363 }
0x1393   :  { %v3822_v18 = vadd.f32 %v5362_v36, %v3821_v15  ;;  %v3754_v35 = vmul.f32 %v5364_v60, %v6966_v43 }
0x1394   :  { %v3998_v19 = vrot.slane %v3997_v52, 4 }
0x1395   :  { %v3823_v41 = vadd.f32 %v5362_v36, %v3822_v18  ;;  %v3758_v17 = vmul.f32 %v3754_v35, %v6683_v39 }
0x1396   :  { %v3999_v21 = vadd.f32 %v3998_v19, %v3997_v52  ;;  %v3870_v19 = vrot.slane %v6836_v51, 5 }
0x1397   :  { %v3824_v56 = vrot.slane %v3823_v41, 4  ;;  %v3762_v20 = vadd.f32 %v3758_v17, %v6723_v34 }
0x1398   :  { %v4000_v31 = vrot.slane %v3999_v21, 2 }
0x1399   :  { %v3825_v2 = vadd.f32 %v3824_v56, %v3823_v41 }
0x139a   :  { %v4001_v47 = vadd.f32 %v4000_v31, %v3999_v21 }
0x139b   :  { %v3826_v33 = vrot.slane %v3825_v2, 2 }
0x139c   :  { %v4002_v30 = vrot.slane %v4001_v47, 1 }
0x139d   :  { %v3827_v49 = vadd.f32 %v3826_v33, %v3825_v2 }
0x139e   :  { %v4003_v42 = vadd.f32 %v4002_v30, %v4001_v47 }
0x139f   :  { %v3828_v61 = vrot.slane %v3827_v49, 1 }
0x13a0   :  { %5365 = vrcp.f32 %v4003_v42 }
0x13a1   :  { %v3829_v22 = vadd.f32 %v3828_v61, %v3827_v49 }
0x13a3   :  { %5367 = vrcp.f32 %v3829_v22 }
0x13aa   :  { %v5366_v10 = vpop.eup %5365 }
0x13ab   :  { %v4005_v25 = vmul.f32 %v5366_v10, %v5352_v55  ;;  %v4006_v28 = vmul.f32 %v5366_v10, %v5354_v6  ;;  %v4007_v63 = vmul.f32 %v5366_v10, %v5356_v48  ;;  %v3930_v10 = vld [vmem:[%s7138_s0] sm:$0xff] }
0x13ad   :  { %v5368_v11 = vpop.eup %5367  ;;  %v4009_v27 = vmul.f32 %v4005_v25, %v6985_v3  ;;  %v4010_v57 = vmul.f32 %v4006_v28, %v6978_v7  ;;  %v4011_v59 = vmul.f32 %v4007_v63, %v6970_v12  ;;  %v4012_v5 = vmul.f32 %v4005_v25, %v3762_v20  ;;  %v3931_v25 = vld [vmem:[%s7138_s0 + $0x8] sm:$0xff]  ;;  %v3932_v63 = vld [vmem:[%s7138_s0 + $0x10] sm:$0xff] }
0x13ae   :  { %v3831_v24 = vmul.f32 %v5368_v11, %v5358_v1  ;;  %v3832_v38 = vmul.f32 %v5368_v11, %v5360_v13  ;;  %v3833_v29 = vmul.f32 %v5368_v11, %v5362_v36  ;;  %v3933_v11 = vld [vmem:[%s7138_s0 + $0x18] sm:$0xff] }
0x13af   :  { %v4013_v43 = vsel %vm781_vm0, %v4009_v27, 0.0  ;;  %v4014_v39 = vsel %vm781_vm0, %v4010_v57, 0.0  ;;  %v4016_v0 = vsel %vm781_vm0, %v4011_v59, 0.0  ;;  %v4018_v9 = vsel %vm781_vm0, %v4012_v5, 0.0  ;;  %v3934_v27 = vld [vmem:[%s7138_s0 + $0x20] sm:$0xff]  ;;  %v3936_v59 = vld [vmem:[%s7138_s0 + $0x30] sm:$0xff] }
0x13b0   :  { %v4015_v45 = vadd.f32 %v4014_v39, %v4013_v43  ;;  %v3835_v46 = vmul.f32 %v3831_v24, %v6985_v3  ;;  %v3836_v53 = vmul.f32 %v3832_v38, %v6978_v7  ;;  %v3837_v37 = vmul.f32 %v3833_v29, %v6970_v12  ;;  %v3937_v24 = vld [vmem:[%s7138_s0 + $0x38] sm:$0xff] }
0x13b1   :  { %v3838_v32 = vmul.f32 %v3833_v29, %v3762_v20  ;;  %v3935_v20 = vld [vmem:[%s7138_s0 + $0x28] sm:$0xff] }
0x13b2   :  { %v3839_v34 = vsel %vm781_vm0, %v3835_v46, 0.0  ;;  %v3840_v44 = vsel %vm781_vm0, %v3836_v53, 0.0  ;;  %v4017_v8 = vadd.f32 %v4016_v0, %v4015_v45  ;;  %v3842_v50 = vsel %vm781_vm0, %v3837_v37, 0.0 }
0x13b3   :  { %v3841_v40 = vadd.f32 %v3840_v44, %v3839_v34  ;;  %v3844_v7 = vsel %vm781_vm0, %v3838_v32, 0.0  ;;  %v4333_v44 = vld [vmem:[%s7138_s0 + $0x40] sm:$0xff] }
0x13b4   :  { %v4019_v16 = vadd.f32 %v4018_v9, %v4017_v8  ;;  %v4334_v8 = vld [vmem:[%s7138_s0 + $0x48] sm:$0xff] }
0x13b5   :  { %v3843_v58 = vadd.f32 %v3842_v50, %v3841_v40 }
0x13b6   :  { %v4020_v3 = vrot.slane %v4019_v16, 4 }
0x13b7   :  { %v3845_v55 = vadd.f32 %v3844_v7, %v3843_v58 }
0x13b8   :  { %v4021_v12 = vadd.f32 %v4020_v3, %v4019_v16 }
0x13b9   :  { %v3846_v6 = vrot.slane %v3845_v55, 4 }
0x13ba   :  { %v4022_v4 = vrot.slane %v4021_v12, 2 }
0x13bb   :  { %v3847_v48 = vadd.f32 %v3846_v6, %v3845_v55 }
0x13bc   :  { %v4023_v54 = vadd.f32 %v4022_v4, %v4021_v12 }
0x13bd   :  { %v3848_v1 = vrot.slane %v3847_v48, 2 }
0x13be   :  { %v4024_v13 = vrot.slane %v4023_v54, 1 }
0x13bf   :  { %v3849_v23 = vadd.f32 %v3848_v1, %v3847_v48 }
0x13c0   :  { %v4025_v26 = vadd.f32 %v4024_v13, %v4023_v54 }
0x13c1   :  { %v3850_v15 = vrot.slane %v3849_v23, 1 }
0x13c2   :  { %v4026_v36 = vpack.c.bf16 %v4025_v26, %v4025_v26 }
0x13c3   :  { %v3851_v52 = vadd.f32 %v3850_v15, %v3849_v23 }
0x13c4   :  { %4742 = vmatmul.mubr.msk.bf16.vlgmr.msra.gmra.mrb[112].mxu1 %vm781_vm0, %v4026_v36 }
0x13c5   :  { %v3852_v18 = vpack.c.bf16 %v3851_v52, %v3851_v52 }
0x13c7   :  { %4734 = vmatmul.mubr.msk.bf16.vlgmr.msra.gmra.mrb[140].mxu0 %vm781_vm0, %v3852_v18 }
0x1497   :  { %v4080_v62 = vpop.f32.mrb[112].mxu1 }
0x1498   :  { %v4081_v41 = vadd.f32 %v4080_v62, %v3870_v19  ;;  %v4743_v21 = vpop.f32.mrb[113].mxu1 }
0x1499   :  { %v4083_v56 = vpop.f32.mrb[114].mxu1 }
0x149a   :  { %4087 = vrot.lane.b32.xlu1 %v4081_v41, %s5372_s7  ;;  %v3909_v31 = vpop.f32.mrb[140].mxu0  ;;  %v4744_v2 = vpop.f32.mrb[115].mxu1 }
0x149b   :  { %v3910_v47 = vadd.f32 %v3909_v31, %v3870_v19  ;;  %v4735_v33 = vpop.f32.mrb[141].mxu0 }
0x149c   :  { %v3912_v30 = vpop.f32.mrb[142].mxu0 }
0x149d   :  { %3916 = vrot.lane.b32.xlu0 %v3910_v47, %s5372_s7  ;;  %v4736_v49 = vpop.f32.mrb[143].mxu0 }
0x149e   :  { %3919 = vrot.lane.b32.xlu1 %v3910_v47, %s5374_s8 }
0x14a1   :  { %4090 = vrot.lane.b32.xlu0 %v4081_v41, %s5374_s8 }
0x14a2   :  { %3922 = vrot.lane.b32.xlu1 %v3910_v47, %s5373_s3 }
0x14a5   :  { %4093 = vrot.lane.b32.xlu0 %v4081_v41, %s5373_s3 }
0x150c   :  { %v4088_v51 = vpop.permute.xlu1 %4087 }
0x150d   :  { %v4096_v57 = vsel %vm781_vm0, %v4081_v41, %v4088_v51 }
0x150f   :  { %v3917_v42 = vpop.permute.xlu0 %3916 }
0x1510   :  { %v3920_v61 = vpop.permute.xlu1 %3919  ;;  %v3925_v22 = vsel %vm781_vm0, %v3910_v47, %v3917_v42 }
0x1511   :  { %v3927_v35 = vsel %vm3926_vm5, %v3925_v22, %v3920_v61 }
0x1513   :  { %v4091_v60 = vpop.permute.xlu0 %4090 }
0x1514   :  { %v3923_v17 = vpop.permute.xlu1 %3922  ;;  %v4097_v29 = vsel %vm3926_vm5, %v4096_v57, %v4091_v60 }
0x1515   :  { %v3929_v28 = vsel %vm3928_vm6, %v3927_v35, %v3923_v17 }
0x1516   :  { %v3941_v38 = vrot.slane %v3929_v28, %v6483_v14 }
0x1517   :  { %v4094_v43 = vpop.permute.xlu0 %4093 }
0x1518   :  { %v3942_v39 = vadd.f32 %v3941_v38, %v3930_v10  ;;  %v3943_v5 = vadd.f32 %v3941_v38, %v3931_v25  ;;  %v3944_v45 = vadd.f32 %v3941_v38, %v3932_v63  ;;  %v3945_v46 = vadd.f32 %v3941_v38, %v3933_v11 }
0x1519   :  { %v3946_v53 = vadd.f32 %v3941_v38, %v3934_v27  ;;  %v3947_v37 = vadd.f32 %v3941_v38, %v3935_v20  ;;  %v3948_v0 = vadd.f32 %v3941_v38, %v3936_v59  ;;  %v3949_v34 = vadd.f32 %v3941_v38, %v3937_v24 }
0x151a   :  { %3950 = vst [vmem:[%s7139_s6] sm:$0xff] %v3942_v39  ;;  %3951 = vst [vmem:[%s7139_s6 + $0x8] sm:$0xff] %v3943_v5  ;;  %v4098_v32 = vsel %vm3928_vm6, %v4097_v29, %v4094_v43 }
0x151b   :  { %3952 = vst [vmem:[%s7139_s6 + $0x10] sm:$0xff] %v3944_v45  ;;  %3953 = vst [vmem:[%s7139_s6 + $0x18] sm:$0xff] %v3945_v46  ;;  %v4111_v7 = vrot.slane %v4098_v32, %v6483_v14 }
0x151d   :  { %v4112_v55 = vadd.f32 %v4333_v44, %v4111_v7  ;;  %v4113_v12 = vadd.f32 %v4334_v8, %v4111_v7 }
0x1522   :  { %v4335_v40 = vld [vmem:[%s7138_s0 + $0x50] sm:$0xff]  ;;  %v4336_v9 = vld [vmem:[%s7138_s0 + $0x58] sm:$0xff]  ;;  %v4337_v16 = vld [vmem:[%s7138_s0 + $0x60] sm:$0xff] }
0x1523   :  { %3954 = vst [vmem:[%s7139_s6 + $0x20] sm:$0xff] %v3946_v53  ;;  %3955 = vst [vmem:[%s7139_s6 + $0x28] sm:$0xff] %v3947_v37  ;;  %v4114_v6 = vadd.f32 %v4335_v40, %v4111_v7  ;;  %v4115_v4 = vadd.f32 %v4336_v9, %v4111_v7  ;;  %v4116_v48 = vadd.f32 %v4337_v16, %v4111_v7 }
0x1524   :  { %3956 = vst [vmem:[%s7139_s6 + $0x30] sm:$0xff] %v3948_v0  ;;  %3957 = vst [vmem:[%s7139_s6 + $0x38] sm:$0xff] %v3949_v34 }
0x152b   :  { %v4338_v50 = vld [vmem:[%s7138_s0 + $0x68] sm:$0xff]  ;;  %v4339_v58 = vld [vmem:[%s7138_s0 + $0x70] sm:$0xff]  ;;  %v4340_v3 = vld [vmem:[%s7138_s0 + $0x78] sm:$0xff] }
0x152c   :  { %v4117_v54 = vadd.f32 %v4338_v50, %v4111_v7  ;;  %v4118_v1 = vadd.f32 %v4339_v58, %v4111_v7  ;;  %v4119_v13 = vadd.f32 %v4340_v3, %v4111_v7  ;;  %4341 = vst [vmem:[%s7139_s6 + $0x40] sm:$0xff] %v4112_v55  ;;  %4342 = vst [vmem:[%s7139_s6 + $0x48] sm:$0xff] %v4113_v12 }
0x152d   :  { %4343 = vst [vmem:[%s7139_s6 + $0x50] sm:$0xff] %v4114_v6  ;;  %4344 = vst [vmem:[%s7139_s6 + $0x58] sm:$0xff] %v4115_v4 }
0x152e   :  { %4345 = vst [vmem:[%s7139_s6 + $0x60] sm:$0xff] %v4116_v48  ;;  %4346 = vst [vmem:[%s7139_s6 + $0x68] sm:$0xff] %v4117_v54 }
0x152f   :  { %4347 = vst [vmem:[%s7139_s6 + $0x70] sm:$0xff] %v4118_v1  ;;  %4348 = vst [vmem:[%s7139_s6 + $0x78] sm:$0xff] %v4119_v13 }

</bundles_post_ra>
